<compile_context>
chip_gen: v7x
topology: tpu7x:2x2x1
jax: 0.10.0
libtpu: 0.0.40
codegen_flags: <defaults>
</compile_context>

<pallas_src>
import math
import functools

import jax
import jax.numpy as jnp
from jax.experimental import pallas as pl
from jax.experimental.pallas import tpu as pltpu

NUM_LAYERS = 2
LN_EPS = 1e-5
NEG_INF = -1e30
ROWS_PER_LAYER = 12          # packed bias/LN rows per decoder layer in the param slab


def _round_up(n, m):
    return -(-n // m) * m


# ----------------------------------------------------------------------------- kernel helpers

def _layernorm(x, w, b):
    mu = jnp.mean(x, axis=-1, keepdims=True)
    xc = x - mu
    var = jnp.mean(xc * xc, axis=-1, keepdims=True)
    return xc * jax.lax.rsqrt(var + LN_EPS) * w + b


def _softmax(x):
    x = x - jnp.max(x, axis=-1, keepdims=True)
    e = jnp.exp(x)
    return e * pl.reciprocal(jnp.sum(e, axis=-1, keepdims=True), approx=True)


def _sigmoid(x):
    # sigmoid(x) = (tanh(x/2) + 1) / 2 — EUP path instead of a VALU divide.
    return 0.5 * (jnp.tanh(0.5 * x) + 1.0)


# ----------------------------------------------------------------------------- kernel

def _decoder_kernel(num_heads, mem_len, head_batched,
                    # inputs
                    tgt_ref, mem_ref,
                    sa_w_in, sa_w_out, ca_w_in, ca_w_out,
                    ff_w1, ff_w2, proj_w, slab,
                    # output
                    out_ref):
    """Single invocation: whole (padded) batch at once."""
    x3 = tgt_ref[...]                       # [B, Kp, H] f32
    mem3 = mem_ref[...]                     # [B, Sp, H] f32
    B, Kp, H = x3.shape
    Sp = mem3.shape[1]
    nh = num_heads
    hd = H // nh
    scale = 1.0 / math.sqrt(hd)
    bf16 = jnp.bfloat16

    # ---- masks generated in-kernel (no extra input refs / DMAs) ----
    qi = jax.lax.broadcasted_iota(jnp.int32, (Kp, Kp), 0)
    kj = jax.lax.broadcasted_iota(jnp.int32, (Kp, Kp), 1)
    smask = jnp.where(kj <= qi, 0.0, NEG_INF).astype(jnp.float32)          # [Kp, Kp] causal
    if Sp != mem_len:
        sj = jax.lax.broadcasted_iota(jnp.int32, (1, Sp), 1)
        cmask = jnp.where(sj < mem_len, 0.0, NEG_INF).astype(jnp.float32)  # [1, Sp] key-pad
    else:
        cmask = None

    def brow(idx, n):
        # One packed bias / LN row from the param slab, shape [1, n] f32 (static slice).
        return slab[idx:idx + 1, :n]

    def mm(a_bf16, w_bf16):
        # bf16 MXU operands, f32 accumulation.
        return jnp.dot(a_bf16, w_bf16, preferred_element_type=jnp.float32)

    # ---- attention: head-batched (preferred) or per-head fallback ----
    def attn_batched(q, k, v, Lq, Lk, mask):
        q4 = q.astype(bf16).reshape(B, Lq, nh, hd)
        k4 = k.astype(bf16).reshape(B, Lk, nh, hd)
        v4 = v.astype(bf16).reshape(B, Lk, nh, hd)
        s = jnp.einsum('bqnd,bknd->bnqk', q4, k4,
                       preferred_element_type=jnp.float32) * scale
        if mask is not None:
            s = s + mask                                   # broadcast over (B, nh)
        p = _softmax(s).astype(bf16)
        o = jnp.einsum('bnqk,bknd->bqnd', p, v4,
                       preferred_element_type=jnp.float32)
        return o.reshape(B * Lq, H)

    def attn_loop(q, k, v, Lq, Lk, mask):
        q3 = q.astype(bf16).reshape(B, Lq, H)
        k3 = k.astype(bf16).reshape(B, Lk, H)
        v3 = v.astype(bf16).reshape(B, Lk, H)
        heads = []
        for h in range(nh):
            sl = slice(h * hd, (h + 1) * hd)
            s = jnp.einsum('bqd,bkd->bqk', q3[:, :, sl], k3[:, :, sl],
                           preferred_element_type=jnp.float32) * scale
            if mask is not None:
                s = s + mask
            p = _softmax(s).astype(bf16)
            heads.append(jnp.einsum('bqk,bkd->bqd', p, v3[:, :, sl],
                                    preferred_element_type=jnp.float32))
        return jnp.concatenate(heads, axis=-1).reshape(B * Lq, H)

    attention = attn_batched if head_batched else attn_loop

    x = x3.reshape(B * Kp, H)                              # fold batch into matmul rows
    memb = mem3.reshape(B * Sp, H).astype(bf16)            # cast once; reused by both layers

    for layer in range(NUM_LAYERS):
        base = layer * ROWS_PER_LAYER
        # 1) masked self-attention (fused QKV) + residual + LN1
        xb = x.astype(bf16)
        qkv = mm(xb, sa_w_in[layer]) + brow(base + 0, 3 * H)               # [B*Kp, 3H]
        o = attention(qkv[:, :H], qkv[:, H:2 * H], qkv[:, 2 * H:], Kp, Kp, smask)
        sa = mm(o.astype(bf16), sa_w_out[layer]) + brow(base + 1, H)
        x = _layernorm(x + sa, brow(base + 4, H), brow(base + 7, H))

        # 2) cross-attention over memory (fused KV) + residual + LN2
        xb = x.astype(bf16)
        cb = brow(base + 2, 3 * H)
        q = mm(xb, ca_w_in[layer][:, :H]) + cb[:, :H]                      # [B*Kp, H]
        kv = mm(memb, ca_w_in[layer][:, H:]) + cb[:, H:]                   # [B*Sp, 2H]
        o = attention(q, kv[:, :H], kv[:, H:], Kp, Sp, cmask)
        ca = mm(o.astype(bf16), ca_w_out[layer]) + brow(base + 3, H)
        x = _layernorm(x + ca, brow(base + 5, H), brow(base + 8, H))

        # 3) feed-forward (relu) + residual + LN3
        xb = x.astype(bf16)
        h1 = jnp.maximum(mm(xb, ff_w1[layer]) + brow(base + 10, 4 * H), 0.0)
        ff = mm(h1.astype(bf16), ff_w2[layer]) + brow(base + 11, H)
        x = _layernorm(x + ff, brow(base + 6, H), brow(base + 9, H))

    Op = proj_w.shape[1]                                                   # lane-dense (>=128)
    logits = mm(x.astype(bf16), proj_w[...]) + brow(NUM_LAYERS * ROWS_PER_LAYER, Op)
    out_ref[...] = _sigmoid(logits).astype(out_ref.dtype)                  # [B*Kp, Op] unmasked store


# ----------------------------------------------------------------------------- host-side glue

def positional_encoding(max_len, d_model):
    position = jnp.arange(max_len, dtype=jnp.float32)[:, None]
    div_term = jnp.exp(jnp.arange(0, d_model, 2, dtype=jnp.float32)
                       * (-math.log(10000.0) / d_model))
    pe = jnp.zeros((max_len, d_model), jnp.float32)
    pe = pe.at[:, 0::2].set(jnp.sin(position * div_term))
    pe = pe.at[:, 1::2].set(jnp.cos(position * div_term))
    return pe[:, None, :]                        # [max_len, 1, d_model]


def init_params(key, H, O, max_steps):
    """Deterministic synthetic parameters, shaped exactly like the torch module."""
    keys = iter(jax.random.split(key, 64))

    def nrm(shape, scale=0.1):
        return (jax.random.normal(next(keys), shape) * scale).astype(jnp.float32)

    layers = []
    for _ in range(NUM_LAYERS):
        layers.append(dict(
            sa_w_in=nrm((3 * H, H)), sa_b_in=nrm((3 * H,), 0.02),
            sa_w_out=nrm((H, H)),    sa_b_out=nrm((H,), 0.02),
            ca_w_in=nrm((3 * H, H)), ca_b_in=nrm((3 * H,), 0.02),
            ca_w_out=nrm((H, H)),    ca_b_out=nrm((H,), 0.02),
            ln_w=jnp.ones((3, H), jnp.float32), ln_b=jnp.zeros((3, H), jnp.float32),
            ff_w1=nrm((4 * H, H)), ff_b1=nrm((4 * H,), 0.02),
            ff_w2=nrm((H, 4 * H)), ff_b2=nrm((H,), 0.02),
        ))
    return dict(
        layers=layers,
        start_token=nrm((1, 1, H), 1.0),
        step_emb=nrm((max_steps + 1, H), 1.0),
        proj_w=nrm((O, H)), proj_b=nrm((O,), 0.02),
    )


def make_kernel_params(params):
    """Torch-layout params -> bf16 stacked weights + one lane-dense f32 bias/LN slab."""
    bf = jnp.bfloat16
    layers = params['layers']
    H = layers[0]['sa_w_out'].shape[0]
    O = params['proj_w'].shape[0]
    Op = _round_up(O, 128)
    slab_w = _round_up(max(4 * H, Op), 128)

    def stack(fn):
        return jnp.stack([fn(lp) for lp in layers], axis=0)

    def row(vec):
        v = jnp.asarray(vec, jnp.float32).reshape(-1)
        return jnp.pad(v, (0, slab_w - v.shape[0]))

    rows = []
    for lp in layers:   # 12 rows per layer (matches ROWS_PER_LAYER / in-kernel offsets)
        rows += [row(lp['sa_b_in']), row(lp['sa_b_out']),
                 row(lp['ca_b_in']), row(lp['ca_b_out']),
                 row(lp['ln_w'][0]), row(lp['ln_w'][1]), row(lp['ln_w'][2]),
                 row(lp['ln_b'][0]), row(lp['ln_b'][1]), row(lp['ln_b'][2]),
                 row(lp['ff_b1']), row(lp['ff_b2'])]
    rows.append(row(params['proj_b']))                     # row 12*L: output-proj bias
    slab = jnp.stack(rows, axis=0)                         # [12*L+1, slab_w] f32

    proj_w = jnp.pad(params['proj_w'].T, ((0, 0), (0, Op - O))).astype(bf)  # [H, Op] lane-dense

    return dict(
        sa_w_in=stack(lambda lp: lp['sa_w_in'].T).astype(bf),    # [L, H, 3H]
        sa_w_out=stack(lambda lp: lp['sa_w_out'].T).astype(bf),  # [L, H, H]
        ca_w_in=stack(lambda lp: lp['ca_w_in'].T).astype(bf),
        ca_w_out=stack(lambda lp: lp['ca_w_out'].T).astype(bf),
        ff_w1=stack(lambda lp: lp['ff_w1'].T).astype(bf),        # [L, H, 4H]
        ff_w2=stack(lambda lp: lp['ff_w2'].T).astype(bf),        # [L, 4H, H]
        proj_w=proj_w,                                           # [H, Op]
        slab=slab,                                               # [12*L+1, slab_w]
    )


def _full_spec(a):
    nd = a.ndim
    return pl.BlockSpec(a.shape, lambda i, _nd=nd: (0,) * _nd)


@functools.partial(jax.jit,
                   static_argnames=("k", "num_heads", "output_dim", "head_batched"))
def multi_step_decoder_forward(memory_sbh, start_token, step_emb, pe, kp,
                               *, k, num_heads, output_dim, head_batched=True):
    """Full forward (decoder-input build + Pallas decoder kernel), fused under one jit."""
    S, B, H = memory_sbh.shape

    # decoder input: [start_token, step_emb[0..k-2]] + positional encoding   (eval: no dropout)
    steps = jnp.broadcast_to(step_emb[:k - 1][:, None, :], (k - 1, B, H))
    dec_in = jnp.concatenate([jnp.broadcast_to(start_token, (1, B, H)), steps], axis=0)
    dec_in = dec_in + pe[:k]                               # [k, B, H]

    Kp = _round_up(k, 8)                                   # pad query rows to full sublanes
    Sp = _round_up(S, 8)                                   # pad memory rows to full sublanes
    tgt = jnp.transpose(dec_in, (1, 0, 2))                 # [B, k, H]
    tgt = jnp.pad(tgt, ((0, 0), (0, Kp - k), (0, 0)))      # [B, Kp, H]
    mem = jnp.transpose(memory_sbh, (1, 0, 2))             # [B, S, H]
    mem = jnp.pad(mem, ((0, 0), (0, Sp - S), (0, 0)))      # [B, Sp, H]

    weight_order = ('sa_w_in', 'sa_w_out', 'ca_w_in', 'ca_w_out',
                    'ff_w1', 'ff_w2', 'proj_w', 'slab')
    weights = [kp[name] for name in weight_order]
    Op = kp['proj_w'].shape[1]

    in_specs = [_full_spec(tgt), _full_spec(mem)] + [_full_spec(w) for w in weights]

    out2d = pl.pallas_call(
        functools.partial(_decoder_kernel, num_heads, S, head_batched),
        out_shape=jax.ShapeDtypeStruct((B * Kp, Op), jnp.float32),   # lane-dense output slab
        grid=(1,),
        in_specs=in_specs,
        out_specs=pl.BlockSpec((B * Kp, Op), lambda i: (0, 0)),
        compiler_params=pltpu.CompilerParams(dimension_semantics=("arbitrary",)),
    )(tgt, mem, *weights)

    out = out2d.reshape(B, Kp, Op)[:, :k, :output_dim]     # drop pad rows / pad lanes
    return out                                             # [B, k, O]


# ----------------------------------------------------------------------------- pure-JAX reference

def _ref_ln(x, w, b):
    mu = jnp.mean(x, axis=-1, keepdims=True)
    var = jnp.mean((x - mu) ** 2, axis=-1, keepdims=True)
    return (x - mu) * jax.lax.rsqrt(var + LN_EPS) * w + b


def _ref_mha(q, k_, v, w_in, b_in, w_o, b_o, nh, mask):
    L, B, H = q.shape
    S = k_.shape[0]
    hd = H // nh
    qq = q @ w_in[:H].T + b_in[:H]
    kk = k_ @ w_in[H:2 * H].T + b_in[H:2 * H]
    vv = v @ w_in[2 * H:].T + b_in[2 * H:]
    qq = qq.reshape(L, B, nh, hd).transpose(1, 2, 0, 3)
    kk = kk.reshape(S, B, nh, hd).transpose(1, 2, 0, 3)
    vv = vv.reshape(S, B, nh, hd).transpose(1, 2, 0, 3)
    s = jnp.einsum('bhld,bhsd->bhls', qq, kk) / math.sqrt(hd)
    if mask is not None:
        s = s + mask
    p = jnp.exp(s - jnp.max(s, axis=-1, keepdims=True))
    p = p / jnp.sum(p, axis=-1, keepdims=True)
    o = jnp.einsum('bhls,bhsd->bhld', p, vv).transpose(2, 0, 1, 3).reshape(L, B, H)
    return o @ w_o.T + b_o


def ref_forward(memory_sbh, k, params, nh, pe):
    S, B, H = memory_sbh.shape
    steps = jnp.broadcast_to(params['step_emb'][:k - 1][:, None, :], (k - 1, B, H))
    x = jnp.concatenate([jnp.broadcast_to(params['start_token'], (1, B, H)), steps], axis=0)
    x = x + pe[:k]
    idx = jnp.arange(k)
    mask = jnp.where(idx[None, :] <= idx[:, None], 0.0, NEG_INF).astype(jnp.float32)
    for lp in params['layers']:
        sa = _ref_mha(x, x, x, lp['sa_w_in'], lp['sa_b_in'], lp['sa_w_out'], lp['sa_b_out'], nh, mask)
        x = _ref_ln(x + sa, lp['ln_w'][0], lp['ln_b'][0])
        ca = _ref_mha(x, memory_sbh, memory_sbh,
                      lp['ca_w_in'], lp['ca_b_in'], lp['ca_w_out'], lp['ca_b_out'], nh, None)
        x = _ref_ln(x + ca, lp['ln_w'][1], lp['ln_b'][1])
        h1 = jnp.maximum(x @ lp['ff_w1'].T + lp['ff_b1'], 0.0)
        ff = h1 @ lp['ff_w2'].T + lp['ff_b2']
        x = _ref_ln(x + ff, lp['ln_w'][2], lp['ln_b'][2])
    return 1.0 / (1.0 + jnp.exp(-(x @ params['proj_w'].T + params['proj_b'])))   # [k, B, O]


# ----------------------------------------------------------------------------- main

if __name__ == "__main__":
    hidden_dim, output_dim, max_steps, num_heads = 32, 8, 10, 4
    B, seq_len, k = 2, 8, 6

    key = jax.random.PRNGKey(0)
    p_key, m_key = jax.random.split(key)
    params = init_params(p_key, hidden_dim, output_dim, max_steps)
    memory = jax.random.normal(m_key, (seq_len, B, hidden_dim), jnp.float32)  # [S, B, H] torch layout
    pe = positional_encoding(5000, hidden_dim)
    kparams = make_kernel_params(params)

    run = functools.partial(multi_step_decoder_forward,
                            memory, params['start_token'], params['step_emb'], pe, kparams,
                            k=k, num_heads=num_heads, output_dim=output_dim)
    try:
        out_bko = jax.block_until_ready(run(head_batched=True))
    except Exception:
        # Fallback: per-head unrolled attention if rank-4 batched dot_general /
        # lane-splitting reshapes are not supported by the installed Mosaic lowering.
        out_bko = jax.block_until_ready(run(head_batched=False))

    outputs = [out_bko[:, i, :] for i in range(k)]   # list of k tensors of shape [B, output_dim]

    # check against a pure-JAX reference of the torch forward (eval mode)
    ref_bko = jnp.transpose(ref_forward(memory, k, params, num_heads, pe), (1, 0, 2))
    assert all(o.shape == (B, output_dim) for o in outputs)
    assert bool(jnp.all(jnp.isfinite(out_bko)))
    assert bool(jnp.allclose(out_bko, ref_bko, atol=2e-2, rtol=2e-2)), \
        float(jnp.max(jnp.abs(out_bko - ref_bko)))

    print("KERNEL_OK")
</pallas_src>

<mosaic_0001>
module attributes {stable_mosaic.version = 11 : i64} {
  func.func @_decoder_kernel(%arg0: i32, %arg1: memref<2x8x32xf32, #tpu.memory_space<vmem>>, %arg2: memref<2x8x32xf32, #tpu.memory_space<vmem>>, %arg3: memref<2x32x96xbf16, #tpu.memory_space<vmem>>, %arg4: memref<2x32x32xbf16, #tpu.memory_space<vmem>>, %arg5: memref<2x32x96xbf16, #tpu.memory_space<vmem>>, %arg6: memref<2x32x32xbf16, #tpu.memory_space<vmem>>, %arg7: memref<2x32x128xbf16, #tpu.memory_space<vmem>>, %arg8: memref<2x128x32xbf16, #tpu.memory_space<vmem>>, %arg9: memref<32x128xbf16, #tpu.memory_space<vmem>>, %arg10: memref<25x128xf32, #tpu.memory_space<vmem>>, %arg11: memref<16x128xf32, #tpu.memory_space<vmem>>) attributes {dimension_semantics = [#tpu.dimension_semantics<arbitrary>], iteration_bounds = array<i64: 1>, scalar_prefetch = 0 : i64, scratch_operands = 0 : i64, tpu.core_type = #tpu.core_type<tc>, window_params = [{pipeline_mode = #tpu.pipeline_mode<synchronous>, transform_indices = @transform_0, window_bounds = array<i64: 2, 8, 32>}, {pipeline_mode = #tpu.pipeline_mode<synchronous>, transform_indices = @transform_1, window_bounds = array<i64: 2, 8, 32>}, {pipeline_mode = #tpu.pipeline_mode<synchronous>, transform_indices = @transform_2, window_bounds = array<i64: 2, 32, 96>}, {pipeline_mode = #tpu.pipeline_mode<synchronous>, transform_indices = @transform_3, window_bounds = array<i64: 2, 32, 32>}, {pipeline_mode = #tpu.pipeline_mode<synchronous>, transform_indices = @transform_4, window_bounds = array<i64: 2, 32, 96>}, {pipeline_mode = #tpu.pipeline_mode<synchronous>, transform_indices = @transform_5, window_bounds = array<i64: 2, 32, 32>}, {pipeline_mode = #tpu.pipeline_mode<synchronous>, transform_indices = @transform_6, window_bounds = array<i64: 2, 32, 128>}, {pipeline_mode = #tpu.pipeline_mode<synchronous>, transform_indices = @transform_7, window_bounds = array<i64: 2, 128, 32>}, {pipeline_mode = #tpu.pipeline_mode<synchronous>, transform_indices = @transform_8, window_bounds = array<i64: 32, 128>}, {pipeline_mode = #tpu.pipeline_mode<synchronous>, transform_indices = @transform_9, window_bounds = array<i64: 25, 128>}, {pipeline_mode = #tpu.pipeline_mode<synchronous>, transform_indices = @transform_10, window_bounds = array<i64: 16, 128>}]} {
    %c0 = arith.constant 0 : index
    %c0_0 = arith.constant 0 : index
    %c0_1 = arith.constant 0 : index
    %0 = vector.load %arg1[%c0, %c0_0, %c0_1] : memref<2x8x32xf32, #tpu.memory_space<vmem>>, vector<2x8x32xf32>
    %c0_2 = arith.constant 0 : index
    %c0_3 = arith.constant 0 : index
    %c0_4 = arith.constant 0 : index
    %1 = vector.load %arg2[%c0_2, %c0_3, %c0_4] : memref<2x8x32xf32, #tpu.memory_space<vmem>>, vector<2x8x32xf32>
    %2 = tpu.iota {dimensions = array<i32: 0>} : vector<8x8xi32>
    %3 = tpu.iota {dimensions = array<i32: 1>} : vector<8x8xi32>
    %4 = arith.cmpi sle, %3, %2 : vector<8x8xi32>
    %cst = arith.constant 0.000000e+00 : f32
    %cst_5 = arith.constant -1.000000e+30 : f32
    %5 = vector.broadcast %cst : f32 to vector<8x8xf32>
    %6 = vector.broadcast %cst_5 : f32 to vector<8x8xf32>
    %7 = arith.select %4, %5, %6 : vector<8x8xi1>, vector<8x8xf32>
    %8 = vector.shape_cast %0 : vector<2x8x32xf32> to vector<16x32xf32>
    %9 = vector.shape_cast %1 : vector<2x8x32xf32> to vector<16x32xf32>
    %10 = arith.truncf %9 : vector<16x32xf32> to vector<16x32xbf16>
    %11 = arith.truncf %8 : vector<16x32xf32> to vector<16x32xbf16>
    %c0_6 = arith.constant 0 : index
    %c0_7 = arith.constant 0 : index
    %c0_8 = arith.constant 0 : index
    %12 = vector.load %arg3[%c0_6, %c0_7, %c0_8] : memref<2x32x96xbf16, #tpu.memory_space<vmem>>, vector<1x32x96xbf16>
    %13 = vector.shape_cast %12 : vector<1x32x96xbf16> to vector<32x96xbf16>
    %cst_9 = arith.constant dense<0.000000e+00> : vector<16x96xf32>
    %14 = tpu.matmul %11, %13, %cst_9 {dimension_numbers = #tpu.dot_dimension_numbers<[1], [0], [0], [1], [0, 0, 1, 1], [], []>} : vector<16x32xbf16>, vector<32x96xbf16>, vector<16x96xf32> -> vector<16x96xf32>
    %c0_10 = arith.constant 0 : index
    %c0_11 = arith.constant 0 : index
    %15 = vector.load %arg10[%c0_10, %c0_11] : memref<25x128xf32, #tpu.memory_space<vmem>>, vector<1x96xf32>
    %16 = vector.broadcast %15 : vector<1x96xf32> to vector<16x96xf32>
    %17 = arith.addf %14, %16 : vector<16x96xf32>
    %18 = vector.extract_strided_slice %17 {offsets = [0, 0], sizes = [16, 32], strides = [1, 1]} : vector<16x96xf32> to vector<16x32xf32>
    %19 = vector.extract_strided_slice %17 {offsets = [0, 32], sizes = [16, 32], strides = [1, 1]} : vector<16x96xf32> to vector<16x32xf32>
    %20 = vector.extract_strided_slice %17 {offsets = [0, 64], sizes = [16, 32], strides = [1, 1]} : vector<16x96xf32> to vector<16x32xf32>
    %21 = arith.truncf %18 : vector<16x32xf32> to vector<16x32xbf16>
    %22 = vector.shape_cast %21 : vector<16x32xbf16> to vector<2x8x32xbf16>
    %23 = arith.truncf %19 : vector<16x32xf32> to vector<16x32xbf16>
    %24 = vector.shape_cast %23 : vector<16x32xbf16> to vector<2x8x32xbf16>
    %25 = arith.truncf %20 : vector<16x32xf32> to vector<16x32xbf16>
    %26 = vector.shape_cast %25 : vector<16x32xbf16> to vector<2x8x32xbf16>
    %27 = vector.extract_strided_slice %22 {offsets = [0, 0, 0], sizes = [2, 8, 8], strides = [1, 1, 1]} : vector<2x8x32xbf16> to vector<2x8x8xbf16>
    %28 = vector.extract_strided_slice %24 {offsets = [0, 0, 0], sizes = [2, 8, 8], strides = [1, 1, 1]} : vector<2x8x32xbf16> to vector<2x8x8xbf16>
    "tpu.trace_start"() <{level = 10 : i32, message = "bqd,bkd->bqk"}> : () -> ()
    %cst_12 = arith.constant dense<0.000000e+00> : vector<2x8x8xf32>
    %29 = tpu.matmul %27, %28, %cst_12 {dimension_numbers = #tpu.dot_dimension_numbers<[2], [2], [1], [1], [0, 0, 0, 1, 1, 1], [0], [0]>} : vector<2x8x8xbf16>, vector<2x8x8xbf16>, vector<2x8x8xf32> -> vector<2x8x8xf32>
    "tpu.trace_stop"() : () -> ()
    %cst_13 = arith.constant 0.353553385 : f32
    %30 = vector.broadcast %cst_13 : f32 to vector<2x8x8xf32>
    %31 = arith.mulf %29, %30 : vector<2x8x8xf32>
    %32 = vector.shape_cast %7 : vector<8x8xf32> to vector<1x8x8xf32>
    %33 = vector.broadcast %32 : vector<1x8x8xf32> to vector<2x8x8xf32>
    %34 = arith.addf %31, %33 : vector<2x8x8xf32>
    %cst_14 = arith.constant dense<0xFF800000> : vector<2x8xf32>
    %35 = vector.multi_reduction <maximumf>, %34, %cst_14 [2] : vector<2x8x8xf32> to vector<2x8xf32>
    %36 = vector.shape_cast %35 : vector<2x8xf32> to vector<2x8x1xf32>
    %37 = vector.broadcast %36 : vector<2x8x1xf32> to vector<2x8x8xf32>
    %38 = arith.subf %34, %37 : vector<2x8x8xf32>
    %39 = math.exp %38 : vector<2x8x8xf32>
    %cst_15 = arith.constant dense<0.000000e+00> : vector<2x8xf32>
    %40 = vector.multi_reduction <add>, %39, %cst_15 [2] : vector<2x8x8xf32> to vector<2x8xf32>
    %41 = vector.shape_cast %40 : vector<2x8xf32> to vector<2x8x1xf32>
    %42 = tpu.reciprocal %41 {approx = true} : vector<2x8x1xf32> -> vector<2x8x1xf32>
    %43 = vector.broadcast %42 : vector<2x8x1xf32> to vector<2x8x8xf32>
    %44 = arith.mulf %39, %43 : vector<2x8x8xf32>
    %45 = arith.truncf %44 : vector<2x8x8xf32> to vector<2x8x8xbf16>
    %46 = vector.extract_strided_slice %26 {offsets = [0, 0, 0], sizes = [2, 8, 8], strides = [1, 1, 1]} : vector<2x8x32xbf16> to vector<2x8x8xbf16>
    "tpu.trace_start"() <{level = 10 : i32, message = "bqk,bkd->bqd"}> : () -> ()
    %cst_16 = arith.constant dense<0.000000e+00> : vector<2x8x8xf32>
    %47 = tpu.matmul %45, %46, %cst_16 {dimension_numbers = #tpu.dot_dimension_numbers<[2], [1], [1], [2], [0, 0, 0, 1, 1, 2], [0], [0]>} : vector<2x8x8xbf16>, vector<2x8x8xbf16>, vector<2x8x8xf32> -> vector<2x8x8xf32>
    "tpu.trace_stop"() : () -> ()
    %48 = vector.extract_strided_slice %22 {offsets = [0, 0, 8], sizes = [2, 8, 8], strides = [1, 1, 1]} : vector<2x8x32xbf16> to vector<2x8x8xbf16>
    %49 = vector.extract_strided_slice %24 {offsets = [0, 0, 8], sizes = [2, 8, 8], strides = [1, 1, 1]} : vector<2x8x32xbf16> to vector<2x8x8xbf16>
    "tpu.trace_start"() <{level = 10 : i32, message = "bqd,bkd->bqk"}> : () -> ()
    %cst_17 = arith.constant dense<0.000000e+00> : vector<2x8x8xf32>
    %50 = tpu.matmul %48, %49, %cst_17 {dimension_numbers = #tpu.dot_dimension_numbers<[2], [2], [1], [1], [0, 0, 0, 1, 1, 1], [0], [0]>} : vector<2x8x8xbf16>, vector<2x8x8xbf16>, vector<2x8x8xf32> -> vector<2x8x8xf32>
    "tpu.trace_stop"() : () -> ()
    %cst_18 = arith.constant 0.353553385 : f32
    %51 = vector.broadcast %cst_18 : f32 to vector<2x8x8xf32>
    %52 = arith.mulf %50, %51 : vector<2x8x8xf32>
    %53 = vector.shape_cast %7 : vector<8x8xf32> to vector<1x8x8xf32>
    %54 = vector.broadcast %53 : vector<1x8x8xf32> to vector<2x8x8xf32>
    %55 = arith.addf %52, %54 : vector<2x8x8xf32>
    %cst_19 = arith.constant dense<0xFF800000> : vector<2x8xf32>
    %56 = vector.multi_reduction <maximumf>, %55, %cst_19 [2] : vector<2x8x8xf32> to vector<2x8xf32>
    %57 = vector.shape_cast %56 : vector<2x8xf32> to vector<2x8x1xf32>
    %58 = vector.broadcast %57 : vector<2x8x1xf32> to vector<2x8x8xf32>
    %59 = arith.subf %55, %58 : vector<2x8x8xf32>
    %60 = math.exp %59 : vector<2x8x8xf32>
    %cst_20 = arith.constant dense<0.000000e+00> : vector<2x8xf32>
    %61 = vector.multi_reduction <add>, %60, %cst_20 [2] : vector<2x8x8xf32> to vector<2x8xf32>
    %62 = vector.shape_cast %61 : vector<2x8xf32> to vector<2x8x1xf32>
    %63 = tpu.reciprocal %62 {approx = true} : vector<2x8x1xf32> -> vector<2x8x1xf32>
    %64 = vector.broadcast %63 : vector<2x8x1xf32> to vector<2x8x8xf32>
    %65 = arith.mulf %60, %64 : vector<2x8x8xf32>
    %66 = arith.truncf %65 : vector<2x8x8xf32> to vector<2x8x8xbf16>
    %67 = vector.extract_strided_slice %26 {offsets = [0, 0, 8], sizes = [2, 8, 8], strides = [1, 1, 1]} : vector<2x8x32xbf16> to vector<2x8x8xbf16>
    "tpu.trace_start"() <{level = 10 : i32, message = "bqk,bkd->bqd"}> : () -> ()
    %cst_21 = arith.constant dense<0.000000e+00> : vector<2x8x8xf32>
    %68 = tpu.matmul %66, %67, %cst_21 {dimension_numbers = #tpu.dot_dimension_numbers<[2], [1], [1], [2], [0, 0, 0, 1, 1, 2], [0], [0]>} : vector<2x8x8xbf16>, vector<2x8x8xbf16>, vector<2x8x8xf32> -> vector<2x8x8xf32>
    "tpu.trace_stop"() : () -> ()
    %69 = vector.extract_strided_slice %22 {offsets = [0, 0, 16], sizes = [2, 8, 8], strides = [1, 1, 1]} : vector<2x8x32xbf16> to vector<2x8x8xbf16>
    %70 = vector.extract_strided_slice %24 {offsets = [0, 0, 16], sizes = [2, 8, 8], strides = [1, 1, 1]} : vector<2x8x32xbf16> to vector<2x8x8xbf16>
    "tpu.trace_start"() <{level = 10 : i32, message = "bqd,bkd->bqk"}> : () -> ()
    %cst_22 = arith.constant dense<0.000000e+00> : vector<2x8x8xf32>
    %71 = tpu.matmul %69, %70, %cst_22 {dimension_numbers = #tpu.dot_dimension_numbers<[2], [2], [1], [1], [0, 0, 0, 1, 1, 1], [0], [0]>} : vector<2x8x8xbf16>, vector<2x8x8xbf16>, vector<2x8x8xf32> -> vector<2x8x8xf32>
    "tpu.trace_stop"() : () -> ()
    %cst_23 = arith.constant 0.353553385 : f32
    %72 = vector.broadcast %cst_23 : f32 to vector<2x8x8xf32>
    %73 = arith.mulf %71, %72 : vector<2x8x8xf32>
    %74 = vector.shape_cast %7 : vector<8x8xf32> to vector<1x8x8xf32>
    %75 = vector.broadcast %74 : vector<1x8x8xf32> to vector<2x8x8xf32>
    %76 = arith.addf %73, %75 : vector<2x8x8xf32>
    %cst_24 = arith.constant dense<0xFF800000> : vector<2x8xf32>
    %77 = vector.multi_reduction <maximumf>, %76, %cst_24 [2] : vector<2x8x8xf32> to vector<2x8xf32>
    %78 = vector.shape_cast %77 : vector<2x8xf32> to vector<2x8x1xf32>
    %79 = vector.broadcast %78 : vector<2x8x1xf32> to vector<2x8x8xf32>
    %80 = arith.subf %76, %79 : vector<2x8x8xf32>
    %81 = math.exp %80 : vector<2x8x8xf32>
    %cst_25 = arith.constant dense<0.000000e+00> : vector<2x8xf32>
    %82 = vector.multi_reduction <add>, %81, %cst_25 [2] : vector<2x8x8xf32> to vector<2x8xf32>
    %83 = vector.shape_cast %82 : vector<2x8xf32> to vector<2x8x1xf32>
    %84 = tpu.reciprocal %83 {approx = true} : vector<2x8x1xf32> -> vector<2x8x1xf32>
    %85 = vector.broadcast %84 : vector<2x8x1xf32> to vector<2x8x8xf32>
    %86 = arith.mulf %81, %85 : vector<2x8x8xf32>
    %87 = arith.truncf %86 : vector<2x8x8xf32> to vector<2x8x8xbf16>
    %88 = vector.extract_strided_slice %26 {offsets = [0, 0, 16], sizes = [2, 8, 8], strides = [1, 1, 1]} : vector<2x8x32xbf16> to vector<2x8x8xbf16>
    "tpu.trace_start"() <{level = 10 : i32, message = "bqk,bkd->bqd"}> : () -> ()
    %cst_26 = arith.constant dense<0.000000e+00> : vector<2x8x8xf32>
    %89 = tpu.matmul %87, %88, %cst_26 {dimension_numbers = #tpu.dot_dimension_numbers<[2], [1], [1], [2], [0, 0, 0, 1, 1, 2], [0], [0]>} : vector<2x8x8xbf16>, vector<2x8x8xbf16>, vector<2x8x8xf32> -> vector<2x8x8xf32>
    "tpu.trace_stop"() : () -> ()
    %90 = vector.extract_strided_slice %22 {offsets = [0, 0, 24], sizes = [2, 8, 8], strides = [1, 1, 1]} : vector<2x8x32xbf16> to vector<2x8x8xbf16>
    %91 = vector.extract_strided_slice %24 {offsets = [0, 0, 24], sizes = [2, 8, 8], strides = [1, 1, 1]} : vector<2x8x32xbf16> to vector<2x8x8xbf16>
    "tpu.trace_start"() <{level = 10 : i32, message = "bqd,bkd->bqk"}> : () -> ()
    %cst_27 = arith.constant dense<0.000000e+00> : vector<2x8x8xf32>
    %92 = tpu.matmul %90, %91, %cst_27 {dimension_numbers = #tpu.dot_dimension_numbers<[2], [2], [1], [1], [0, 0, 0, 1, 1, 1], [0], [0]>} : vector<2x8x8xbf16>, vector<2x8x8xbf16>, vector<2x8x8xf32> -> vector<2x8x8xf32>
    "tpu.trace_stop"() : () -> ()
    %cst_28 = arith.constant 0.353553385 : f32
    %93 = vector.broadcast %cst_28 : f32 to vector<2x8x8xf32>
    %94 = arith.mulf %92, %93 : vector<2x8x8xf32>
    %95 = vector.shape_cast %7 : vector<8x8xf32> to vector<1x8x8xf32>
    %96 = vector.broadcast %95 : vector<1x8x8xf32> to vector<2x8x8xf32>
    %97 = arith.addf %94, %96 : vector<2x8x8xf32>
    %cst_29 = arith.constant dense<0xFF800000> : vector<2x8xf32>
    %98 = vector.multi_reduction <maximumf>, %97, %cst_29 [2] : vector<2x8x8xf32> to vector<2x8xf32>
    %99 = vector.shape_cast %98 : vector<2x8xf32> to vector<2x8x1xf32>
    %100 = vector.broadcast %99 : vector<2x8x1xf32> to vector<2x8x8xf32>
    %101 = arith.subf %97, %100 : vector<2x8x8xf32>
    %102 = math.exp %101 : vector<2x8x8xf32>
    %cst_30 = arith.constant dense<0.000000e+00> : vector<2x8xf32>
    %103 = vector.multi_reduction <add>, %102, %cst_30 [2] : vector<2x8x8xf32> to vector<2x8xf32>
    %104 = vector.shape_cast %103 : vector<2x8xf32> to vector<2x8x1xf32>
    %105 = tpu.reciprocal %104 {approx = true} : vector<2x8x1xf32> -> vector<2x8x1xf32>
    %106 = vector.broadcast %105 : vector<2x8x1xf32> to vector<2x8x8xf32>
    %107 = arith.mulf %102, %106 : vector<2x8x8xf32>
    %108 = arith.truncf %107 : vector<2x8x8xf32> to vector<2x8x8xbf16>
    %109 = vector.extract_strided_slice %26 {offsets = [0, 0, 24], sizes = [2, 8, 8], strides = [1, 1, 1]} : vector<2x8x32xbf16> to vector<2x8x8xbf16>
    "tpu.trace_start"() <{level = 10 : i32, message = "bqk,bkd->bqd"}> : () -> ()
    %cst_31 = arith.constant dense<0.000000e+00> : vector<2x8x8xf32>
    %110 = tpu.matmul %108, %109, %cst_31 {dimension_numbers = #tpu.dot_dimension_numbers<[2], [1], [1], [2], [0, 0, 0, 1, 1, 2], [0], [0]>} : vector<2x8x8xbf16>, vector<2x8x8xbf16>, vector<2x8x8xf32> -> vector<2x8x8xf32>
    "tpu.trace_stop"() : () -> ()
    %111 = tpu.concatenate %47, %68, %89, %110 in 2 : vector<2x8x8xf32>, vector<2x8x8xf32>, vector<2x8x8xf32>, vector<2x8x8xf32> -> vector<2x8x32xf32>
    %112 = vector.shape_cast %111 : vector<2x8x32xf32> to vector<16x32xf32>
    %113 = arith.truncf %112 : vector<16x32xf32> to vector<16x32xbf16>
    %c0_32 = arith.constant 0 : index
    %c0_33 = arith.constant 0 : index
    %c0_34 = arith.constant 0 : index
    %114 = vector.load %arg4[%c0_32, %c0_33, %c0_34] : memref<2x32x32xbf16, #tpu.memory_space<vmem>>, vector<1x32x32xbf16>
    %115 = vector.shape_cast %114 : vector<1x32x32xbf16> to vector<32x32xbf16>
    %cst_35 = arith.constant dense<0.000000e+00> : vector<16x32xf32>
    %116 = tpu.matmul %113, %115, %cst_35 {dimension_numbers = #tpu.dot_dimension_numbers<[1], [0], [0], [1], [0, 0, 1, 1], [], []>} : vector<16x32xbf16>, vector<32x32xbf16>, vector<16x32xf32> -> vector<16x32xf32>
    %c1 = arith.constant 1 : index
    %c0_36 = arith.constant 0 : index
    %117 = vector.load %arg10[%c1, %c0_36] : memref<25x128xf32, #tpu.memory_space<vmem>>, vector<1x32xf32>
    %118 = vector.broadcast %117 : vector<1x32xf32> to vector<16x32xf32>
    %119 = arith.addf %116, %118 : vector<16x32xf32>
    %120 = arith.addf %8, %119 : vector<16x32xf32>
    %c4 = arith.constant 4 : index
    %c0_37 = arith.constant 0 : index
    %121 = vector.load %arg10[%c4, %c0_37] : memref<25x128xf32, #tpu.memory_space<vmem>>, vector<1x32xf32>
    %c7 = arith.constant 7 : index
    %c0_38 = arith.constant 0 : index
    %122 = vector.load %arg10[%c7, %c0_38] : memref<25x128xf32, #tpu.memory_space<vmem>>, vector<1x32xf32>
    %cst_39 = arith.constant dense<0.000000e+00> : vector<16xf32>
    %123 = vector.multi_reduction <add>, %120, %cst_39 [1] : vector<16x32xf32> to vector<16xf32>
    %124 = vector.shape_cast %123 : vector<16xf32> to vector<16x1xf32>
    %cst_40 = arith.constant 3.200000e+01 : f32
    %125 = vector.broadcast %cst_40 : f32 to vector<16x1xf32>
    %126 = arith.divf %124, %125 : vector<16x1xf32>
    %127 = vector.broadcast %126 : vector<16x1xf32> to vector<16x32xf32>
    %128 = arith.subf %120, %127 : vector<16x32xf32>
    %129 = arith.mulf %128, %128 : vector<16x32xf32>
    %cst_41 = arith.constant dense<0.000000e+00> : vector<16xf32>
    %130 = vector.multi_reduction <add>, %129, %cst_41 [1] : vector<16x32xf32> to vector<16xf32>
    %131 = vector.shape_cast %130 : vector<16xf32> to vector<16x1xf32>
    %cst_42 = arith.constant 3.200000e+01 : f32
    %132 = vector.broadcast %cst_42 : f32 to vector<16x1xf32>
    %133 = arith.divf %131, %132 : vector<16x1xf32>
    %cst_43 = arith.constant 9.99999974E-6 : f32
    %134 = vector.broadcast %cst_43 : f32 to vector<16x1xf32>
    %135 = arith.addf %133, %134 : vector<16x1xf32>
    %136 = math.rsqrt %135 : vector<16x1xf32>
    %137 = vector.broadcast %136 : vector<16x1xf32> to vector<16x32xf32>
    %138 = arith.mulf %128, %137 : vector<16x32xf32>
    %139 = vector.broadcast %121 : vector<1x32xf32> to vector<16x32xf32>
    %140 = arith.mulf %138, %139 : vector<16x32xf32>
    %141 = vector.broadcast %122 : vector<1x32xf32> to vector<16x32xf32>
    %142 = arith.addf %140, %141 : vector<16x32xf32>
    %143 = arith.truncf %142 : vector<16x32xf32> to vector<16x32xbf16>
    %c2 = arith.constant 2 : index
    %c0_44 = arith.constant 0 : index
    %144 = vector.load %arg10[%c2, %c0_44] : memref<25x128xf32, #tpu.memory_space<vmem>>, vector<1x96xf32>
    %c0_45 = arith.constant 0 : index
    %c0_46 = arith.constant 0 : index
    %c0_47 = arith.constant 0 : index
    %145 = vector.load %arg5[%c0_45, %c0_46, %c0_47] : memref<2x32x96xbf16, #tpu.memory_space<vmem>>, vector<1x32x96xbf16>
    %146 = vector.shape_cast %145 : vector<1x32x96xbf16> to vector<32x96xbf16>
    %147 = vector.extract_strided_slice %146 {offsets = [0, 0], sizes = [32, 32], strides = [1, 1]} : vector<32x96xbf16> to vector<32x32xbf16>
    %cst_48 = arith.constant dense<0.000000e+00> : vector<16x32xf32>
    %148 = tpu.matmul %143, %147, %cst_48 {dimension_numbers = #tpu.dot_dimension_numbers<[1], [0], [0], [1], [0, 0, 1, 1], [], []>} : vector<16x32xbf16>, vector<32x32xbf16>, vector<16x32xf32> -> vector<16x32xf32>
    %149 = vector.extract_strided_slice %144 {offsets = [0, 0], sizes = [1, 32], strides = [1, 1]} : vector<1x96xf32> to vector<1x32xf32>
    %150 = vector.broadcast %149 : vector<1x32xf32> to vector<16x32xf32>
    %151 = arith.addf %148, %150 : vector<16x32xf32>
    %c0_49 = arith.constant 0 : index
    %c0_50 = arith.constant 0 : index
    %c0_51 = arith.constant 0 : index
    %152 = vector.load %arg5[%c0_49, %c0_50, %c0_51] : memref<2x32x96xbf16, #tpu.memory_space<vmem>>, vector<1x32x96xbf16>
    %153 = vector.shape_cast %152 : vector<1x32x96xbf16> to vector<32x96xbf16>
    %154 = vector.extract_strided_slice %153 {offsets = [0, 32], sizes = [32, 64], strides = [1, 1]} : vector<32x96xbf16> to vector<32x64xbf16>
    %cst_52 = arith.constant dense<0.000000e+00> : vector<16x64xf32>
    %155 = tpu.matmul %10, %154, %cst_52 {dimension_numbers = #tpu.dot_dimension_numbers<[1], [0], [0], [1], [0, 0, 1, 1], [], []>} : vector<16x32xbf16>, vector<32x64xbf16>, vector<16x64xf32> -> vector<16x64xf32>
    %156 = vector.extract_strided_slice %144 {offsets = [0, 32], sizes = [1, 64], strides = [1, 1]} : vector<1x96xf32> to vector<1x64xf32>
    %157 = vector.broadcast %156 : vector<1x64xf32> to vector<16x64xf32>
    %158 = arith.addf %155, %157 : vector<16x64xf32>
    %159 = vector.extract_strided_slice %158 {offsets = [0, 0], sizes = [16, 32], strides = [1, 1]} : vector<16x64xf32> to vector<16x32xf32>
    %160 = vector.extract_strided_slice %158 {offsets = [0, 32], sizes = [16, 32], strides = [1, 1]} : vector<16x64xf32> to vector<16x32xf32>
    %161 = arith.truncf %151 : vector<16x32xf32> to vector<16x32xbf16>
    %162 = vector.shape_cast %161 : vector<16x32xbf16> to vector<2x8x32xbf16>
    %163 = arith.truncf %159 : vector<16x32xf32> to vector<16x32xbf16>
    %164 = vector.shape_cast %163 : vector<16x32xbf16> to vector<2x8x32xbf16>
    %165 = arith.truncf %160 : vector<16x32xf32> to vector<16x32xbf16>
    %166 = vector.shape_cast %165 : vector<16x32xbf16> to vector<2x8x32xbf16>
    %167 = vector.extract_strided_slice %162 {offsets = [0, 0, 0], sizes = [2, 8, 8], strides = [1, 1, 1]} : vector<2x8x32xbf16> to vector<2x8x8xbf16>
    %168 = vector.extract_strided_slice %164 {offsets = [0, 0, 0], sizes = [2, 8, 8], strides = [1, 1, 1]} : vector<2x8x32xbf16> to vector<2x8x8xbf16>
    "tpu.trace_start"() <{level = 10 : i32, message = "bqd,bkd->bqk"}> : () -> ()
    %cst_53 = arith.constant dense<0.000000e+00> : vector<2x8x8xf32>
    %169 = tpu.matmul %167, %168, %cst_53 {dimension_numbers = #tpu.dot_dimension_numbers<[2], [2], [1], [1], [0, 0, 0, 1, 1, 1], [0], [0]>} : vector<2x8x8xbf16>, vector<2x8x8xbf16>, vector<2x8x8xf32> -> vector<2x8x8xf32>
    "tpu.trace_stop"() : () -> ()
    %cst_54 = arith.constant 0.353553385 : f32
    %170 = vector.broadcast %cst_54 : f32 to vector<2x8x8xf32>
    %171 = arith.mulf %169, %170 : vector<2x8x8xf32>
    %cst_55 = arith.constant dense<0xFF800000> : vector<2x8xf32>
    %172 = vector.multi_reduction <maximumf>, %171, %cst_55 [2] : vector<2x8x8xf32> to vector<2x8xf32>
    %173 = vector.shape_cast %172 : vector<2x8xf32> to vector<2x8x1xf32>
    %174 = vector.broadcast %173 : vector<2x8x1xf32> to vector<2x8x8xf32>
    %175 = arith.subf %171, %174 : vector<2x8x8xf32>
    %176 = math.exp %175 : vector<2x8x8xf32>
    %cst_56 = arith.constant dense<0.000000e+00> : vector<2x8xf32>
    %177 = vector.multi_reduction <add>, %176, %cst_56 [2] : vector<2x8x8xf32> to vector<2x8xf32>
    %178 = vector.shape_cast %177 : vector<2x8xf32> to vector<2x8x1xf32>
    %179 = tpu.reciprocal %178 {approx = true} : vector<2x8x1xf32> -> vector<2x8x1xf32>
    %180 = vector.broadcast %179 : vector<2x8x1xf32> to vector<2x8x8xf32>
    %181 = arith.mulf %176, %180 : vector<2x8x8xf32>
    %182 = arith.truncf %181 : vector<2x8x8xf32> to vector<2x8x8xbf16>
    %183 = vector.extract_strided_slice %166 {offsets = [0, 0, 0], sizes = [2, 8, 8], strides = [1, 1, 1]} : vector<2x8x32xbf16> to vector<2x8x8xbf16>
    "tpu.trace_start"() <{level = 10 : i32, message = "bqk,bkd->bqd"}> : () -> ()
    %cst_57 = arith.constant dense<0.000000e+00> : vector<2x8x8xf32>
    %184 = tpu.matmul %182, %183, %cst_57 {dimension_numbers = #tpu.dot_dimension_numbers<[2], [1], [1], [2], [0, 0, 0, 1, 1, 2], [0], [0]>} : vector<2x8x8xbf16>, vector<2x8x8xbf16>, vector<2x8x8xf32> -> vector<2x8x8xf32>
    "tpu.trace_stop"() : () -> ()
    %185 = vector.extract_strided_slice %162 {offsets = [0, 0, 8], sizes = [2, 8, 8], strides = [1, 1, 1]} : vector<2x8x32xbf16> to vector<2x8x8xbf16>
    %186 = vector.extract_strided_slice %164 {offsets = [0, 0, 8], sizes = [2, 8, 8], strides = [1, 1, 1]} : vector<2x8x32xbf16> to vector<2x8x8xbf16>
    "tpu.trace_start"() <{level = 10 : i32, message = "bqd,bkd->bqk"}> : () -> ()
    %cst_58 = arith.constant dense<0.000000e+00> : vector<2x8x8xf32>
    %187 = tpu.matmul %185, %186, %cst_58 {dimension_numbers = #tpu.dot_dimension_numbers<[2], [2], [1], [1], [0, 0, 0, 1, 1, 1], [0], [0]>} : vector<2x8x8xbf16>, vector<2x8x8xbf16>, vector<2x8x8xf32> -> vector<2x8x8xf32>
    "tpu.trace_stop"() : () -> ()
    %cst_59 = arith.constant 0.353553385 : f32
    %188 = vector.broadcast %cst_59 : f32 to vector<2x8x8xf32>
    %189 = arith.mulf %187, %188 : vector<2x8x8xf32>
    %cst_60 = arith.constant dense<0xFF800000> : vector<2x8xf32>
    %190 = vector.multi_reduction <maximumf>, %189, %cst_60 [2] : vector<2x8x8xf32> to vector<2x8xf32>
    %191 = vector.shape_cast %190 : vector<2x8xf32> to vector<2x8x1xf32>
    %192 = vector.broadcast %191 : vector<2x8x1xf32> to vector<2x8x8xf32>
    %193 = arith.subf %189, %192 : vector<2x8x8xf32>
    %194 = math.exp %193 : vector<2x8x8xf32>
    %cst_61 = arith.constant dense<0.000000e+00> : vector<2x8xf32>
    %195 = vector.multi_reduction <add>, %194, %cst_61 [2] : vector<2x8x8xf32> to vector<2x8xf32>
    %196 = vector.shape_cast %195 : vector<2x8xf32> to vector<2x8x1xf32>
    %197 = tpu.reciprocal %196 {approx = true} : vector<2x8x1xf32> -> vector<2x8x1xf32>
    %198 = vector.broadcast %197 : vector<2x8x1xf32> to vector<2x8x8xf32>
    %199 = arith.mulf %194, %198 : vector<2x8x8xf32>
    %200 = arith.truncf %199 : vector<2x8x8xf32> to vector<2x8x8xbf16>
    %201 = vector.extract_strided_slice %166 {offsets = [0, 0, 8], sizes = [2, 8, 8], strides = [1, 1, 1]} : vector<2x8x32xbf16> to vector<2x8x8xbf16>
    "tpu.trace_start"() <{level = 10 : i32, message = "bqk,bkd->bqd"}> : () -> ()
    %cst_62 = arith.constant dense<0.000000e+00> : vector<2x8x8xf32>
    %202 = tpu.matmul %200, %201, %cst_62 {dimension_numbers = #tpu.dot_dimension_numbers<[2], [1], [1], [2], [0, 0, 0, 1, 1, 2], [0], [0]>} : vector<2x8x8xbf16>, vector<2x8x8xbf16>, vector<2x8x8xf32> -> vector<2x8x8xf32>
    "tpu.trace_stop"() : () -> ()
    %203 = vector.extract_strided_slice %162 {offsets = [0, 0, 16], sizes = [2, 8, 8], strides = [1, 1, 1]} : vector<2x8x32xbf16> to vector<2x8x8xbf16>
    %204 = vector.extract_strided_slice %164 {offsets = [0, 0, 16], sizes = [2, 8, 8], strides = [1, 1, 1]} : vector<2x8x32xbf16> to vector<2x8x8xbf16>
    "tpu.trace_start"() <{level = 10 : i32, message = "bqd,bkd->bqk"}> : () -> ()
    %cst_63 = arith.constant dense<0.000000e+00> : vector<2x8x8xf32>
    %205 = tpu.matmul %203, %204, %cst_63 {dimension_numbers = #tpu.dot_dimension_numbers<[2], [2], [1], [1], [0, 0, 0, 1, 1, 1], [0], [0]>} : vector<2x8x8xbf16>, vector<2x8x8xbf16>, vector<2x8x8xf32> -> vector<2x8x8xf32>
    "tpu.trace_stop"() : () -> ()
    %cst_64 = arith.constant 0.353553385 : f32
    %206 = vector.broadcast %cst_64 : f32 to vector<2x8x8xf32>
    %207 = arith.mulf %205, %206 : vector<2x8x8xf32>
    %cst_65 = arith.constant dense<0xFF800000> : vector<2x8xf32>
    %208 = vector.multi_reduction <maximumf>, %207, %cst_65 [2] : vector<2x8x8xf32> to vector<2x8xf32>
    %209 = vector.shape_cast %208 : vector<2x8xf32> to vector<2x8x1xf32>
    %210 = vector.broadcast %209 : vector<2x8x1xf32> to vector<2x8x8xf32>
    %211 = arith.subf %207, %210 : vector<2x8x8xf32>
    %212 = math.exp %211 : vector<2x8x8xf32>
    %cst_66 = arith.constant dense<0.000000e+00> : vector<2x8xf32>
    %213 = vector.multi_reduction <add>, %212, %cst_66 [2] : vector<2x8x8xf32> to vector<2x8xf32>
    %214 = vector.shape_cast %213 : vector<2x8xf32> to vector<2x8x1xf32>
    %215 = tpu.reciprocal %214 {approx = true} : vector<2x8x1xf32> -> vector<2x8x1xf32>
    %216 = vector.broadcast %215 : vector<2x8x1xf32> to vector<2x8x8xf32>
    %217 = arith.mulf %212, %216 : vector<2x8x8xf32>
    %218 = arith.truncf %217 : vector<2x8x8xf32> to vector<2x8x8xbf16>
    %219 = vector.extract_strided_slice %166 {offsets = [0, 0, 16], sizes = [2, 8, 8], strides = [1, 1, 1]} : vector<2x8x32xbf16> to vector<2x8x8xbf16>
    "tpu.trace_start"() <{level = 10 : i32, message = "bqk,bkd->bqd"}> : () -> ()
    %cst_67 = arith.constant dense<0.000000e+00> : vector<2x8x8xf32>
    %220 = tpu.matmul %218, %219, %cst_67 {dimension_numbers = #tpu.dot_dimension_numbers<[2], [1], [1], [2], [0, 0, 0, 1, 1, 2], [0], [0]>} : vector<2x8x8xbf16>, vector<2x8x8xbf16>, vector<2x8x8xf32> -> vector<2x8x8xf32>
    "tpu.trace_stop"() : () -> ()
    %221 = vector.extract_strided_slice %162 {offsets = [0, 0, 24], sizes = [2, 8, 8], strides = [1, 1, 1]} : vector<2x8x32xbf16> to vector<2x8x8xbf16>
    %222 = vector.extract_strided_slice %164 {offsets = [0, 0, 24], sizes = [2, 8, 8], strides = [1, 1, 1]} : vector<2x8x32xbf16> to vector<2x8x8xbf16>
    "tpu.trace_start"() <{level = 10 : i32, message = "bqd,bkd->bqk"}> : () -> ()
    %cst_68 = arith.constant dense<0.000000e+00> : vector<2x8x8xf32>
    %223 = tpu.matmul %221, %222, %cst_68 {dimension_numbers = #tpu.dot_dimension_numbers<[2], [2], [1], [1], [0, 0, 0, 1, 1, 1], [0], [0]>} : vector<2x8x8xbf16>, vector<2x8x8xbf16>, vector<2x8x8xf32> -> vector<2x8x8xf32>
    "tpu.trace_stop"() : () -> ()
    %cst_69 = arith.constant 0.353553385 : f32
    %224 = vector.broadcast %cst_69 : f32 to vector<2x8x8xf32>
    %225 = arith.mulf %223, %224 : vector<2x8x8xf32>
    %cst_70 = arith.constant dense<0xFF800000> : vector<2x8xf32>
    %226 = vector.multi_reduction <maximumf>, %225, %cst_70 [2] : vector<2x8x8xf32> to vector<2x8xf32>
    %227 = vector.shape_cast %226 : vector<2x8xf32> to vector<2x8x1xf32>
    %228 = vector.broadcast %227 : vector<2x8x1xf32> to vector<2x8x8xf32>
    %229 = arith.subf %225, %228 : vector<2x8x8xf32>
    %230 = math.exp %229 : vector<2x8x8xf32>
    %cst_71 = arith.constant dense<0.000000e+00> : vector<2x8xf32>
    %231 = vector.multi_reduction <add>, %230, %cst_71 [2] : vector<2x8x8xf32> to vector<2x8xf32>
    %232 = vector.shape_cast %231 : vector<2x8xf32> to vector<2x8x1xf32>
    %233 = tpu.reciprocal %232 {approx = true} : vector<2x8x1xf32> -> vector<2x8x1xf32>
    %234 = vector.broadcast %233 : vector<2x8x1xf32> to vector<2x8x8xf32>
    %235 = arith.mulf %230, %234 : vector<2x8x8xf32>
    %236 = arith.truncf %235 : vector<2x8x8xf32> to vector<2x8x8xbf16>
    %237 = vector.extract_strided_slice %166 {offsets = [0, 0, 24], sizes = [2, 8, 8], strides = [1, 1, 1]} : vector<2x8x32xbf16> to vector<2x8x8xbf16>
    "tpu.trace_start"() <{level = 10 : i32, message = "bqk,bkd->bqd"}> : () -> ()
    %cst_72 = arith.constant dense<0.000000e+00> : vector<2x8x8xf32>
    %238 = tpu.matmul %236, %237, %cst_72 {dimension_numbers = #tpu.dot_dimension_numbers<[2], [1], [1], [2], [0, 0, 0, 1, 1, 2], [0], [0]>} : vector<2x8x8xbf16>, vector<2x8x8xbf16>, vector<2x8x8xf32> -> vector<2x8x8xf32>
    "tpu.trace_stop"() : () -> ()
    %239 = tpu.concatenate %184, %202, %220, %238 in 2 : vector<2x8x8xf32>, vector<2x8x8xf32>, vector<2x8x8xf32>, vector<2x8x8xf32> -> vector<2x8x32xf32>
    %240 = vector.shape_cast %239 : vector<2x8x32xf32> to vector<16x32xf32>
    %241 = arith.truncf %240 : vector<16x32xf32> to vector<16x32xbf16>
    %c0_73 = arith.constant 0 : index
    %c0_74 = arith.constant 0 : index
    %c0_75 = arith.constant 0 : index
    %242 = vector.load %arg6[%c0_73, %c0_74, %c0_75] : memref<2x32x32xbf16, #tpu.memory_space<vmem>>, vector<1x32x32xbf16>
    %243 = vector.shape_cast %242 : vector<1x32x32xbf16> to vector<32x32xbf16>
    %cst_76 = arith.constant dense<0.000000e+00> : vector<16x32xf32>
    %244 = tpu.matmul %241, %243, %cst_76 {dimension_numbers = #tpu.dot_dimension_numbers<[1], [0], [0], [1], [0, 0, 1, 1], [], []>} : vector<16x32xbf16>, vector<32x32xbf16>, vector<16x32xf32> -> vector<16x32xf32>
    %c3 = arith.constant 3 : index
    %c0_77 = arith.constant 0 : index
    %245 = vector.load %arg10[%c3, %c0_77] : memref<25x128xf32, #tpu.memory_space<vmem>>, vector<1x32xf32>
    %246 = vector.broadcast %245 : vector<1x32xf32> to vector<16x32xf32>
    %247 = arith.addf %244, %246 : vector<16x32xf32>
    %248 = arith.addf %142, %247 : vector<16x32xf32>
    %c5 = arith.constant 5 : index
    %c0_78 = arith.constant 0 : index
    %249 = vector.load %arg10[%c5, %c0_78] : memref<25x128xf32, #tpu.memory_space<vmem>>, vector<1x32xf32>
    %c8 = arith.constant 8 : index
    %c0_79 = arith.constant 0 : index
    %250 = vector.load %arg10[%c8, %c0_79] : memref<25x128xf32, #tpu.memory_space<vmem>>, vector<1x32xf32>
    %cst_80 = arith.constant dense<0.000000e+00> : vector<16xf32>
    %251 = vector.multi_reduction <add>, %248, %cst_80 [1] : vector<16x32xf32> to vector<16xf32>
    %252 = vector.shape_cast %251 : vector<16xf32> to vector<16x1xf32>
    %cst_81 = arith.constant 3.200000e+01 : f32
    %253 = vector.broadcast %cst_81 : f32 to vector<16x1xf32>
    %254 = arith.divf %252, %253 : vector<16x1xf32>
    %255 = vector.broadcast %254 : vector<16x1xf32> to vector<16x32xf32>
    %256 = arith.subf %248, %255 : vector<16x32xf32>
    %257 = arith.mulf %256, %256 : vector<16x32xf32>
    %cst_82 = arith.constant dense<0.000000e+00> : vector<16xf32>
    %258 = vector.multi_reduction <add>, %257, %cst_82 [1] : vector<16x32xf32> to vector<16xf32>
    %259 = vector.shape_cast %258 : vector<16xf32> to vector<16x1xf32>
    %cst_83 = arith.constant 3.200000e+01 : f32
    %260 = vector.broadcast %cst_83 : f32 to vector<16x1xf32>
    %261 = arith.divf %259, %260 : vector<16x1xf32>
    %cst_84 = arith.constant 9.99999974E-6 : f32
    %262 = vector.broadcast %cst_84 : f32 to vector<16x1xf32>
    %263 = arith.addf %261, %262 : vector<16x1xf32>
    %264 = math.rsqrt %263 : vector<16x1xf32>
    %265 = vector.broadcast %264 : vector<16x1xf32> to vector<16x32xf32>
    %266 = arith.mulf %256, %265 : vector<16x32xf32>
    %267 = vector.broadcast %249 : vector<1x32xf32> to vector<16x32xf32>
    %268 = arith.mulf %266, %267 : vector<16x32xf32>
    %269 = vector.broadcast %250 : vector<1x32xf32> to vector<16x32xf32>
    %270 = arith.addf %268, %269 : vector<16x32xf32>
    %271 = arith.truncf %270 : vector<16x32xf32> to vector<16x32xbf16>
    %c0_85 = arith.constant 0 : index
    %c0_86 = arith.constant 0 : index
    %c0_87 = arith.constant 0 : index
    %272 = vector.load %arg7[%c0_85, %c0_86, %c0_87] : memref<2x32x128xbf16, #tpu.memory_space<vmem>>, vector<1x32x128xbf16>
    %273 = vector.shape_cast %272 : vector<1x32x128xbf16> to vector<32x128xbf16>
    %cst_88 = arith.constant dense<0.000000e+00> : vector<16x128xf32>
    %274 = tpu.matmul %271, %273, %cst_88 {dimension_numbers = #tpu.dot_dimension_numbers<[1], [0], [0], [1], [0, 0, 1, 1], [], []>} : vector<16x32xbf16>, vector<32x128xbf16>, vector<16x128xf32> -> vector<16x128xf32>
    %c10 = arith.constant 10 : index
    %c0_89 = arith.constant 0 : index
    %275 = vector.load %arg10[%c10, %c0_89] : memref<25x128xf32, #tpu.memory_space<vmem>>, vector<1x128xf32>
    %276 = vector.broadcast %275 : vector<1x128xf32> to vector<16x128xf32>
    %277 = arith.addf %274, %276 : vector<16x128xf32>
    %cst_90 = arith.constant 0.000000e+00 : f32
    %278 = vector.broadcast %cst_90 : f32 to vector<16x128xf32>
    %279 = arith.maximumf %277, %278 : vector<16x128xf32>
    %280 = arith.truncf %279 : vector<16x128xf32> to vector<16x128xbf16>
    %c0_91 = arith.constant 0 : index
    %c0_92 = arith.constant 0 : index
    %c0_93 = arith.constant 0 : index
    %281 = vector.load %arg8[%c0_91, %c0_92, %c0_93] : memref<2x128x32xbf16, #tpu.memory_space<vmem>>, vector<1x128x32xbf16>
    %282 = vector.shape_cast %281 : vector<1x128x32xbf16> to vector<128x32xbf16>
    %cst_94 = arith.constant dense<0.000000e+00> : vector<16x32xf32>
    %283 = tpu.matmul %280, %282, %cst_94 {dimension_numbers = #tpu.dot_dimension_numbers<[1], [0], [0], [1], [0, 0, 1, 1], [], []>} : vector<16x128xbf16>, vector<128x32xbf16>, vector<16x32xf32> -> vector<16x32xf32>
    %c11 = arith.constant 11 : index
    %c0_95 = arith.constant 0 : index
    %284 = vector.load %arg10[%c11, %c0_95] : memref<25x128xf32, #tpu.memory_space<vmem>>, vector<1x32xf32>
    %285 = vector.broadcast %284 : vector<1x32xf32> to vector<16x32xf32>
    %286 = arith.addf %283, %285 : vector<16x32xf32>
    %287 = arith.addf %270, %286 : vector<16x32xf32>
    %c6 = arith.constant 6 : index
    %c0_96 = arith.constant 0 : index
    %288 = vector.load %arg10[%c6, %c0_96] : memref<25x128xf32, #tpu.memory_space<vmem>>, vector<1x32xf32>
    %c9 = arith.constant 9 : index
    %c0_97 = arith.constant 0 : index
    %289 = vector.load %arg10[%c9, %c0_97] : memref<25x128xf32, #tpu.memory_space<vmem>>, vector<1x32xf32>
    %cst_98 = arith.constant dense<0.000000e+00> : vector<16xf32>
    %290 = vector.multi_reduction <add>, %287, %cst_98 [1] : vector<16x32xf32> to vector<16xf32>
    %291 = vector.shape_cast %290 : vector<16xf32> to vector<16x1xf32>
    %cst_99 = arith.constant 3.200000e+01 : f32
    %292 = vector.broadcast %cst_99 : f32 to vector<16x1xf32>
    %293 = arith.divf %291, %292 : vector<16x1xf32>
    %294 = vector.broadcast %293 : vector<16x1xf32> to vector<16x32xf32>
    %295 = arith.subf %287, %294 : vector<16x32xf32>
    %296 = arith.mulf %295, %295 : vector<16x32xf32>
    %cst_100 = arith.constant dense<0.000000e+00> : vector<16xf32>
    %297 = vector.multi_reduction <add>, %296, %cst_100 [1] : vector<16x32xf32> to vector<16xf32>
    %298 = vector.shape_cast %297 : vector<16xf32> to vector<16x1xf32>
    %cst_101 = arith.constant 3.200000e+01 : f32
    %299 = vector.broadcast %cst_101 : f32 to vector<16x1xf32>
    %300 = arith.divf %298, %299 : vector<16x1xf32>
    %cst_102 = arith.constant 9.99999974E-6 : f32
    %301 = vector.broadcast %cst_102 : f32 to vector<16x1xf32>
    %302 = arith.addf %300, %301 : vector<16x1xf32>
    %303 = math.rsqrt %302 : vector<16x1xf32>
    %304 = vector.broadcast %303 : vector<16x1xf32> to vector<16x32xf32>
    %305 = arith.mulf %295, %304 : vector<16x32xf32>
    %306 = vector.broadcast %288 : vector<1x32xf32> to vector<16x32xf32>
    %307 = arith.mulf %305, %306 : vector<16x32xf32>
    %308 = vector.broadcast %289 : vector<1x32xf32> to vector<16x32xf32>
    %309 = arith.addf %307, %308 : vector<16x32xf32>
    %310 = arith.truncf %309 : vector<16x32xf32> to vector<16x32xbf16>
    %c1_103 = arith.constant 1 : index
    %c0_104 = arith.constant 0 : index
    %c0_105 = arith.constant 0 : index
    %311 = vector.load %arg3[%c1_103, %c0_104, %c0_105] : memref<2x32x96xbf16, #tpu.memory_space<vmem>>, vector<1x32x96xbf16>
    %312 = vector.shape_cast %311 : vector<1x32x96xbf16> to vector<32x96xbf16>
    %cst_106 = arith.constant dense<0.000000e+00> : vector<16x96xf32>
    %313 = tpu.matmul %310, %312, %cst_106 {dimension_numbers = #tpu.dot_dimension_numbers<[1], [0], [0], [1], [0, 0, 1, 1], [], []>} : vector<16x32xbf16>, vector<32x96xbf16>, vector<16x96xf32> -> vector<16x96xf32>
    %c12 = arith.constant 12 : index
    %c0_107 = arith.constant 0 : index
    %314 = vector.load %arg10[%c12, %c0_107] : memref<25x128xf32, #tpu.memory_space<vmem>>, vector<1x96xf32>
    %315 = vector.broadcast %314 : vector<1x96xf32> to vector<16x96xf32>
    %316 = arith.addf %313, %315 : vector<16x96xf32>
    %317 = vector.extract_strided_slice %316 {offsets = [0, 0], sizes = [16, 32], strides = [1, 1]} : vector<16x96xf32> to vector<16x32xf32>
    %318 = vector.extract_strided_slice %316 {offsets = [0, 32], sizes = [16, 32], strides = [1, 1]} : vector<16x96xf32> to vector<16x32xf32>
    %319 = vector.extract_strided_slice %316 {offsets = [0, 64], sizes = [16, 32], strides = [1, 1]} : vector<16x96xf32> to vector<16x32xf32>
    %320 = arith.truncf %317 : vector<16x32xf32> to vector<16x32xbf16>
    %321 = vector.shape_cast %320 : vector<16x32xbf16> to vector<2x8x32xbf16>
    %322 = arith.truncf %318 : vector<16x32xf32> to vector<16x32xbf16>
    %323 = vector.shape_cast %322 : vector<16x32xbf16> to vector<2x8x32xbf16>
    %324 = arith.truncf %319 : vector<16x32xf32> to vector<16x32xbf16>
    %325 = vector.shape_cast %324 : vector<16x32xbf16> to vector<2x8x32xbf16>
    %326 = vector.extract_strided_slice %321 {offsets = [0, 0, 0], sizes = [2, 8, 8], strides = [1, 1, 1]} : vector<2x8x32xbf16> to vector<2x8x8xbf16>
    %327 = vector.extract_strided_slice %323 {offsets = [0, 0, 0], sizes = [2, 8, 8], strides = [1, 1, 1]} : vector<2x8x32xbf16> to vector<2x8x8xbf16>
    "tpu.trace_start"() <{level = 10 : i32, message = "bqd,bkd->bqk"}> : () -> ()
    %cst_108 = arith.constant dense<0.000000e+00> : vector<2x8x8xf32>
    %328 = tpu.matmul %326, %327, %cst_108 {dimension_numbers = #tpu.dot_dimension_numbers<[2], [2], [1], [1], [0, 0, 0, 1, 1, 1], [0], [0]>} : vector<2x8x8xbf16>, vector<2x8x8xbf16>, vector<2x8x8xf32> -> vector<2x8x8xf32>
    "tpu.trace_stop"() : () -> ()
    %cst_109 = arith.constant 0.353553385 : f32
    %329 = vector.broadcast %cst_109 : f32 to vector<2x8x8xf32>
    %330 = arith.mulf %328, %329 : vector<2x8x8xf32>
    %331 = vector.shape_cast %7 : vector<8x8xf32> to vector<1x8x8xf32>
    %332 = vector.broadcast %331 : vector<1x8x8xf32> to vector<2x8x8xf32>
    %333 = arith.addf %330, %332 : vector<2x8x8xf32>
    %cst_110 = arith.constant dense<0xFF800000> : vector<2x8xf32>
    %334 = vector.multi_reduction <maximumf>, %333, %cst_110 [2] : vector<2x8x8xf32> to vector<2x8xf32>
    %335 = vector.shape_cast %334 : vector<2x8xf32> to vector<2x8x1xf32>
    %336 = vector.broadcast %335 : vector<2x8x1xf32> to vector<2x8x8xf32>
    %337 = arith.subf %333, %336 : vector<2x8x8xf32>
    %338 = math.exp %337 : vector<2x8x8xf32>
    %cst_111 = arith.constant dense<0.000000e+00> : vector<2x8xf32>
    %339 = vector.multi_reduction <add>, %338, %cst_111 [2] : vector<2x8x8xf32> to vector<2x8xf32>
    %340 = vector.shape_cast %339 : vector<2x8xf32> to vector<2x8x1xf32>
    %341 = tpu.reciprocal %340 {approx = true} : vector<2x8x1xf32> -> vector<2x8x1xf32>
    %342 = vector.broadcast %341 : vector<2x8x1xf32> to vector<2x8x8xf32>
    %343 = arith.mulf %338, %342 : vector<2x8x8xf32>
    %344 = arith.truncf %343 : vector<2x8x8xf32> to vector<2x8x8xbf16>
    %345 = vector.extract_strided_slice %325 {offsets = [0, 0, 0], sizes = [2, 8, 8], strides = [1, 1, 1]} : vector<2x8x32xbf16> to vector<2x8x8xbf16>
    "tpu.trace_start"() <{level = 10 : i32, message = "bqk,bkd->bqd"}> : () -> ()
    %cst_112 = arith.constant dense<0.000000e+00> : vector<2x8x8xf32>
    %346 = tpu.matmul %344, %345, %cst_112 {dimension_numbers = #tpu.dot_dimension_numbers<[2], [1], [1], [2], [0, 0, 0, 1, 1, 2], [0], [0]>} : vector<2x8x8xbf16>, vector<2x8x8xbf16>, vector<2x8x8xf32> -> vector<2x8x8xf32>
    "tpu.trace_stop"() : () -> ()
    %347 = vector.extract_strided_slice %321 {offsets = [0, 0, 8], sizes = [2, 8, 8], strides = [1, 1, 1]} : vector<2x8x32xbf16> to vector<2x8x8xbf16>
    %348 = vector.extract_strided_slice %323 {offsets = [0, 0, 8], sizes = [2, 8, 8], strides = [1, 1, 1]} : vector<2x8x32xbf16> to vector<2x8x8xbf16>
    "tpu.trace_start"() <{level = 10 : i32, message = "bqd,bkd->bqk"}> : () -> ()
    %cst_113 = arith.constant dense<0.000000e+00> : vector<2x8x8xf32>
    %349 = tpu.matmul %347, %348, %cst_113 {dimension_numbers = #tpu.dot_dimension_numbers<[2], [2], [1], [1], [0, 0, 0, 1, 1, 1], [0], [0]>} : vector<2x8x8xbf16>, vector<2x8x8xbf16>, vector<2x8x8xf32> -> vector<2x8x8xf32>
    "tpu.trace_stop"() : () -> ()
    %cst_114 = arith.constant 0.353553385 : f32
    %350 = vector.broadcast %cst_114 : f32 to vector<2x8x8xf32>
    %351 = arith.mulf %349, %350 : vector<2x8x8xf32>
    %352 = vector.shape_cast %7 : vector<8x8xf32> to vector<1x8x8xf32>
    %353 = vector.broadcast %352 : vector<1x8x8xf32> to vector<2x8x8xf32>
    %354 = arith.addf %351, %353 : vector<2x8x8xf32>
    %cst_115 = arith.constant dense<0xFF800000> : vector<2x8xf32>
    %355 = vector.multi_reduction <maximumf>, %354, %cst_115 [2] : vector<2x8x8xf32> to vector<2x8xf32>
    %356 = vector.shape_cast %355 : vector<2x8xf32> to vector<2x8x1xf32>
    %357 = vector.broadcast %356 : vector<2x8x1xf32> to vector<2x8x8xf32>
    %358 = arith.subf %354, %357 : vector<2x8x8xf32>
    %359 = math.exp %358 : vector<2x8x8xf32>
    %cst_116 = arith.constant dense<0.000000e+00> : vector<2x8xf32>
    %360 = vector.multi_reduction <add>, %359, %cst_116 [2] : vector<2x8x8xf32> to vector<2x8xf32>
    %361 = vector.shape_cast %360 : vector<2x8xf32> to vector<2x8x1xf32>
    %362 = tpu.reciprocal %361 {approx = true} : vector<2x8x1xf32> -> vector<2x8x1xf32>
    %363 = vector.broadcast %362 : vector<2x8x1xf32> to vector<2x8x8xf32>
    %364 = arith.mulf %359, %363 : vector<2x8x8xf32>
    %365 = arith.truncf %364 : vector<2x8x8xf32> to vector<2x8x8xbf16>
    %366 = vector.extract_strided_slice %325 {offsets = [0, 0, 8], sizes = [2, 8, 8], strides = [1, 1, 1]} : vector<2x8x32xbf16> to vector<2x8x8xbf16>
    "tpu.trace_start"() <{level = 10 : i32, message = "bqk,bkd->bqd"}> : () -> ()
    %cst_117 = arith.constant dense<0.000000e+00> : vector<2x8x8xf32>
    %367 = tpu.matmul %365, %366, %cst_117 {dimension_numbers = #tpu.dot_dimension_numbers<[2], [1], [1], [2], [0, 0, 0, 1, 1, 2], [0], [0]>} : vector<2x8x8xbf16>, vector<2x8x8xbf16>, vector<2x8x8xf32> -> vector<2x8x8xf32>
    "tpu.trace_stop"() : () -> ()
    %368 = vector.extract_strided_slice %321 {offsets = [0, 0, 16], sizes = [2, 8, 8], strides = [1, 1, 1]} : vector<2x8x32xbf16> to vector<2x8x8xbf16>
    %369 = vector.extract_strided_slice %323 {offsets = [0, 0, 16], sizes = [2, 8, 8], strides = [1, 1, 1]} : vector<2x8x32xbf16> to vector<2x8x8xbf16>
    "tpu.trace_start"() <{level = 10 : i32, message = "bqd,bkd->bqk"}> : () -> ()
    %cst_118 = arith.constant dense<0.000000e+00> : vector<2x8x8xf32>
    %370 = tpu.matmul %368, %369, %cst_118 {dimension_numbers = #tpu.dot_dimension_numbers<[2], [2], [1], [1], [0, 0, 0, 1, 1, 1], [0], [0]>} : vector<2x8x8xbf16>, vector<2x8x8xbf16>, vector<2x8x8xf32> -> vector<2x8x8xf32>
    "tpu.trace_stop"() : () -> ()
    %cst_119 = arith.constant 0.353553385 : f32
    %371 = vector.broadcast %cst_119 : f32 to vector<2x8x8xf32>
    %372 = arith.mulf %370, %371 : vector<2x8x8xf32>
    %373 = vector.shape_cast %7 : vector<8x8xf32> to vector<1x8x8xf32>
    %374 = vector.broadcast %373 : vector<1x8x8xf32> to vector<2x8x8xf32>
    %375 = arith.addf %372, %374 : vector<2x8x8xf32>
    %cst_120 = arith.constant dense<0xFF800000> : vector<2x8xf32>
    %376 = vector.multi_reduction <maximumf>, %375, %cst_120 [2] : vector<2x8x8xf32> to vector<2x8xf32>
    %377 = vector.shape_cast %376 : vector<2x8xf32> to vector<2x8x1xf32>
    %378 = vector.broadcast %377 : vector<2x8x1xf32> to vector<2x8x8xf32>
    %379 = arith.subf %375, %378 : vector<2x8x8xf32>
    %380 = math.exp %379 : vector<2x8x8xf32>
    %cst_121 = arith.constant dense<0.000000e+00> : vector<2x8xf32>
    %381 = vector.multi_reduction <add>, %380, %cst_121 [2] : vector<2x8x8xf32> to vector<2x8xf32>
    %382 = vector.shape_cast %381 : vector<2x8xf32> to vector<2x8x1xf32>
    %383 = tpu.reciprocal %382 {approx = true} : vector<2x8x1xf32> -> vector<2x8x1xf32>
    %384 = vector.broadcast %383 : vector<2x8x1xf32> to vector<2x8x8xf32>
    %385 = arith.mulf %380, %384 : vector<2x8x8xf32>
    %386 = arith.truncf %385 : vector<2x8x8xf32> to vector<2x8x8xbf16>
    %387 = vector.extract_strided_slice %325 {offsets = [0, 0, 16], sizes = [2, 8, 8], strides = [1, 1, 1]} : vector<2x8x32xbf16> to vector<2x8x8xbf16>
    "tpu.trace_start"() <{level = 10 : i32, message = "bqk,bkd->bqd"}> : () -> ()
    %cst_122 = arith.constant dense<0.000000e+00> : vector<2x8x8xf32>
    %388 = tpu.matmul %386, %387, %cst_122 {dimension_numbers = #tpu.dot_dimension_numbers<[2], [1], [1], [2], [0, 0, 0, 1, 1, 2], [0], [0]>} : vector<2x8x8xbf16>, vector<2x8x8xbf16>, vector<2x8x8xf32> -> vector<2x8x8xf32>
    "tpu.trace_stop"() : () -> ()
    %389 = vector.extract_strided_slice %321 {offsets = [0, 0, 24], sizes = [2, 8, 8], strides = [1, 1, 1]} : vector<2x8x32xbf16> to vector<2x8x8xbf16>
    %390 = vector.extract_strided_slice %323 {offsets = [0, 0, 24], sizes = [2, 8, 8], strides = [1, 1, 1]} : vector<2x8x32xbf16> to vector<2x8x8xbf16>
    "tpu.trace_start"() <{level = 10 : i32, message = "bqd,bkd->bqk"}> : () -> ()
    %cst_123 = arith.constant dense<0.000000e+00> : vector<2x8x8xf32>
    %391 = tpu.matmul %389, %390, %cst_123 {dimension_numbers = #tpu.dot_dimension_numbers<[2], [2], [1], [1], [0, 0, 0, 1, 1, 1], [0], [0]>} : vector<2x8x8xbf16>, vector<2x8x8xbf16>, vector<2x8x8xf32> -> vector<2x8x8xf32>
    "tpu.trace_stop"() : () -> ()
    %cst_124 = arith.constant 0.353553385 : f32
    %392 = vector.broadcast %cst_124 : f32 to vector<2x8x8xf32>
    %393 = arith.mulf %391, %392 : vector<2x8x8xf32>
    %394 = vector.shape_cast %7 : vector<8x8xf32> to vector<1x8x8xf32>
    %395 = vector.broadcast %394 : vector<1x8x8xf32> to vector<2x8x8xf32>
    %396 = arith.addf %393, %395 : vector<2x8x8xf32>
    %cst_125 = arith.constant dense<0xFF800000> : vector<2x8xf32>
    %397 = vector.multi_reduction <maximumf>, %396, %cst_125 [2] : vector<2x8x8xf32> to vector<2x8xf32>
    %398 = vector.shape_cast %397 : vector<2x8xf32> to vector<2x8x1xf32>
    %399 = vector.broadcast %398 : vector<2x8x1xf32> to vector<2x8x8xf32>
    %400 = arith.subf %396, %399 : vector<2x8x8xf32>
    %401 = math.exp %400 : vector<2x8x8xf32>
    %cst_126 = arith.constant dense<0.000000e+00> : vector<2x8xf32>
    %402 = vector.multi_reduction <add>, %401, %cst_126 [2] : vector<2x8x8xf32> to vector<2x8xf32>
    %403 = vector.shape_cast %402 : vector<2x8xf32> to vector<2x8x1xf32>
    %404 = tpu.reciprocal %403 {approx = true} : vector<2x8x1xf32> -> vector<2x8x1xf32>
    %405 = vector.broadcast %404 : vector<2x8x1xf32> to vector<2x8x8xf32>
    %406 = arith.mulf %401, %405 : vector<2x8x8xf32>
    %407 = arith.truncf %406 : vector<2x8x8xf32> to vector<2x8x8xbf16>
    %408 = vector.extract_strided_slice %325 {offsets = [0, 0, 24], sizes = [2, 8, 8], strides = [1, 1, 1]} : vector<2x8x32xbf16> to vector<2x8x8xbf16>
    "tpu.trace_start"() <{level = 10 : i32, message = "bqk,bkd->bqd"}> : () -> ()
    %cst_127 = arith.constant dense<0.000000e+00> : vector<2x8x8xf32>
    %409 = tpu.matmul %407, %408, %cst_127 {dimension_numbers = #tpu.dot_dimension_numbers<[2], [1], [1], [2], [0, 0, 0, 1, 1, 2], [0], [0]>} : vector<2x8x8xbf16>, vector<2x8x8xbf16>, vector<2x8x8xf32> -> vector<2x8x8xf32>
    "tpu.trace_stop"() : () -> ()
    %410 = tpu.concatenate %346, %367, %388, %409 in 2 : vector<2x8x8xf32>, vector<2x8x8xf32>, vector<2x8x8xf32>, vector<2x8x8xf32> -> vector<2x8x32xf32>
    %411 = vector.shape_cast %410 : vector<2x8x32xf32> to vector<16x32xf32>
    %412 = arith.truncf %411 : vector<16x32xf32> to vector<16x32xbf16>
    %c1_128 = arith.constant 1 : index
    %c0_129 = arith.constant 0 : index
    %c0_130 = arith.constant 0 : index
    %413 = vector.load %arg4[%c1_128, %c0_129, %c0_130] : memref<2x32x32xbf16, #tpu.memory_space<vmem>>, vector<1x32x32xbf16>
    %414 = vector.shape_cast %413 : vector<1x32x32xbf16> to vector<32x32xbf16>
    %cst_131 = arith.constant dense<0.000000e+00> : vector<16x32xf32>
    %415 = tpu.matmul %412, %414, %cst_131 {dimension_numbers = #tpu.dot_dimension_numbers<[1], [0], [0], [1], [0, 0, 1, 1], [], []>} : vector<16x32xbf16>, vector<32x32xbf16>, vector<16x32xf32> -> vector<16x32xf32>
    %c13 = arith.constant 13 : index
    %c0_132 = arith.constant 0 : index
    %416 = vector.load %arg10[%c13, %c0_132] : memref<25x128xf32, #tpu.memory_space<vmem>>, vector<1x32xf32>
    %417 = vector.broadcast %416 : vector<1x32xf32> to vector<16x32xf32>
    %418 = arith.addf %415, %417 : vector<16x32xf32>
    %419 = arith.addf %309, %418 : vector<16x32xf32>
    %c16 = arith.constant 16 : index
    %c0_133 = arith.constant 0 : index
    %420 = vector.load %arg10[%c16, %c0_133] : memref<25x128xf32, #tpu.memory_space<vmem>>, vector<1x32xf32>
    %c19 = arith.constant 19 : index
    %c0_134 = arith.constant 0 : index
    %421 = vector.load %arg10[%c19, %c0_134] : memref<25x128xf32, #tpu.memory_space<vmem>>, vector<1x32xf32>
    %cst_135 = arith.constant dense<0.000000e+00> : vector<16xf32>
    %422 = vector.multi_reduction <add>, %419, %cst_135 [1] : vector<16x32xf32> to vector<16xf32>
    %423 = vector.shape_cast %422 : vector<16xf32> to vector<16x1xf32>
    %cst_136 = arith.constant 3.200000e+01 : f32
    %424 = vector.broadcast %cst_136 : f32 to vector<16x1xf32>
    %425 = arith.divf %423, %424 : vector<16x1xf32>
    %426 = vector.broadcast %425 : vector<16x1xf32> to vector<16x32xf32>
    %427 = arith.subf %419, %426 : vector<16x32xf32>
    %428 = arith.mulf %427, %427 : vector<16x32xf32>
    %cst_137 = arith.constant dense<0.000000e+00> : vector<16xf32>
    %429 = vector.multi_reduction <add>, %428, %cst_137 [1] : vector<16x32xf32> to vector<16xf32>
    %430 = vector.shape_cast %429 : vector<16xf32> to vector<16x1xf32>
    %cst_138 = arith.constant 3.200000e+01 : f32
    %431 = vector.broadcast %cst_138 : f32 to vector<16x1xf32>
    %432 = arith.divf %430, %431 : vector<16x1xf32>
    %cst_139 = arith.constant 9.99999974E-6 : f32
    %433 = vector.broadcast %cst_139 : f32 to vector<16x1xf32>
    %434 = arith.addf %432, %433 : vector<16x1xf32>
    %435 = math.rsqrt %434 : vector<16x1xf32>
    %436 = vector.broadcast %435 : vector<16x1xf32> to vector<16x32xf32>
    %437 = arith.mulf %427, %436 : vector<16x32xf32>
    %438 = vector.broadcast %420 : vector<1x32xf32> to vector<16x32xf32>
    %439 = arith.mulf %437, %438 : vector<16x32xf32>
    %440 = vector.broadcast %421 : vector<1x32xf32> to vector<16x32xf32>
    %441 = arith.addf %439, %440 : vector<16x32xf32>
    %442 = arith.truncf %441 : vector<16x32xf32> to vector<16x32xbf16>
    %c14 = arith.constant 14 : index
    %c0_140 = arith.constant 0 : index
    %443 = vector.load %arg10[%c14, %c0_140] : memref<25x128xf32, #tpu.memory_space<vmem>>, vector<1x96xf32>
    %c1_141 = arith.constant 1 : index
    %c0_142 = arith.constant 0 : index
    %c0_143 = arith.constant 0 : index
    %444 = vector.load %arg5[%c1_141, %c0_142, %c0_143] : memref<2x32x96xbf16, #tpu.memory_space<vmem>>, vector<1x32x96xbf16>
    %445 = vector.shape_cast %444 : vector<1x32x96xbf16> to vector<32x96xbf16>
    %446 = vector.extract_strided_slice %445 {offsets = [0, 0], sizes = [32, 32], strides = [1, 1]} : vector<32x96xbf16> to vector<32x32xbf16>
    %cst_144 = arith.constant dense<0.000000e+00> : vector<16x32xf32>
    %447 = tpu.matmul %442, %446, %cst_144 {dimension_numbers = #tpu.dot_dimension_numbers<[1], [0], [0], [1], [0, 0, 1, 1], [], []>} : vector<16x32xbf16>, vector<32x32xbf16>, vector<16x32xf32> -> vector<16x32xf32>
    %448 = vector.extract_strided_slice %443 {offsets = [0, 0], sizes = [1, 32], strides = [1, 1]} : vector<1x96xf32> to vector<1x32xf32>
    %449 = vector.broadcast %448 : vector<1x32xf32> to vector<16x32xf32>
    %450 = arith.addf %447, %449 : vector<16x32xf32>
    %c1_145 = arith.constant 1 : index
    %c0_146 = arith.constant 0 : index
    %c0_147 = arith.constant 0 : index
    %451 = vector.load %arg5[%c1_145, %c0_146, %c0_147] : memref<2x32x96xbf16, #tpu.memory_space<vmem>>, vector<1x32x96xbf16>
    %452 = vector.shape_cast %451 : vector<1x32x96xbf16> to vector<32x96xbf16>
    %453 = vector.extract_strided_slice %452 {offsets = [0, 32], sizes = [32, 64], strides = [1, 1]} : vector<32x96xbf16> to vector<32x64xbf16>
    %cst_148 = arith.constant dense<0.000000e+00> : vector<16x64xf32>
    %454 = tpu.matmul %10, %453, %cst_148 {dimension_numbers = #tpu.dot_dimension_numbers<[1], [0], [0], [1], [0, 0, 1, 1], [], []>} : vector<16x32xbf16>, vector<32x64xbf16>, vector<16x64xf32> -> vector<16x64xf32>
    %455 = vector.extract_strided_slice %443 {offsets = [0, 32], sizes = [1, 64], strides = [1, 1]} : vector<1x96xf32> to vector<1x64xf32>
    %456 = vector.broadcast %455 : vector<1x64xf32> to vector<16x64xf32>
    %457 = arith.addf %454, %456 : vector<16x64xf32>
    %458 = vector.extract_strided_slice %457 {offsets = [0, 0], sizes = [16, 32], strides = [1, 1]} : vector<16x64xf32> to vector<16x32xf32>
    %459 = vector.extract_strided_slice %457 {offsets = [0, 32], sizes = [16, 32], strides = [1, 1]} : vector<16x64xf32> to vector<16x32xf32>
    %460 = arith.truncf %450 : vector<16x32xf32> to vector<16x32xbf16>
    %461 = vector.shape_cast %460 : vector<16x32xbf16> to vector<2x8x32xbf16>
    %462 = arith.truncf %458 : vector<16x32xf32> to vector<16x32xbf16>
    %463 = vector.shape_cast %462 : vector<16x32xbf16> to vector<2x8x32xbf16>
    %464 = arith.truncf %459 : vector<16x32xf32> to vector<16x32xbf16>
    %465 = vector.shape_cast %464 : vector<16x32xbf16> to vector<2x8x32xbf16>
    %466 = vector.extract_strided_slice %461 {offsets = [0, 0, 0], sizes = [2, 8, 8], strides = [1, 1, 1]} : vector<2x8x32xbf16> to vector<2x8x8xbf16>
    %467 = vector.extract_strided_slice %463 {offsets = [0, 0, 0], sizes = [2, 8, 8], strides = [1, 1, 1]} : vector<2x8x32xbf16> to vector<2x8x8xbf16>
    "tpu.trace_start"() <{level = 10 : i32, message = "bqd,bkd->bqk"}> : () -> ()
    %cst_149 = arith.constant dense<0.000000e+00> : vector<2x8x8xf32>
    %468 = tpu.matmul %466, %467, %cst_149 {dimension_numbers = #tpu.dot_dimension_numbers<[2], [2], [1], [1], [0, 0, 0, 1, 1, 1], [0], [0]>} : vector<2x8x8xbf16>, vector<2x8x8xbf16>, vector<2x8x8xf32> -> vector<2x8x8xf32>
    "tpu.trace_stop"() : () -> ()
    %cst_150 = arith.constant 0.353553385 : f32
    %469 = vector.broadcast %cst_150 : f32 to vector<2x8x8xf32>
    %470 = arith.mulf %468, %469 : vector<2x8x8xf32>
    %cst_151 = arith.constant dense<0xFF800000> : vector<2x8xf32>
    %471 = vector.multi_reduction <maximumf>, %470, %cst_151 [2] : vector<2x8x8xf32> to vector<2x8xf32>
    %472 = vector.shape_cast %471 : vector<2x8xf32> to vector<2x8x1xf32>
    %473 = vector.broadcast %472 : vector<2x8x1xf32> to vector<2x8x8xf32>
    %474 = arith.subf %470, %473 : vector<2x8x8xf32>
    %475 = math.exp %474 : vector<2x8x8xf32>
    %cst_152 = arith.constant dense<0.000000e+00> : vector<2x8xf32>
    %476 = vector.multi_reduction <add>, %475, %cst_152 [2] : vector<2x8x8xf32> to vector<2x8xf32>
    %477 = vector.shape_cast %476 : vector<2x8xf32> to vector<2x8x1xf32>
    %478 = tpu.reciprocal %477 {approx = true} : vector<2x8x1xf32> -> vector<2x8x1xf32>
    %479 = vector.broadcast %478 : vector<2x8x1xf32> to vector<2x8x8xf32>
    %480 = arith.mulf %475, %479 : vector<2x8x8xf32>
    %481 = arith.truncf %480 : vector<2x8x8xf32> to vector<2x8x8xbf16>
    %482 = vector.extract_strided_slice %465 {offsets = [0, 0, 0], sizes = [2, 8, 8], strides = [1, 1, 1]} : vector<2x8x32xbf16> to vector<2x8x8xbf16>
    "tpu.trace_start"() <{level = 10 : i32, message = "bqk,bkd->bqd"}> : () -> ()
    %cst_153 = arith.constant dense<0.000000e+00> : vector<2x8x8xf32>
    %483 = tpu.matmul %481, %482, %cst_153 {dimension_numbers = #tpu.dot_dimension_numbers<[2], [1], [1], [2], [0, 0, 0, 1, 1, 2], [0], [0]>} : vector<2x8x8xbf16>, vector<2x8x8xbf16>, vector<2x8x8xf32> -> vector<2x8x8xf32>
    "tpu.trace_stop"() : () -> ()
    %484 = vector.extract_strided_slice %461 {offsets = [0, 0, 8], sizes = [2, 8, 8], strides = [1, 1, 1]} : vector<2x8x32xbf16> to vector<2x8x8xbf16>
    %485 = vector.extract_strided_slice %463 {offsets = [0, 0, 8], sizes = [2, 8, 8], strides = [1, 1, 1]} : vector<2x8x32xbf16> to vector<2x8x8xbf16>
    "tpu.trace_start"() <{level = 10 : i32, message = "bqd,bkd->bqk"}> : () -> ()
    %cst_154 = arith.constant dense<0.000000e+00> : vector<2x8x8xf32>
    %486 = tpu.matmul %484, %485, %cst_154 {dimension_numbers = #tpu.dot_dimension_numbers<[2], [2], [1], [1], [0, 0, 0, 1, 1, 1], [0], [0]>} : vector<2x8x8xbf16>, vector<2x8x8xbf16>, vector<2x8x8xf32> -> vector<2x8x8xf32>
    "tpu.trace_stop"() : () -> ()
    %cst_155 = arith.constant 0.353553385 : f32
    %487 = vector.broadcast %cst_155 : f32 to vector<2x8x8xf32>
    %488 = arith.mulf %486, %487 : vector<2x8x8xf32>
    %cst_156 = arith.constant dense<0xFF800000> : vector<2x8xf32>
    %489 = vector.multi_reduction <maximumf>, %488, %cst_156 [2] : vector<2x8x8xf32> to vector<2x8xf32>
    %490 = vector.shape_cast %489 : vector<2x8xf32> to vector<2x8x1xf32>
    %491 = vector.broadcast %490 : vector<2x8x1xf32> to vector<2x8x8xf32>
    %492 = arith.subf %488, %491 : vector<2x8x8xf32>
    %493 = math.exp %492 : vector<2x8x8xf32>
    %cst_157 = arith.constant dense<0.000000e+00> : vector<2x8xf32>
    %494 = vector.multi_reduction <add>, %493, %cst_157 [2] : vector<2x8x8xf32> to vector<2x8xf32>
    %495 = vector.shape_cast %494 : vector<2x8xf32> to vector<2x8x1xf32>
    %496 = tpu.reciprocal %495 {approx = true} : vector<2x8x1xf32> -> vector<2x8x1xf32>
    %497 = vector.broadcast %496 : vector<2x8x1xf32> to vector<2x8x8xf32>
    %498 = arith.mulf %493, %497 : vector<2x8x8xf32>
    %499 = arith.truncf %498 : vector<2x8x8xf32> to vector<2x8x8xbf16>
    %500 = vector.extract_strided_slice %465 {offsets = [0, 0, 8], sizes = [2, 8, 8], strides = [1, 1, 1]} : vector<2x8x32xbf16> to vector<2x8x8xbf16>
    "tpu.trace_start"() <{level = 10 : i32, message = "bqk,bkd->bqd"}> : () -> ()
    %cst_158 = arith.constant dense<0.000000e+00> : vector<2x8x8xf32>
    %501 = tpu.matmul %499, %500, %cst_158 {dimension_numbers = #tpu.dot_dimension_numbers<[2], [1], [1], [2], [0, 0, 0, 1, 1, 2], [0], [0]>} : vector<2x8x8xbf16>, vector<2x8x8xbf16>, vector<2x8x8xf32> -> vector<2x8x8xf32>
    "tpu.trace_stop"() : () -> ()
    %502 = vector.extract_strided_slice %461 {offsets = [0, 0, 16], sizes = [2, 8, 8], strides = [1, 1, 1]} : vector<2x8x32xbf16> to vector<2x8x8xbf16>
    %503 = vector.extract_strided_slice %463 {offsets = [0, 0, 16], sizes = [2, 8, 8], strides = [1, 1, 1]} : vector<2x8x32xbf16> to vector<2x8x8xbf16>
    "tpu.trace_start"() <{level = 10 : i32, message = "bqd,bkd->bqk"}> : () -> ()
    %cst_159 = arith.constant dense<0.000000e+00> : vector<2x8x8xf32>
    %504 = tpu.matmul %502, %503, %cst_159 {dimension_numbers = #tpu.dot_dimension_numbers<[2], [2], [1], [1], [0, 0, 0, 1, 1, 1], [0], [0]>} : vector<2x8x8xbf16>, vector<2x8x8xbf16>, vector<2x8x8xf32> -> vector<2x8x8xf32>
    "tpu.trace_stop"() : () -> ()
    %cst_160 = arith.constant 0.353553385 : f32
    %505 = vector.broadcast %cst_160 : f32 to vector<2x8x8xf32>
    %506 = arith.mulf %504, %505 : vector<2x8x8xf32>
    %cst_161 = arith.constant dense<0xFF800000> : vector<2x8xf32>
    %507 = vector.multi_reduction <maximumf>, %506, %cst_161 [2] : vector<2x8x8xf32> to vector<2x8xf32>
    %508 = vector.shape_cast %507 : vector<2x8xf32> to vector<2x8x1xf32>
    %509 = vector.broadcast %508 : vector<2x8x1xf32> to vector<2x8x8xf32>
    %510 = arith.subf %506, %509 : vector<2x8x8xf32>
    %511 = math.exp %510 : vector<2x8x8xf32>
    %cst_162 = arith.constant dense<0.000000e+00> : vector<2x8xf32>
    %512 = vector.multi_reduction <add>, %511, %cst_162 [2] : vector<2x8x8xf32> to vector<2x8xf32>
    %513 = vector.shape_cast %512 : vector<2x8xf32> to vector<2x8x1xf32>
    %514 = tpu.reciprocal %513 {approx = true} : vector<2x8x1xf32> -> vector<2x8x1xf32>
    %515 = vector.broadcast %514 : vector<2x8x1xf32> to vector<2x8x8xf32>
    %516 = arith.mulf %511, %515 : vector<2x8x8xf32>
    %517 = arith.truncf %516 : vector<2x8x8xf32> to vector<2x8x8xbf16>
    %518 = vector.extract_strided_slice %465 {offsets = [0, 0, 16], sizes = [2, 8, 8], strides = [1, 1, 1]} : vector<2x8x32xbf16> to vector<2x8x8xbf16>
    "tpu.trace_start"() <{level = 10 : i32, message = "bqk,bkd->bqd"}> : () -> ()
    %cst_163 = arith.constant dense<0.000000e+00> : vector<2x8x8xf32>
    %519 = tpu.matmul %517, %518, %cst_163 {dimension_numbers = #tpu.dot_dimension_numbers<[2], [1], [1], [2], [0, 0, 0, 1, 1, 2], [0], [0]>} : vector<2x8x8xbf16>, vector<2x8x8xbf16>, vector<2x8x8xf32> -> vector<2x8x8xf32>
    "tpu.trace_stop"() : () -> ()
    %520 = vector.extract_strided_slice %461 {offsets = [0, 0, 24], sizes = [2, 8, 8], strides = [1, 1, 1]} : vector<2x8x32xbf16> to vector<2x8x8xbf16>
    %521 = vector.extract_strided_slice %463 {offsets = [0, 0, 24], sizes = [2, 8, 8], strides = [1, 1, 1]} : vector<2x8x32xbf16> to vector<2x8x8xbf16>
    "tpu.trace_start"() <{level = 10 : i32, message = "bqd,bkd->bqk"}> : () -> ()
    %cst_164 = arith.constant dense<0.000000e+00> : vector<2x8x8xf32>
    %522 = tpu.matmul %520, %521, %cst_164 {dimension_numbers = #tpu.dot_dimension_numbers<[2], [2], [1], [1], [0, 0, 0, 1, 1, 1], [0], [0]>} : vector<2x8x8xbf16>, vector<2x8x8xbf16>, vector<2x8x8xf32> -> vector<2x8x8xf32>
    "tpu.trace_stop"() : () -> ()
    %cst_165 = arith.constant 0.353553385 : f32
    %523 = vector.broadcast %cst_165 : f32 to vector<2x8x8xf32>
    %524 = arith.mulf %522, %523 : vector<2x8x8xf32>
    %cst_166 = arith.constant dense<0xFF800000> : vector<2x8xf32>
    %525 = vector.multi_reduction <maximumf>, %524, %cst_166 [2] : vector<2x8x8xf32> to vector<2x8xf32>
    %526 = vector.shape_cast %525 : vector<2x8xf32> to vector<2x8x1xf32>
    %527 = vector.broadcast %526 : vector<2x8x1xf32> to vector<2x8x8xf32>
    %528 = arith.subf %524, %527 : vector<2x8x8xf32>
    %529 = math.exp %528 : vector<2x8x8xf32>
    %cst_167 = arith.constant dense<0.000000e+00> : vector<2x8xf32>
    %530 = vector.multi_reduction <add>, %529, %cst_167 [2] : vector<2x8x8xf32> to vector<2x8xf32>
    %531 = vector.shape_cast %530 : vector<2x8xf32> to vector<2x8x1xf32>
    %532 = tpu.reciprocal %531 {approx = true} : vector<2x8x1xf32> -> vector<2x8x1xf32>
    %533 = vector.broadcast %532 : vector<2x8x1xf32> to vector<2x8x8xf32>
    %534 = arith.mulf %529, %533 : vector<2x8x8xf32>
    %535 = arith.truncf %534 : vector<2x8x8xf32> to vector<2x8x8xbf16>
    %536 = vector.extract_strided_slice %465 {offsets = [0, 0, 24], sizes = [2, 8, 8], strides = [1, 1, 1]} : vector<2x8x32xbf16> to vector<2x8x8xbf16>
    "tpu.trace_start"() <{level = 10 : i32, message = "bqk,bkd->bqd"}> : () -> ()
    %cst_168 = arith.constant dense<0.000000e+00> : vector<2x8x8xf32>
    %537 = tpu.matmul %535, %536, %cst_168 {dimension_numbers = #tpu.dot_dimension_numbers<[2], [1], [1], [2], [0, 0, 0, 1, 1, 2], [0], [0]>} : vector<2x8x8xbf16>, vector<2x8x8xbf16>, vector<2x8x8xf32> -> vector<2x8x8xf32>
    "tpu.trace_stop"() : () -> ()
    %538 = tpu.concatenate %483, %501, %519, %537 in 2 : vector<2x8x8xf32>, vector<2x8x8xf32>, vector<2x8x8xf32>, vector<2x8x8xf32> -> vector<2x8x32xf32>
    %539 = vector.shape_cast %538 : vector<2x8x32xf32> to vector<16x32xf32>
    %540 = arith.truncf %539 : vector<16x32xf32> to vector<16x32xbf16>
    %c1_169 = arith.constant 1 : index
    %c0_170 = arith.constant 0 : index
    %c0_171 = arith.constant 0 : index
    %541 = vector.load %arg6[%c1_169, %c0_170, %c0_171] : memref<2x32x32xbf16, #tpu.memory_space<vmem>>, vector<1x32x32xbf16>
    %542 = vector.shape_cast %541 : vector<1x32x32xbf16> to vector<32x32xbf16>
    %cst_172 = arith.constant dense<0.000000e+00> : vector<16x32xf32>
    %543 = tpu.matmul %540, %542, %cst_172 {dimension_numbers = #tpu.dot_dimension_numbers<[1], [0], [0], [1], [0, 0, 1, 1], [], []>} : vector<16x32xbf16>, vector<32x32xbf16>, vector<16x32xf32> -> vector<16x32xf32>
    %c15 = arith.constant 15 : index
    %c0_173 = arith.constant 0 : index
    %544 = vector.load %arg10[%c15, %c0_173] : memref<25x128xf32, #tpu.memory_space<vmem>>, vector<1x32xf32>
    %545 = vector.broadcast %544 : vector<1x32xf32> to vector<16x32xf32>
    %546 = arith.addf %543, %545 : vector<16x32xf32>
    %547 = arith.addf %441, %546 : vector<16x32xf32>
    %c17 = arith.constant 17 : index
    %c0_174 = arith.constant 0 : index
    %548 = vector.load %arg10[%c17, %c0_174] : memref<25x128xf32, #tpu.memory_space<vmem>>, vector<1x32xf32>
    %c20 = arith.constant 20 : index
    %c0_175 = arith.constant 0 : index
    %549 = vector.load %arg10[%c20, %c0_175] : memref<25x128xf32, #tpu.memory_space<vmem>>, vector<1x32xf32>
    %cst_176 = arith.constant dense<0.000000e+00> : vector<16xf32>
    %550 = vector.multi_reduction <add>, %547, %cst_176 [1] : vector<16x32xf32> to vector<16xf32>
    %551 = vector.shape_cast %550 : vector<16xf32> to vector<16x1xf32>
    %cst_177 = arith.constant 3.200000e+01 : f32
    %552 = vector.broadcast %cst_177 : f32 to vector<16x1xf32>
    %553 = arith.divf %551, %552 : vector<16x1xf32>
    %554 = vector.broadcast %553 : vector<16x1xf32> to vector<16x32xf32>
    %555 = arith.subf %547, %554 : vector<16x32xf32>
    %556 = arith.mulf %555, %555 : vector<16x32xf32>
    %cst_178 = arith.constant dense<0.000000e+00> : vector<16xf32>
    %557 = vector.multi_reduction <add>, %556, %cst_178 [1] : vector<16x32xf32> to vector<16xf32>
    %558 = vector.shape_cast %557 : vector<16xf32> to vector<16x1xf32>
    %cst_179 = arith.constant 3.200000e+01 : f32
    %559 = vector.broadcast %cst_179 : f32 to vector<16x1xf32>
    %560 = arith.divf %558, %559 : vector<16x1xf32>
    %cst_180 = arith.constant 9.99999974E-6 : f32
    %561 = vector.broadcast %cst_180 : f32 to vector<16x1xf32>
    %562 = arith.addf %560, %561 : vector<16x1xf32>
    %563 = math.rsqrt %562 : vector<16x1xf32>
    %564 = vector.broadcast %563 : vector<16x1xf32> to vector<16x32xf32>
    %565 = arith.mulf %555, %564 : vector<16x32xf32>
    %566 = vector.broadcast %548 : vector<1x32xf32> to vector<16x32xf32>
    %567 = arith.mulf %565, %566 : vector<16x32xf32>
    %568 = vector.broadcast %549 : vector<1x32xf32> to vector<16x32xf32>
    %569 = arith.addf %567, %568 : vector<16x32xf32>
    %570 = arith.truncf %569 : vector<16x32xf32> to vector<16x32xbf16>
    %c1_181 = arith.constant 1 : index
    %c0_182 = arith.constant 0 : index
    %c0_183 = arith.constant 0 : index
    %571 = vector.load %arg7[%c1_181, %c0_182, %c0_183] : memref<2x32x128xbf16, #tpu.memory_space<vmem>>, vector<1x32x128xbf16>
    %572 = vector.shape_cast %571 : vector<1x32x128xbf16> to vector<32x128xbf16>
    %cst_184 = arith.constant dense<0.000000e+00> : vector<16x128xf32>
    %573 = tpu.matmul %570, %572, %cst_184 {dimension_numbers = #tpu.dot_dimension_numbers<[1], [0], [0], [1], [0, 0, 1, 1], [], []>} : vector<16x32xbf16>, vector<32x128xbf16>, vector<16x128xf32> -> vector<16x128xf32>
    %c22 = arith.constant 22 : index
    %c0_185 = arith.constant 0 : index
    %574 = vector.load %arg10[%c22, %c0_185] : memref<25x128xf32, #tpu.memory_space<vmem>>, vector<1x128xf32>
    %575 = vector.broadcast %574 : vector<1x128xf32> to vector<16x128xf32>
    %576 = arith.addf %573, %575 : vector<16x128xf32>
    %cst_186 = arith.constant 0.000000e+00 : f32
    %577 = vector.broadcast %cst_186 : f32 to vector<16x128xf32>
    %578 = arith.maximumf %576, %577 : vector<16x128xf32>
    %579 = arith.truncf %578 : vector<16x128xf32> to vector<16x128xbf16>
    %c1_187 = arith.constant 1 : index
    %c0_188 = arith.constant 0 : index
    %c0_189 = arith.constant 0 : index
    %580 = vector.load %arg8[%c1_187, %c0_188, %c0_189] : memref<2x128x32xbf16, #tpu.memory_space<vmem>>, vector<1x128x32xbf16>
    %581 = vector.shape_cast %580 : vector<1x128x32xbf16> to vector<128x32xbf16>
    %cst_190 = arith.constant dense<0.000000e+00> : vector<16x32xf32>
    %582 = tpu.matmul %579, %581, %cst_190 {dimension_numbers = #tpu.dot_dimension_numbers<[1], [0], [0], [1], [0, 0, 1, 1], [], []>} : vector<16x128xbf16>, vector<128x32xbf16>, vector<16x32xf32> -> vector<16x32xf32>
    %c23 = arith.constant 23 : index
    %c0_191 = arith.constant 0 : index
    %583 = vector.load %arg10[%c23, %c0_191] : memref<25x128xf32, #tpu.memory_space<vmem>>, vector<1x32xf32>
    %584 = vector.broadcast %583 : vector<1x32xf32> to vector<16x32xf32>
    %585 = arith.addf %582, %584 : vector<16x32xf32>
    %586 = arith.addf %569, %585 : vector<16x32xf32>
    %c18 = arith.constant 18 : index
    %c0_192 = arith.constant 0 : index
    %587 = vector.load %arg10[%c18, %c0_192] : memref<25x128xf32, #tpu.memory_space<vmem>>, vector<1x32xf32>
    %c21 = arith.constant 21 : index
    %c0_193 = arith.constant 0 : index
    %588 = vector.load %arg10[%c21, %c0_193] : memref<25x128xf32, #tpu.memory_space<vmem>>, vector<1x32xf32>
    %cst_194 = arith.constant dense<0.000000e+00> : vector<16xf32>
    %589 = vector.multi_reduction <add>, %586, %cst_194 [1] : vector<16x32xf32> to vector<16xf32>
    %590 = vector.shape_cast %589 : vector<16xf32> to vector<16x1xf32>
    %cst_195 = arith.constant 3.200000e+01 : f32
    %591 = vector.broadcast %cst_195 : f32 to vector<16x1xf32>
    %592 = arith.divf %590, %591 : vector<16x1xf32>
    %593 = vector.broadcast %592 : vector<16x1xf32> to vector<16x32xf32>
    %594 = arith.subf %586, %593 : vector<16x32xf32>
    %595 = arith.mulf %594, %594 : vector<16x32xf32>
    %cst_196 = arith.constant dense<0.000000e+00> : vector<16xf32>
    %596 = vector.multi_reduction <add>, %595, %cst_196 [1] : vector<16x32xf32> to vector<16xf32>
    %597 = vector.shape_cast %596 : vector<16xf32> to vector<16x1xf32>
    %cst_197 = arith.constant 3.200000e+01 : f32
    %598 = vector.broadcast %cst_197 : f32 to vector<16x1xf32>
    %599 = arith.divf %597, %598 : vector<16x1xf32>
    %cst_198 = arith.constant 9.99999974E-6 : f32
    %600 = vector.broadcast %cst_198 : f32 to vector<16x1xf32>
    %601 = arith.addf %599, %600 : vector<16x1xf32>
    %602 = math.rsqrt %601 : vector<16x1xf32>
    %603 = vector.broadcast %602 : vector<16x1xf32> to vector<16x32xf32>
    %604 = arith.mulf %594, %603 : vector<16x32xf32>
    %605 = vector.broadcast %587 : vector<1x32xf32> to vector<16x32xf32>
    %606 = arith.mulf %604, %605 : vector<16x32xf32>
    %607 = vector.broadcast %588 : vector<1x32xf32> to vector<16x32xf32>
    %608 = arith.addf %606, %607 : vector<16x32xf32>
    %609 = arith.truncf %608 : vector<16x32xf32> to vector<16x32xbf16>
    %c0_199 = arith.constant 0 : index
    %c0_200 = arith.constant 0 : index
    %610 = vector.load %arg9[%c0_199, %c0_200] : memref<32x128xbf16, #tpu.memory_space<vmem>>, vector<32x128xbf16>
    %cst_201 = arith.constant dense<0.000000e+00> : vector<16x128xf32>
    %611 = tpu.matmul %609, %610, %cst_201 {dimension_numbers = #tpu.dot_dimension_numbers<[1], [0], [0], [1], [0, 0, 1, 1], [], []>} : vector<16x32xbf16>, vector<32x128xbf16>, vector<16x128xf32> -> vector<16x128xf32>
    %c24 = arith.constant 24 : index
    %c0_202 = arith.constant 0 : index
    %612 = vector.load %arg10[%c24, %c0_202] : memref<25x128xf32, #tpu.memory_space<vmem>>, vector<1x128xf32>
    %613 = vector.broadcast %612 : vector<1x128xf32> to vector<16x128xf32>
    %614 = arith.addf %611, %613 : vector<16x128xf32>
    %cst_203 = arith.constant 5.000000e-01 : f32
    %615 = vector.broadcast %cst_203 : f32 to vector<16x128xf32>
    %616 = arith.mulf %615, %614 : vector<16x128xf32>
    %617 = math.tanh %616 : vector<16x128xf32>
    %cst_204 = arith.constant 1.000000e+00 : f32
    %618 = vector.broadcast %cst_204 : f32 to vector<16x128xf32>
    %619 = arith.addf %617, %618 : vector<16x128xf32>
    %cst_205 = arith.constant 5.000000e-01 : f32
    %620 = vector.broadcast %cst_205 : f32 to vector<16x128xf32>
    %621 = arith.mulf %620, %619 : vector<16x128xf32>
    %c0_206 = arith.constant 0 : index
    %c0_207 = arith.constant 0 : index
    %622 = vector.load %arg11[%c0_206, %c0_207] : memref<16x128xf32, #tpu.memory_space<vmem>>, vector<16x128xf32>
    tpu.vector_store %arg11[%c0_206, %c0_207], %621 {strides = array<i32>} : memref<16x128xf32, #tpu.memory_space<vmem>>, vector<16x128xf32>,
    return
  }
  func.func @transform_0(%arg0: i32) -> (i32, i32, i32) {
    %c0_i32 = arith.constant 0 : i32
    %c0_i32_0 = arith.constant 0 : i32
    %c0_i32_1 = arith.constant 0 : i32
    %c0_i32_2 = arith.constant 0 : i32
    return %c0_i32, %c0_i32_0, %c0_i32_1 : i32, i32, i32
  }
  func.func @transform_1(%arg0: i32) -> (i32, i32, i32) {
    %c0_i32 = arith.constant 0 : i32
    %c0_i32_0 = arith.constant 0 : i32
    %c0_i32_1 = arith.constant 0 : i32
    %c0_i32_2 = arith.constant 0 : i32
    return %c0_i32, %c0_i32_0, %c0_i32_1 : i32, i32, i32
  }
  func.func @transform_2(%arg0: i32) -> (i32, i32, i32) {
    %c0_i32 = arith.constant 0 : i32
    %c0_i32_0 = arith.constant 0 : i32
    %c0_i32_1 = arith.constant 0 : i32
    %c0_i32_2 = arith.constant 0 : i32
    return %c0_i32, %c0_i32_0, %c0_i32_1 : i32, i32, i32
  }
  func.func @transform_3(%arg0: i32) -> (i32, i32, i32) {
    %c0_i32 = arith.constant 0 : i32
    %c0_i32_0 = arith.constant 0 : i32
    %c0_i32_1 = arith.constant 0 : i32
    %c0_i32_2 = arith.constant 0 : i32
    return %c0_i32, %c0_i32_0, %c0_i32_1 : i32, i32, i32
  }
  func.func @transform_4(%arg0: i32) -> (i32, i32, i32) {
    %c0_i32 = arith.constant 0 : i32
    %c0_i32_0 = arith.constant 0 : i32
    %c0_i32_1 = arith.constant 0 : i32
    %c0_i32_2 = arith.constant 0 : i32
    return %c0_i32, %c0_i32_0, %c0_i32_1 : i32, i32, i32
  }
  func.func @transform_5(%arg0: i32) -> (i32, i32, i32) {
    %c0_i32 = arith.constant 0 : i32
    %c0_i32_0 = arith.constant 0 : i32
    %c0_i32_1 = arith.constant 0 : i32
    %c0_i32_2 = arith.constant 0 : i32
    return %c0_i32, %c0_i32_0, %c0_i32_1 : i32, i32, i32
  }
  func.func @transform_6(%arg0: i32) -> (i32, i32, i32) {
    %c0_i32 = arith.constant 0 : i32
    %c0_i32_0 = arith.constant 0 : i32
    %c0_i32_1 = arith.constant 0 : i32
    %c0_i32_2 = arith.constant 0 : i32
    return %c0_i32, %c0_i32_0, %c0_i32_1 : i32, i32, i32
  }
  func.func @transform_7(%arg0: i32) -> (i32, i32, i32) {
    %c0_i32 = arith.constant 0 : i32
    %c0_i32_0 = arith.constant 0 : i32
    %c0_i32_1 = arith.constant 0 : i32
    %c0_i32_2 = arith.constant 0 : i32
    return %c0_i32, %c0_i32_0, %c0_i32_1 : i32, i32, i32
  }
  func.func @transform_8(%arg0: i32) -> (i32, i32) {
    %c0_i32 = arith.constant 0 : i32
    %c0_i32_0 = arith.constant 0 : i32
    %c0_i32_1 = arith.constant 0 : i32
    return %c0_i32, %c0_i32_0 : i32, i32
  }
  func.func @transform_9(%arg0: i32) -> (i32, i32) {
    %c0_i32 = arith.constant 0 : i32
    %c0_i32_0 = arith.constant 0 : i32
    %c0_i32_1 = arith.constant 0 : i32
    return %c0_i32, %c0_i32_0 : i32, i32
  }
  func.func @transform_10(%arg0: i32) -> (i32, i32) {
    %c0_i32 = arith.constant 0 : i32
    %c0_i32_0 = arith.constant 0 : i32
    %c0_i32_1 = arith.constant 0 : i32
    return %c0_i32, %c0_i32_0 : i32, i32
  }
}

</mosaic_0001>

<bundles_post_ra>
// kernel: multi_step_decoder_forward.1
= control target key start
LH: loop header
LB: loop body
LE: loop exit
PB: predicated region body
PF: predicated region fallthrough
CT: control target
= control target key end

     0   :  { %v6266_v0 = vmov 0.0   ;;  %vm6267_vm0 = vmmov 0   ;;  %vm69_vm1 = vcmask 261120   ;;  %vm122_vm2 = vcmask 64512   ;;  %s6270_s23 = smov 64   ;;  %s6271_s24 = smov 88   ;;  %s7398_s2 = inlined_call_operand.vmem [shape: bf16[2,32,96], index: 2, kind: input, shape index: {}]   ;;  %s7399_s0 = inlined_call_operand.vmem [shape: f32[2,8,32], index: 0, kind: input, shape index: {}]   ;;  %s7400_s9 = inlined_call_operand.vmem [shape: f32[25,128], index: 9, kind: input, shape index: {}]   ;;  %s7401_s3 = inlined_call_operand.vmem [shape: bf16[2,32,32], index: 3, kind: input, shape index: {}]   ;;  %s7402_s4 = inlined_call_operand.vmem [shape: bf16[2,32,96], index: 4, kind: input, shape index: {}]   ;;  %s7403_s1 = inlined_call_operand.vmem [shape: f32[2,8,32], index: 1, kind: input, shape index: {}]   ;;  %s7404_s5 = inlined_call_operand.vmem [shape: bf16[2,32,32], index: 5, kind: input, shape index: {}]   ;;  %s7405_s6 = inlined_call_operand.vmem [shape: bf16[2,32,128], index: 6, kind: input, shape index: {}]   ;;  %s7406_s7 = inlined_call_operand.vmem [shape: bf16[2,128,32], index: 7, kind: input, shape index: {}]   ;;  %s7407_s8 = inlined_call_operand.vmem [shape: bf16[32,128], index: 8, kind: input, shape index: {}]   ;;  %s7408_s10 = inlined_call_operand.vmem [shape: f32[16,128], index: 10, kind: output, shape index: {}]  }
   0x1   :  { %5467 = vmatprep.subr.bf16.mxu1 %v6266_v0  ;;  %v6072_v1 = vld [vmem:[%s7398_s2] sm:$0xff]   ;;  %5471 = vmatprep.mubr.msk.bf16.mxu1 %vm6267_vm0, %v6266_v0  ;;  %v6073_v2 = vld [vmem:[%s7398_s2 + $0x8] sm:$0xff]   ;;  %v40_v19 = vlaneseq  ;;  %v6269_v23 = vmov -1e+30   ;;  %vm250_vm4 = vcmask 1043456   ;;  %s6272_s25 = smov 120  }
   0x2   :  { %5481 = vmatprep.subr.bf16.mxu0 %v6266_v0  ;;  %5483 = vmatprep.mubr.msk.bf16.mxu0 %vm6267_vm0, %v6266_v0  ;;  %v6353_v3 = vld [vmem:[%s7399_s0] sm:$0xff]  ;;  %v6358_v4 = vld [vmem:[%s7399_s0 + $0x8] sm:$0xff]  ;;  %s6268_s0 = smov 96   ;;  %s6273_s26 = smov 56   ;;  %vm1040_vm5 = vcmask 130048   ;;  %vm1043_vm6 = vcmask 195584  }
   0x3   :  { %5468 = vmatpush3.bf16.msra.mxu1 %v6072_v1  ;;  %v47_v5 = vpack.c.bf16 %v6358_v4, %v6353_v3  ;;  %v5082_v6 = vld [vmem:[%s7400_s9] ss:$0 sm:$0xff]  ;;  %v41_v20 = vshrl.u32 %v40_v19, 7  ;;  %v43_v21 = vand.u32 127, %v40_v19  ;;  %s6274_s27 = smov 80   ;;  %s6275_s28 = smov 112  }
   0x4   :  { %5469 = vmatprep.subr.bf16.mxu1 %v6266_v0  ;;  %s6276_s29 = smov 48   ;;  %s6277_s30 = smov 72  }
   0x5   :  { %vm44_vm3 = vcmp.le.s32.totalorder %v43_v21, %v41_v20  ;;  %s6278_s11 = smov 104   ;;  %s6279_s12 = smov 40  }
   0x6   :  { %v6390_v24 = vsel %vm44_vm3, 0.0, %v6269_v23  ;;  %s6280_s13 = smov 8   ;;  %s6281_s14 = smov 16  }
   0x7   :  { %5470 = vmatpush3.bf16.msra.mxu1 %v6073_v2  ;;  %s6282_s19 = smov 24  }
   0x8   :  { %5475 = vmatprep.subr.bf16.mxu1 %v6266_v0 }
   0xa   :  { %5472 = vmatmul.mubr.msk.bf16.vlgmr.msra.gmra.mrb[0].mxu1 %vm69_vm1, %v47_v5 }
   0xb   :  { %5477 = vmatprep.mubr.msk.bf16.mxu1 %vm6267_vm0, %v6266_v0 }
  0xdd   :  { %v107_v7 = vpop.f32.mrb[0].mxu1 }
  0xde   :  { %v108_v8 = vadd.f32 %v5082_v6, %v107_v7  ;;  %v5473_v9 = vpop.f32.mrb[1].mxu1 }
  0xdf   :  { %v110_v10 = vpop.f32.mrb[2].mxu1 }
  0xe0   :  { %v6370_v11 = vpack.c.bf16 %v108_v8, %v108_v8  ;;  %v111_v12 = vadd.f32 %v5082_v6, %v110_v10  ;;  %v5474_v13 = vpop.f32.mrb[3].mxu1 }
  0xe2   :  { %120 = vrot.lane.b32.xlu0 %v6370_v11, %s6268_s0  ;;  %v6374_v14 = vpack.c.bf16 %v111_v12, %v111_v12 }
  0xe6   :  { %169 = vrot.lane.b32.xlu0 %v6374_v14, %s6268_s0 }
 0x154   :  { %v121_v15 = vpop.permute.xlu0 %120 }
 0x155   :  { %v127_v16 = vsel %vm122_vm2, %v121_v15, 0 }
 0x156   :  { %5476 = vmatpush3.bf16.xpose.msra.mxu1 %v127_v16 }
 0x157   :  { %5487 = vmatprep.subr.bf16.mxu1 %v6266_v0 }
 0x158   :  { %v170_v17 = vpop.permute.xlu0 %169 }
 0x159   :  { %v175_v18 = vsel %vm122_vm2, %v170_v17, 0 }
 0x15a   :  { %5482 = vmatpush3.bf16.xpose.msra.mxu0 %v175_v18 }
 0x15b   :  { %5493 = vmatprep.subr.bf16.mxu0 %v6266_v0 }
 0x15d   :  { %5478 = vmatmul.mubr.msk.bf16.vlgmr.msra.gmra.mrb[4].mxu1 %vm122_vm2, %v6370_v11 }
 0x15e   :  { %5489 = vmatprep.mubr.msk.bf16.mxu1 %vm6267_vm0, %v6266_v0 }
 0x161   :  { %5484 = vmatmul.mubr.msk.bf16.vlgmr.msra.gmra.mrb[0].mxu0 %vm122_vm2, %v6374_v14 }
 0x162   :  { %5495 = vmatprep.mubr.msk.bf16.mxu0 %vm6267_vm0, %v6266_v0 }
 0x230   :  { %v163_v22 = vpop.f32.mrb[4].mxu1 }
 0x231   :  { %v217_v25 = vmul.f32 0.35355338, %v163_v22  ;;  %v5479_v26 = vpop.f32.mrb[5].mxu1 }
 0x232   :  { %v166_v27 = vpop.f32.mrb[6].mxu1 }
 0x233   :  { %v5480_v28 = vpop.f32.mrb[7].mxu1  ;;  %v219_v29 = vadd.f32 %v217_v25, %v6390_v24 }
 0x234   :  { %v211_v30 = vpop.f32.mrb[0].mxu0 }
 0x235   :  { %v218_v31 = vmul.f32 0.35355338, %v211_v30  ;;  %v5485_v32 = vpop.f32.mrb[1].mxu0  ;;  %v221_v33 = vsel %vm122_vm2, %v219_v29, -inf }
 0x236   :  { %v214_v34 = vpop.f32.mrb[2].mxu0  ;;  %222 = vmax.xlane.f32.xlu1 %v221_v33 }
 0x237   :  { %v5486_v35 = vpop.f32.mrb[3].mxu0  ;;  %v220_v36 = vadd.f32 %v218_v31, %v6390_v24 }
 0x239   :  { %v224_v37 = vsel %vm122_vm2, %v220_v36, -inf }
 0x23a   :  { %225 = vmax.xlane.f32.xlu1 %v224_v37 }
 0x24b   :  { %245 = vrot.lane.b32.xlu1 %v6370_v11, %s6270_s23 }
 0x24f   :  { %294 = vrot.lane.b32.xlu1 %v6374_v14, %s6270_s23 }
 0x253   :  { %344 = vrot.lane.b32.xlu1 %v6370_v11, %s6271_s24 }
 0x2c3   :  { %v223_v38 = vpop.xlane.xlu1 %222 }
 0x2c4   :  { %v227_v39 = vsub.f32 %v219_v29, %v223_v38 }
 0x2c6   :  { %v229_v40 = vmul.f32 1.442695, %v227_v39 }
 0x2c7   :  { %v226_v41 = vpop.xlane.xlu1 %225 }
 0x2c8   :  { %6110 = vpow2.f32 %v229_v40  ;;  %v228_v42 = vsub.f32 %v220_v36, %v226_v41 }
 0x2ca   :  { %v231_v43 = vmul.f32 1.442695, %v228_v42 }
 0x2cb   :  { %v246_v44 = vpop.permute.xlu1 %245 }
 0x2cc   :  { %6112 = vpow2.f32 %v231_v43  ;;  %v252_v45 = vsel %vm250_vm4, %v246_v44, 0 }
 0x2cd   :  { %5488 = vmatpush3.bf16.msra.mxu1 %v252_v45 }
 0x2ce   :  { %5499 = vmatprep.subr.bf16.mxu1 %v6266_v0 }
 0x2cf   :  { %v295_v46 = vpop.permute.xlu1 %294 }
 0x2d0   :  { %v300_v47 = vsel %vm250_vm4, %v295_v46, 0 }
 0x2d1   :  { %5494 = vmatpush3.bf16.msra.mxu0 %v300_v47 }
 0x2d2   :  { %v6111_v48 = vpop.eup %6110  ;;  %5505 = vmatprep.subr.bf16.mxu0 %v6266_v0 }
 0x2d3   :  { %v233_v49 = vsel %vm122_vm2, %v6111_v48, 0.0  ;;  %v345_v52 = vpop.permute.xlu1 %344 }
 0x2d4   :  { %234 = vadd.xlane.f32.xlu0 %v233_v49  ;;  %v350_v59 = vsel %vm122_vm2, %v345_v52, 0 }
 0x2d6   :  { %v6113_v50 = vpop.eup %6112 }
 0x2d7   :  { %v236_v51 = vsel %vm122_vm2, %v6113_v50, 0.0 }
 0x2d8   :  { %237 = vadd.xlane.f32.xlu1 %v236_v51 }
 0x2e9   :  { %394 = vrot.lane.b32.xlu1 %v6374_v14, %s6271_s24 }
 0x2ea   :  { %342 = vrot.lane.b32.xlu0 %v6370_v11, %s6272_s25 }
 0x2ed   :  { %392 = vrot.lane.b32.xlu1 %v6374_v14, %s6272_s25 }
 0x361   :  { %v235_v53 = vpop.xlane.xlu0 %234 }
 0x362   :  { %6114 = vrcp.f32 %v235_v53 }
 0x365   :  { %v238_v54 = vpop.xlane.xlu1 %237  ;;  %v343_v1 = vpop.permute.xlu0 %342 }
 0x366   :  { %6116 = vrcp.f32 %v238_v54 }
 0x369   :  { %v395_v61 = vpop.permute.xlu1 %394 }
 0x36a   :  { %v400_v63 = vsel %vm122_vm2, %v395_v61, 0 }
 0x36c   :  { %v6115_v55 = vpop.eup %6114 }
 0x36d   :  { %v241_v56 = vmul.f32 %v6115_v55, %v6111_v48  ;;  %v393_v2 = vpop.permute.xlu1 %392 }
 0x36f   :  { %v243_v57 = vpack.c.bf16 %v241_v56, %v241_v56 }
 0x370   :  { %v6117_v58 = vpop.eup %6116 }
 0x371   :  { %5490 = vmatmul.mubr.msk.bf16.vlgmr.msra.gmra.mrb[8].mxu1 %vm122_vm2, %v243_v57  ;;  %v242_v60 = vmul.f32 %v6117_v58, %v6113_v50 }
 0x372   :  { %5500 = vmatpush3.bf16.xpose.msra.mxu1 %v350_v59  ;;  %5501 = vmatprep.mubr.msk.bf16.mxu1 %vm6267_vm0, %v6266_v0 }
 0x373   :  { %v244_v62 = vpack.c.bf16 %v242_v60, %v242_v60  ;;  %5511 = vmatprep.subr.bf16.mxu1 %v6266_v0 }
 0x375   :  { %5496 = vmatmul.mubr.msk.bf16.vlgmr.msra.gmra.mrb[4].mxu0 %vm122_vm2, %v244_v62 }
 0x376   :  { %5506 = vmatpush3.bf16.xpose.msra.mxu0 %v400_v63  ;;  %5507 = vmatprep.mubr.msk.bf16.mxu0 %vm6267_vm0, %v6266_v0 }
 0x377   :  { %5517 = vmatprep.subr.bf16.mxu0 %v6266_v0 }
 0x379   :  { %5502 = vmatmul.mubr.msk.bf16.vlgmr.msra.gmra.mrb[12].mxu1 %vm122_vm2, %v343_v1 }
 0x37a   :  { %5513 = vmatprep.mubr.msk.bf16.mxu1 %vm6267_vm0, %v6266_v0 }
 0x37d   :  { %5508 = vmatmul.mubr.msk.bf16.vlgmr.msra.gmra.mrb[8].mxu0 %vm122_vm2, %v393_v2 }
 0x37e   :  { %5519 = vmatprep.mubr.msk.bf16.mxu0 %vm6267_vm0, %v6266_v0 }
 0x444   :  { %v6430_v5 = vpop.f32.mrb[8].mxu1 }
 0x445   :  { %v5491_v6 = vpop.f32.mrb[9].mxu1 }
 0x446   :  { %v291_v7 = vpop.f32.mrb[10].mxu1 }
 0x447   :  { %v5492_v8 = vpop.f32.mrb[11].mxu1 }
 0x448   :  { %v6432_v9 = vpop.f32.mrb[4].mxu0 }
 0x449   :  { %v5497_v10 = vpop.f32.mrb[5].mxu0 }
 0x44a   :  { %v339_v12 = vpop.f32.mrb[6].mxu0 }
 0x44b   :  { %v5498_v13 = vpop.f32.mrb[7].mxu0 }
 0x44c   :  { %v386_v15 = vpop.f32.mrb[12].mxu1 }
 0x44d   :  { %v442_v16 = vmul.f32 0.35355338, %v386_v15  ;;  %v5503_v17 = vpop.f32.mrb[13].mxu1 }
 0x44e   :  { %v389_v18 = vpop.f32.mrb[14].mxu1 }
 0x44f   :  { %v5504_v19 = vpop.f32.mrb[15].mxu1  ;;  %v444_v20 = vadd.f32 %v442_v16, %v6390_v24 }
 0x450   :  { %v436_v21 = vpop.f32.mrb[8].mxu0 }
 0x451   :  { %v443_v22 = vmul.f32 0.35355338, %v436_v21  ;;  %v5509_v23 = vpop.f32.mrb[9].mxu0  ;;  %v446_v25 = vsel %vm122_vm2, %v444_v20, -inf }
 0x452   :  { %v439_v26 = vpop.f32.mrb[10].mxu0  ;;  %447 = vmax.xlane.f32.xlu1 %v446_v25 }
 0x453   :  { %v5510_v27 = vpop.f32.mrb[11].mxu0  ;;  %v445_v28 = vadd.f32 %v443_v22, %v6390_v24 }
 0x455   :  { %v449_v29 = vsel %vm122_vm2, %v445_v28, -inf }
 0x456   :  { %450 = vmax.xlane.f32.xlu0 %v449_v29 }
 0x463   :  { %470 = vrot.lane.b32.xlu1 %v6370_v11, %s6273_s26 }
 0x467   :  { %568 = vrot.lane.b32.xlu1 %v6370_v11, %s6274_s27 }
 0x46c   :  { %518 = vrot.lane.b32.xlu0 %v6374_v14, %s6273_s26 }
 0x470   :  { %566 = vrot.lane.b32.xlu0 %v6370_v11, %s6275_s28 }
 0x4df   :  { %v448_v30 = vpop.xlane.xlu1 %447 }
 0x4e0   :  { %v452_v31 = vsub.f32 %v444_v20, %v448_v30 }
 0x4e2   :  { %v454_v32 = vmul.f32 1.442695, %v452_v31 }
 0x4e3   :  { %v451_v33 = vpop.xlane.xlu0 %450  ;;  %v471_v34 = vpop.permute.xlu1 %470 }
 0x4e4   :  { %6118 = vpow2.f32 %v454_v32  ;;  %v453_v35 = vsub.f32 %v445_v28, %v451_v33  ;;  %v476_v36 = vsel %vm250_vm4, %v471_v34, 0 }
 0x4e5   :  { %5512 = vmatpush3.bf16.msra.mxu1 %v476_v36 }
 0x4e6   :  { %v456_v37 = vmul.f32 1.442695, %v453_v35  ;;  %5523 = vmatprep.subr.bf16.mxu1 %v6266_v0 }
 0x4e7   :  { %v519_v38 = vpop.permute.xlu0 %518  ;;  %v569_v44 = vpop.permute.xlu1 %568 }
 0x4e8   :  { %6120 = vpow2.f32 %v456_v37  ;;  %v524_v39 = vsel %vm250_vm4, %v519_v38, 0  ;;  %v574_v51 = vsel %vm122_vm2, %v569_v44, 0 }
 0x4e9   :  { %5518 = vmatpush3.bf16.msra.mxu0 %v524_v39 }
 0x4ea   :  { %5529 = vmatprep.subr.bf16.mxu0 %v6266_v0 }
 0x4eb   :  { %v567_v56 = vpop.permute.xlu0 %566 }
 0x4ee   :  { %v6119_v40 = vpop.eup %6118 }
 0x4ef   :  { %v458_v41 = vsel %vm122_vm2, %v6119_v40, 0.0 }
 0x4f0   :  { %459 = vadd.xlane.f32.xlu1 %v458_v41 }
 0x4f2   :  { %v6121_v42 = vpop.eup %6120 }
 0x4f3   :  { %v461_v43 = vsel %vm122_vm2, %v6121_v42, 0.0 }
 0x4f4   :  { %462 = vadd.xlane.f32.xlu1 %v461_v43 }
 0x505   :  { %618 = vrot.lane.b32.xlu1 %v6374_v14, %s6274_s27 }
 0x509   :  { %616 = vrot.lane.b32.xlu1 %v6374_v14, %s6275_s28 }
 0x57d   :  { %v460_v45 = vpop.xlane.xlu1 %459 }
 0x57e   :  { %6122 = vrcp.f32 %v460_v45 }
 0x581   :  { %v463_v46 = vpop.xlane.xlu1 %462 }
 0x582   :  { %6124 = vrcp.f32 %v463_v46 }
 0x585   :  { %v619_v53 = vpop.permute.xlu1 %618 }
 0x586   :  { %v624_v55 = vsel %vm122_vm2, %v619_v53, 0 }
 0x588   :  { %v6123_v47 = vpop.eup %6122 }
 0x589   :  { %v466_v48 = vmul.f32 %v6123_v47, %v6119_v40  ;;  %v617_v57 = vpop.permute.xlu1 %616 }
 0x58b   :  { %v468_v49 = vpack.c.bf16 %v466_v48, %v466_v48 }
 0x58c   :  { %v6125_v50 = vpop.eup %6124 }
 0x58d   :  { %5514 = vmatmul.mubr.msk.bf16.vlgmr.msra.gmra.mrb[16].mxu1 %vm122_vm2, %v468_v49  ;;  %v467_v52 = vmul.f32 %v6125_v50, %v6121_v42 }
 0x58e   :  { %5524 = vmatpush3.bf16.xpose.msra.mxu1 %v574_v51  ;;  %5525 = vmatprep.mubr.msk.bf16.mxu1 %vm6267_vm0, %v6266_v0 }
 0x58f   :  { %v469_v54 = vpack.c.bf16 %v467_v52, %v467_v52  ;;  %5535 = vmatprep.subr.bf16.mxu1 %v6266_v0 }
 0x591   :  { %5520 = vmatmul.mubr.msk.bf16.vlgmr.msra.gmra.mrb[12].mxu0 %vm122_vm2, %v469_v54 }
 0x592   :  { %5530 = vmatpush3.bf16.xpose.msra.mxu0 %v624_v55  ;;  %5531 = vmatprep.mubr.msk.bf16.mxu0 %vm6267_vm0, %v6266_v0 }
 0x593   :  { %5541 = vmatprep.subr.bf16.mxu0 %v6266_v0 }
 0x595   :  { %5526 = vmatmul.mubr.msk.bf16.vlgmr.msra.gmra.mrb[20].mxu1 %vm122_vm2, %v567_v56 }
 0x596   :  { %5537 = vmatprep.mubr.msk.bf16.mxu1 %vm6267_vm0, %v6266_v0 }
 0x599   :  { %5532 = vmatmul.mubr.msk.bf16.vlgmr.msra.gmra.mrb[16].mxu0 %vm122_vm2, %v617_v57 }
 0x59a   :  { %5543 = vmatprep.mubr.msk.bf16.mxu0 %vm6267_vm0, %v6266_v0 }
 0x660   :  { %v6472_v58 = vpop.f32.mrb[16].mxu1 }
 0x661   :  { %v5515_v59 = vpop.f32.mrb[17].mxu1 }
 0x662   :  { %v515_v60 = vpop.f32.mrb[18].mxu1 }
 0x663   :  { %v5516_v61 = vpop.f32.mrb[19].mxu1 }
 0x664   :  { %v6474_v62 = vpop.f32.mrb[12].mxu0 }
 0x665   :  { %v6012_v63 = vpack.i.bf16 %v6474_v62, %v6472_v58  ;;  %v5521_v1 = vpop.f32.mrb[13].mxu0 }
 0x666   :  { %v563_v2 = vpop.f32.mrb[14].mxu0 }
 0x667   :  { %v5522_v6 = vpop.f32.mrb[15].mxu0 }
 0x668   :  { %v610_v7 = vpop.f32.mrb[20].mxu1 }
 0x669   :  { %v666_v8 = vmul.f32 0.35355338, %v610_v7  ;;  %v5527_v10 = vpop.f32.mrb[21].mxu1 }
 0x66a   :  { %v613_v12 = vpop.f32.mrb[22].mxu1 }
 0x66b   :  { %v5528_v13 = vpop.f32.mrb[23].mxu1  ;;  %v668_v15 = vadd.f32 %v666_v8, %v6390_v24 }
 0x66c   :  { %v660_v16 = vpop.f32.mrb[16].mxu0 }
 0x66d   :  { %v667_v17 = vmul.f32 0.35355338, %v660_v16  ;;  %v5533_v18 = vpop.f32.mrb[17].mxu0  ;;  %v670_v19 = vsel %vm122_vm2, %v668_v15, -inf }
 0x66e   :  { %v663_v20 = vpop.f32.mrb[18].mxu0  ;;  %671 = vmax.xlane.f32.xlu0 %v670_v19 }
 0x66f   :  { %v5534_v21 = vpop.f32.mrb[19].mxu0  ;;  %v669_v22 = vadd.f32 %v667_v17, %v6390_v24 }
 0x671   :  { %v673_v23 = vsel %vm122_vm2, %v669_v22, -inf }
 0x672   :  { %674 = vmax.xlane.f32.xlu1 %v673_v23 }
 0x683   :  { %694 = vrot.lane.b32.xlu1 %v6370_v11, %s6276_s29 }
 0x687   :  { %792 = vrot.lane.b32.xlu1 %v6370_v11, %s6277_s30 }
 0x68b   :  { %842 = vrot.lane.b32.xlu1 %v6374_v14, %s6277_s30 }
 0x68f   :  { %840 = vrot.lane.b32.xlu1 %v6374_v14, %s6278_s11 }
 0x6fb   :  { %v672_v25 = vpop.xlane.xlu0 %671 }
 0x6fc   :  { %v676_v26 = vsub.f32 %v668_v15, %v672_v25 }
 0x6fe   :  { %v678_v27 = vmul.f32 1.442695, %v676_v26 }
 0x6ff   :  { %v675_v28 = vpop.xlane.xlu1 %674 }
 0x700   :  { %6126 = vpow2.f32 %v678_v27  ;;  %v677_v29 = vsub.f32 %v669_v22, %v675_v28 }
 0x702   :  { %v680_v30 = vmul.f32 1.442695, %v677_v29 }
 0x703   :  { %v695_v31 = vpop.permute.xlu1 %694 }
 0x704   :  { %6128 = vpow2.f32 %v680_v30  ;;  %v700_v32 = vsel %vm250_vm4, %v695_v31, 0 }
 0x705   :  { %5536 = vmatpush3.bf16.msra.mxu1 %v700_v32 }
 0x706   :  { %5547 = vmatprep.subr.bf16.mxu1 %v6266_v0 }
 0x707   :  { %v793_v42 = vpop.permute.xlu1 %792 }
 0x708   :  { %v798_v46 = vsel %vm122_vm2, %v793_v42, 0 }
 0x70a   :  { %v6127_v33 = vpop.eup %6126 }
 0x70b   :  { %v682_v34 = vsel %vm122_vm2, %v6127_v33, 0.0  ;;  %v843_v48 = vpop.permute.xlu1 %842 }
 0x70c   :  { %683 = vadd.xlane.f32.xlu0 %v682_v34  ;;  %v848_v50 = vsel %vm122_vm2, %v843_v48, 0 }
 0x70e   :  { %v6129_v35 = vpop.eup %6128 }
 0x70f   :  { %v685_v36 = vsel %vm122_vm2, %v6129_v35, 0.0  ;;  %v841_v52 = vpop.permute.xlu1 %840 }
 0x710   :  { %686 = vadd.xlane.f32.xlu0 %v685_v36 }
 0x726   :  { %742 = vrot.lane.b32.xlu0 %v6374_v14, %s6276_s29 }
 0x72a   :  { %790 = vrot.lane.b32.xlu0 %v6370_v11, %s6278_s11 }
 0x799   :  { %v684_v37 = vpop.xlane.xlu0 %683 }
 0x79a   :  { %6130 = vrcp.f32 %v684_v37 }
 0x79d   :  { %v687_v38 = vpop.xlane.xlu0 %686 }
 0x79e   :  { %6132 = vrcp.f32 %v687_v38 }
 0x7a1   :  { %v743_v39 = vpop.permute.xlu0 %742 }
 0x7a2   :  { %v748_v40 = vsel %vm250_vm4, %v743_v39, 0 }
 0x7a3   :  { %5542 = vmatpush3.bf16.msra.mxu0 %v748_v40  ;;  %v6074_v40 = vld [vmem:[%s7401_s3] sm:$0xff]  }
 0x7a4   :  { %v6131_v41 = vpop.eup %6130  ;;  %5553 = vmatprep.subr.bf16.mxu0 %v6266_v0 }
 0x7a5   :  { %v690_v43 = vmul.f32 %v6131_v41, %v6127_v33  ;;  %v791_v51 = vpop.permute.xlu0 %790  ;;  %v6075_v41 = vld [vmem:[%s7401_s3 + $0x8] sm:$0xff]  }
 0x7a7   :  { %v692_v44 = vpack.c.bf16 %v690_v43, %v690_v43 }
 0x7a8   :  { %v6133_v45 = vpop.eup %6132 }
 0x7a9   :  { %5538 = vmatmul.mubr.msk.bf16.vlgmr.msra.gmra.mrb[24].mxu1 %vm122_vm2, %v692_v44  ;;  %v691_v47 = vmul.f32 %v6133_v45, %v6129_v35 }
 0x7aa   :  { %5548 = vmatpush3.bf16.xpose.msra.mxu1 %v798_v46  ;;  %5549 = vmatprep.mubr.msk.bf16.mxu1 %vm6267_vm0, %v6266_v0 }
 0x7ab   :  { %v693_v49 = vpack.c.bf16 %v691_v47, %v691_v47  ;;  %5559 = vmatprep.subr.bf16.mxu1 %v6266_v0 }
 0x7ad   :  { %5544 = vmatmul.mubr.msk.bf16.vlgmr.msra.gmra.mrb[20].mxu0 %vm122_vm2, %v693_v49 }
 0x7ae   :  { %5554 = vmatpush3.bf16.xpose.msra.mxu0 %v848_v50  ;;  %5555 = vmatprep.mubr.msk.bf16.mxu0 %vm6267_vm0, %v6266_v0 }
 0x7af   :  { %5565 = vmatprep.subr.bf16.mxu0 %v6266_v0 }
 0x7b1   :  { %5550 = vmatmul.mubr.msk.bf16.vlgmr.msra.gmra.mrb[28].mxu1 %vm122_vm2, %v791_v51 }
 0x7b2   :  { %5561 = vmatprep.mubr.msk.bf16.mxu1 %vm6267_vm0, %v6266_v0 }
 0x7b5   :  { %5556 = vmatmul.mubr.msk.bf16.vlgmr.msra.gmra.mrb[24].mxu0 %vm122_vm2, %v841_v52 }
 0x7b6   :  { %5567 = vmatprep.mubr.msk.bf16.mxu0 %vm6267_vm0, %v6266_v0 }
 0x87c   :  { %v736_v53 = vpop.f32.mrb[24].mxu1 }
 0x87d   :  { %v5539_v54 = vpop.f32.mrb[25].mxu1 }
 0x87e   :  { %v739_v55 = vpop.f32.mrb[26].mxu1 }
 0x87f   :  { %v5540_v56 = vpop.f32.mrb[27].mxu1 }
 0x880   :  { %v784_v57 = vpop.f32.mrb[20].mxu0 }
 0x881   :  { %v6017_v59 = vpack.i.bf16 %v784_v57, %v736_v53  ;;  %v5545_v60 = vpop.f32.mrb[21].mxu0 }
 0x882   :  { %v787_v61 = vpop.f32.mrb[22].mxu0 }
 0x883   :  { %v5546_v1 = vpop.f32.mrb[23].mxu0 }
 0x884   :  { %v834_v2 = vpop.f32.mrb[28].mxu1 }
 0x885   :  { %v890_v6 = vmul.f32 0.35355338, %v834_v2  ;;  %v5551_v7 = vpop.f32.mrb[29].mxu1 }
 0x886   :  { %v837_v8 = vpop.f32.mrb[30].mxu1 }
 0x887   :  { %v5552_v10 = vpop.f32.mrb[31].mxu1  ;;  %v892_v12 = vadd.f32 %v890_v6, %v6390_v24 }
 0x888   :  { %v884_v13 = vpop.f32.mrb[24].mxu0 }
 0x889   :  { %v891_v15 = vmul.f32 0.35355338, %v884_v13  ;;  %v5557_v16 = vpop.f32.mrb[25].mxu0  ;;  %v894_v17 = vsel %vm122_vm2, %v892_v12, -inf }
 0x88a   :  { %v887_v18 = vpop.f32.mrb[26].mxu0  ;;  %895 = vmax.xlane.f32.xlu0 %v894_v17 }
 0x88b   :  { %v5558_v19 = vpop.f32.mrb[27].mxu0  ;;  %v893_v20 = vadd.f32 %v891_v15, %v6390_v24 }
 0x88d   :  { %v897_v21 = vsel %vm122_vm2, %v893_v20, -inf }
 0x88e   :  { %898 = vmax.xlane.f32.xlu1 %v897_v21 }
 0x89f   :  { %918 = vrot.lane.b32.xlu1 %v6370_v11, %s6279_s12 }
 0x8a3   :  { %6013 = vrot.lane.b32.xlu1 %v6012_v63, %s6280_s13 }
 0x8a7   :  { %6018 = vrot.lane.b32.xlu1 %v6017_v59, %s6281_s14 }
 0x917   :  { %v896_v22 = vpop.xlane.xlu0 %895 }
 0x918   :  { %v900_v23 = vsub.f32 %v892_v12, %v896_v22  ;;  %v6076_v22 = vld [vmem:[%s7402_s4] sm:$0xff]  }
 0x91a   :  { %v902_v25 = vmul.f32 1.442695, %v900_v23  ;;  %v6077_v23 = vld [vmem:[%s7402_s4 + $0x8] sm:$0xff]  }
 0x91b   :  { %v899_v26 = vpop.xlane.xlu1 %898 }
 0x91c   :  { %6134 = vpow2.f32 %v902_v25  ;;  %v901_v27 = vsub.f32 %v893_v20, %v899_v26 }
 0x91e   :  { %v904_v28 = vmul.f32 1.442695, %v901_v27 }
 0x91f   :  { %v919_v29 = vpop.permute.xlu1 %918 }
 0x920   :  { %6136 = vpow2.f32 %v904_v28  ;;  %v924_v11 = vsel %vm250_vm4, %v919_v29, 0 }
 0x921   :  { %5560 = vmatpush3.bf16.msra.mxu1 %v924_v11 }
 0x922   :  { %5571 = vmatprep.subr.bf16.mxu1 %v6266_v0 }
 0x923   :  { %v6014_v51 = vpop.permute.xlu1 %6013 }
 0x924   :  { %v6016_v53 = vunpack.i.h.bf16 %v6014_v51  ;;  %v6015_v54 = vunpack.i.l.bf16 %v6014_v51 }
 0x926   :  { %v6135_v30 = vpop.eup %6134  ;;  %v1039_v59 = vsel %vm122_vm2, %v6432_v9, %v6016_v53  ;;  %v1038_v60 = vsel %vm122_vm2, %v6430_v5, %v6015_v54  ;;  %v5104_v5 = vld [vmem:[%s7400_s9 + $0x1] ss:$0 sm:$0xff] }
 0x927   :  { %v906_v58 = vsel %vm122_vm2, %v6135_v30, 0.0  ;;  %v6019_v52 = vpop.permute.xlu1 %6018 }
 0x928   :  { %907 = vadd.xlane.f32.xlu0 %v906_v58  ;;  %v6021_v55 = vunpack.i.h.bf16 %v6019_v52  ;;  %v6020_v56 = vunpack.i.l.bf16 %v6019_v52 }
 0x92a   :  { %v6137_v62 = vpop.eup %6136  ;;  %v1042_v2 = vsel %vm1040_vm5, %v1039_v59, %v6021_v55  ;;  %v1041_v6 = vsel %vm1040_vm5, %v1038_v60, %v6020_v56 }
 0x92b   :  { %v909_v63 = vsel %vm122_vm2, %v6137_v62, 0.0 }
 0x92c   :  { %910 = vadd.xlane.f32.xlu0 %v909_v63 }
 0x942   :  { %966 = vrot.lane.b32.xlu0 %v6374_v14, %s6279_s12 }
 0x9b5   :  { %v908_v31 = vpop.xlane.xlu0 %907 }
 0x9b6   :  { %6138 = vrcp.f32 %v908_v31 }
 0x9b9   :  { %v911_v32 = vpop.xlane.xlu0 %910 }
 0x9ba   :  { %6140 = vrcp.f32 %v911_v32 }
 0x9bd   :  { %v967_v33 = vpop.permute.xlu0 %966 }
 0x9be   :  { %v972_v34 = vsel %vm250_vm4, %v967_v33, 0 }
 0x9bf   :  { %5566 = vmatpush3.bf16.msra.mxu0 %v972_v34 }
 0x9c0   :  { %v6139_v35 = vpop.eup %6138  ;;  %5579 = vmatprep.subr.bf16.mxu0 %v6266_v0 }
 0x9c1   :  { %v914_v36 = vmul.f32 %v6139_v35, %v6135_v30 }
 0x9c3   :  { %v916_v37 = vpack.c.bf16 %v914_v36, %v914_v36 }
 0x9c4   :  { %v6141_v38 = vpop.eup %6140 }
 0x9c5   :  { %5562 = vmatmul.mubr.msk.bf16.vlgmr.msra.gmra.mrb[32].mxu1 %vm122_vm2, %v916_v37  ;;  %v915_v39 = vmul.f32 %v6141_v38, %v6137_v62  ;;  %v5110_v62 = vld [vmem:[%s7400_s9 + $0x2] ss:$0 sm:$0xff]  ;;  %v39_v38 = vld [vmem:[%s7403_s1 + $0x8] sm:$0xff] }
 0x9c6   :  { %5575 = vmatprep.mubr.msk.bf16.mxu1 %vm6267_vm0, %v6266_v0  ;;  %5572 = vmatpush3.bf16.msra.mxu1 %v6074_v40  ;;  %v38_v37 = vld [vmem:[%s7403_s1] sm:$0xff] }
 0x9c7   :  { %v917_v14 = vpack.c.bf16 %v915_v39, %v915_v39  ;;  %5573 = vmatprep.subr.bf16.mxu1 %v6266_v0 }
 0x9c9   :  { %5568 = vmatmul.mubr.msk.bf16.vlgmr.msra.gmra.mrb[28].mxu0 %vm122_vm2, %v917_v14  ;;  %v6591_v14 = vpack.c.bf16 %v39_v38, %v38_v37 }
 0x9ca   :  { %5583 = vmatprep.mubr.msk.bf16.mxu0 %vm6267_vm0, %v6266_v0  ;;  %5574 = vmatpush3.bf16.msra.mxu1 %v6075_v41  ;;  %v5108_v41 = vld [vmem:[%s7400_s9 + $0x4] ss:$0 sm:$0xff] }
 0x9cb   :  { %5587 = vmatprep.subr.bf16.mxu1 %v6266_v0  ;;  %5580 = vmatpush3.bf16.msra.mxu0 %v6076_v22 }
 0x9cc   :  { %5581 = vmatprep.subr.bf16.mxu0 %v6266_v0 }
 0x9cf   :  { %5582 = vmatpush3.bf16.msra.mxu0 %v6077_v23 }
 0x9d0   :  { %5595 = vmatprep.subr.bf16.mxu0 %v6266_v0 }
 0xa98   :  { %v960_v42 = vpop.f32.mrb[32].mxu1 }
 0xa99   :  { %v5563_v43 = vpop.f32.mrb[33].mxu1 }
 0xa9a   :  { %v963_v44 = vpop.f32.mrb[34].mxu1 }
 0xa9b   :  { %v5564_v45 = vpop.f32.mrb[35].mxu1 }
 0xa9c   :  { %v1008_v46 = vpop.f32.mrb[28].mxu0 }
 0xa9d   :  { %v6022_v47 = vpack.i.bf16 %v1008_v46, %v960_v42  ;;  %v5569_v48 = vpop.f32.mrb[29].mxu0  ;;  %v5109_v46 = vld [vmem:[%s7400_s9 + $0x7] ss:$0 sm:$0xff] }
 0xa9e   :  { %v1011_v49 = vpop.f32.mrb[30].mxu0 }
 0xa9f   :  { %v5570_v50 = vpop.f32.mrb[31].mxu0  ;;  %6023 = vrot.lane.b32.xlu0 %v6022_v47, %s6282_s19 }
 0xb11   :  { %v6024_v57 = vpop.permute.xlu0 %6023 }
 0xb12   :  { %v6026_v61 = vunpack.i.h.bf16 %v6024_v57  ;;  %v6025_v1 = vunpack.i.l.bf16 %v6024_v57 }
 0xb14   :  { %v1045_v7 = vsel %vm1043_vm6, %v1042_v2, %v6026_v61  ;;  %v1044_v8 = vsel %vm1043_vm6, %v1041_v6, %v6025_v1 }
 0xb15   :  { %v1046_v10 = vpack.c.bf16 %v1045_v7, %v1044_v8 }
 0xb17   :  { %5576 = vmatmul.mubr.msk.bf16.vlgmr.msra.gmra.mrb[36].mxu1 %vm69_vm1, %v1046_v10 }
 0xb18   :  { %5591 = vmatprep.mubr.msk.bf16.mxu1 %vm6267_vm0, %v6266_v0 }
 0xbea   :  { %v1105_v9 = vpop.f32.mrb[36].mxu1 }
 0xbeb   :  { %v1106_v12 = vadd.f32 %v5104_v5, %v1105_v9  ;;  %v5577_v13 = vpop.f32.mrb[37].mxu1 }
 0xbec   :  { %v1108_v15 = vpop.f32.mrb[38].mxu1 }
 0xbed   :  { %v1109_v16 = vadd.f32 %v5104_v5, %v1108_v15  ;;  %v5578_v17 = vpop.f32.mrb[39].mxu1  ;;  %v1112_v18 = vadd.f32 %v1106_v12, %v6353_v3 }
 0xbef   :  { %v1116_v19 = vsel %vm69_vm1, %v1112_v18, 0.0  ;;  %v1113_v20 = vadd.f32 %v1109_v16, %v6358_v4 }
 0xbf0   :  { %1117 = vadd.xlane.f32.xlu1 %v1116_v19 }
 0xbf1   :  { %v1119_v21 = vsel %vm69_vm1, %v1113_v20, 0.0 }
 0xbf2   :  { %1120 = vadd.xlane.f32.xlu0 %v1119_v21 }
 0xc7d   :  { %v1118_v3 = vpop.xlane.xlu1 %1117 }
 0xc7e   :  { %v1123_v4 = vmul.f32 0.03125, %v1118_v3 }
 0xc7f   :  { %v1121_v25 = vpop.xlane.xlu0 %1120 }
 0xc80   :  { %v1125_v26 = vsub.f32 %v1112_v18, %v1123_v4  ;;  %v1124_v27 = vmul.f32 0.03125, %v1121_v25 }
 0xc82   :  { %v1126_v28 = vsub.f32 %v1113_v20, %v1124_v27  ;;  %v1127_v29 = vmul.f32 %v1125_v26, %v1125_v26 }
 0xc84   :  { %v1129_v11 = vsel %vm69_vm1, %v1127_v29, 0.0  ;;  %v1128_v30 = vmul.f32 %v1126_v28, %v1126_v28 }
 0xc85   :  { %1130 = vadd.xlane.f32.xlu0 %v1129_v11 }
 0xc86   :  { %v1132_v58 = vsel %vm69_vm1, %v1128_v30, 0.0 }
 0xc87   :  { %1133 = vadd.xlane.f32.xlu1 %v1132_v58 }
 0xc98   :  { %1223 = vrot.lane.b32.xlu1 %v6077_v23, %s6268_s0 }
 0xc9b   :  { %1221 = vrot.lane.b32.xlu0 %v6076_v22, %s6268_s0 }
 0xc9c   :  { %1228 = vrot.lane.b32.xlu1 %v5110_v62, %s6268_s0 }
 0xd12   :  { %v1131_v63 = vpop.xlane.xlu0 %1130 }
 0xd13   :  { %v1135_v31 = vmul.f32 0.03125, %v1131_v63 }
 0xd14   :  { %v1134_v32 = vpop.xlane.xlu1 %1133 }
 0xd15   :  { %v1137_v33 = vadd.f32 1e-05, %v1135_v31  ;;  %v1136_v34 = vmul.f32 0.03125, %v1134_v32 }
 0xd16   :  { %v1222_v35 = vpop.permute.xlu0 %1221 }
 0xd17   :  { %6142 = vrsqrt.f32 %v1137_v33  ;;  %v1138_v36 = vadd.f32 1e-05, %v1136_v34  ;;  %5588 = vmatpush3.bf16.msra.mxu1 %v1222_v35 }
 0xd18   :  { %v1224_v39 = vpop.permute.xlu1 %1223  ;;  %5589 = vmatprep.subr.bf16.mxu1 %v6266_v0 }
 0xd19   :  { %6144 = vrsqrt.f32 %v1138_v36 }
 0xd1b   :  { %5590 = vmatpush3.bf16.msra.mxu1 %v1224_v39 }
 0xd1c   :  { %5601 = vmatprep.subr.bf16.mxu1 %v6266_v0  ;;  %v1229_v51 = vpop.permute.xlu1 %1228 }
 0xd1e   :  { %5592 = vmatmul.mubr.msk.bf16.vlgmr.msra.gmra.mrb[40].mxu1 %vm69_vm1, %v6591_v14 }
 0xd1f   :  { %5603 = vmatprep.mubr.msk.bf16.mxu1 %vm6267_vm0, %v6266_v0 }
 0xd21   :  { %v6143_v40 = vpop.eup %6142 }
 0xd22   :  { %v1141_v42 = vmul.f32 %v6143_v40, %v1125_v26 }
 0xd23   :  { %v6145_v43 = vpop.eup %6144 }
 0xd24   :  { %v1147_v44 = vmul.f32 %v5108_v41, %v1141_v42  ;;  %v1142_v45 = vmul.f32 %v6145_v43, %v1126_v28 }
 0xd26   :  { %v1148_v47 = vmul.f32 %v5108_v41, %v1142_v45  ;;  %v6604_v48 = vadd.f32 %v5109_v46, %v1147_v44 }
 0xd28   :  { %v6606_v49 = vadd.f32 %v5109_v46, %v1148_v47 }
 0xd2a   :  { %v1155_v50 = vpack.c.bf16 %v6606_v49, %v6604_v48 }
 0xd2c   :  { %5584 = vmatmul.mubr.msk.bf16.vlgmr.msra.gmra.mrb[32].mxu0 %vm69_vm1, %v1155_v50 }
 0xd2d   :  { %5597 = vmatprep.mubr.msk.bf16.mxu0 %vm6267_vm0, %v6266_v0 }
 0xdf1   :  { %v1268_v52 = vpop.f32.mrb[40].mxu1 }
 0xdf2   :  { %v5593_v53 = vpop.f32.mrb[41].mxu1  ;;  %v1269_v54 = vadd.f32 %v1268_v52, %v1229_v51 }
 0xdf3   :  { %v1271_v55 = vpop.f32.mrb[42].mxu1 }
 0xdf4   :  { %v1272_v56 = vadd.f32 %v1271_v55, %v1229_v51  ;;  %v6613_v57 = vpack.c.bf16 %v1269_v54, %v1269_v54  ;;  %v5594_v59 = vpop.f32.mrb[43].mxu1 }
 0xdf6   :  { %v6615_v60 = vpack.c.bf16 %v1272_v56, %v1272_v56  ;;  %v1291_v61 = vsel %vm122_vm2, %v6613_v57, 0 }
 0xdf7   :  { %5596 = vmatpush3.bf16.xpose.msra.mxu0 %v1291_v61 }
 0xdf8   :  { %v1337_v1 = vsel %vm122_vm2, %v6615_v60, 0  ;;  %5607 = vmatprep.subr.bf16.mxu0 %v6266_v0 }
 0xdf9   :  { %5602 = vmatpush3.bf16.xpose.msra.mxu1 %v1337_v1 }
 0xdfa   :  { %5613 = vmatprep.subr.bf16.mxu1 %v6266_v0 }
 0xdff   :  { %v1214_v2 = vpop.f32.mrb[32].mxu0 }
 0xe00   :  { %v1215_v6 = vadd.f32 %v5110_v62, %v1214_v2  ;;  %v5585_v7 = vpop.f32.mrb[33].mxu0 }
 0xe01   :  { %v1217_v8 = vpop.f32.mrb[34].mxu0 }
 0xe02   :  { %v6623_v10 = vpack.c.bf16 %v1215_v6, %v1215_v6  ;;  %v1218_v5 = vadd.f32 %v5110_v62, %v1217_v8  ;;  %v5586_v9 = vpop.f32.mrb[35].mxu0 }
 0xe04   :  { %v6625_v12 = vpack.c.bf16 %v1218_v5, %v1218_v5  ;;  %5598 = vmatmul.mubr.msk.bf16.vlgmr.msra.gmra.mrb[36].mxu0 %vm122_vm2, %v6623_v10 }
 0xe05   :  { %5609 = vmatprep.mubr.msk.bf16.mxu0 %vm6267_vm0, %v6266_v0 }
 0xe06   :  { %5604 = vmatmul.mubr.msk.bf16.vlgmr.msra.gmra.mrb[44].mxu1 %vm122_vm2, %v6625_v12 }
 0xe07   :  { %5615 = vmatprep.mubr.msk.bf16.mxu1 %vm6267_vm0, %v6266_v0 }
 0xed7   :  { %v1327_v13 = vpop.f32.mrb[36].mxu0 }
 0xed8   :  { %v1379_v15 = vmul.f32 0.35355338, %v1327_v13  ;;  %v5599_v16 = vpop.f32.mrb[37].mxu0 }
 0xed9   :  { %v1330_v17 = vpop.f32.mrb[38].mxu0  ;;  %v1373_v18 = vpop.f32.mrb[44].mxu1 }
 0xeda   :  { %v1380_v19 = vmul.f32 0.35355338, %v1373_v18  ;;  %v5600_v20 = vpop.f32.mrb[39].mxu0  ;;  %v5605_v21 = vpop.f32.mrb[45].mxu1  ;;  %v1381_v22 = vsel %vm122_vm2, %v1379_v15, -inf }
 0xedb   :  { %1382 = vmax.xlane.f32.xlu0 %v1381_v22  ;;  %v1376_v23 = vpop.f32.mrb[46].mxu1 }
 0xedc   :  { %v5606_v3 = vpop.f32.mrb[47].mxu1  ;;  %v1384_v4 = vsel %vm122_vm2, %v1380_v19, -inf }
 0xedd   :  { %1385 = vmax.xlane.f32.xlu1 %v1384_v4 }
 0xeee   :  { %1405 = vrot.lane.b32.xlu1 %v6613_v57, %s6268_s0 }
 0xef2   :  { %1503 = vrot.lane.b32.xlu1 %v6613_v57, %s6272_s25 }
 0xef6   :  { %1553 = vrot.lane.b32.xlu1 %v6615_v60, %s6272_s25 }
 0xefa   :  { %1551 = vrot.lane.b32.xlu1 %v6625_v12, %s6272_s25 }
 0xf68   :  { %v1383_v25 = vpop.xlane.xlu0 %1382 }
 0xf69   :  { %v1387_v26 = vsub.f32 %v1379_v15, %v1383_v25 }
 0xf6a   :  { %v1386_v27 = vpop.xlane.xlu1 %1385 }
 0xf6b   :  { %v1389_v28 = vmul.f32 1.442695, %v1387_v26  ;;  %v1388_v29 = vsub.f32 %v1380_v19, %v1386_v27 }
 0xf6d   :  { %6146 = vpow2.f32 %v1389_v28  ;;  %v1391_v11 = vmul.f32 1.442695, %v1388_v29 }
 0xf6e   :  { %v1406_v30 = vpop.permute.xlu1 %1405 }
 0xf6f   :  { %6148 = vpow2.f32 %v1391_v11  ;;  %v1411_v58 = vsel %vm250_vm4, %v1406_v30, 0 }
 0xf70   :  { %5608 = vmatpush3.bf16.msra.mxu0 %v1411_v58 }
 0xf71   :  { %5619 = vmatprep.subr.bf16.mxu0 %v6266_v0 }
 0xf72   :  { %v1504_v38 = vpop.permute.xlu1 %1503 }
 0xf73   :  { %v1509_v42 = vsel %vm122_vm2, %v1504_v38, 0 }
 0xf76   :  { %v1554_v44 = vpop.permute.xlu1 %1553 }
 0xf77   :  { %v6147_v62 = vpop.eup %6146  ;;  %v1559_v46 = vsel %vm122_vm2, %v1554_v44, 0 }
 0xf78   :  { %v1393_v63 = vsel %vm122_vm2, %v6147_v62, 0.0 }
 0xf79   :  { %v6149_v31 = vpop.eup %6148  ;;  %1394 = vadd.xlane.f32.xlu0 %v1393_v63 }
 0xf7a   :  { %v1396_v32 = vsel %vm122_vm2, %v6149_v31, 0.0  ;;  %v1552_v50 = vpop.permute.xlu1 %1551 }
 0xf7d   :  { %1397 = vadd.xlane.f32.xlu0 %v1396_v32 }
 0xf93   :  { %1453 = vrot.lane.b32.xlu0 %v6615_v60, %s6268_s0 }
 0xf97   :  { %1501 = vrot.lane.b32.xlu0 %v6623_v10, %s6272_s25 }
0x1006   :  { %v1395_v33 = vpop.xlane.xlu0 %1394 }
0x1007   :  { %6150 = vrcp.f32 %v1395_v33 }
0x100a   :  { %v1398_v34 = vpop.xlane.xlu0 %1397 }
0x100b   :  { %6152 = vrcp.f32 %v1398_v34 }
0x100e   :  { %v1454_v35 = vpop.permute.xlu0 %1453 }
0x100f   :  { %v1459_v36 = vsel %vm250_vm4, %v1454_v35, 0 }
0x1010   :  { %5614 = vmatpush3.bf16.msra.mxu1 %v1459_v36 }
0x1011   :  { %v6151_v37 = vpop.eup %6150  ;;  %5625 = vmatprep.subr.bf16.mxu1 %v6266_v0 }
0x1012   :  { %v1401_v39 = vmul.f32 %v6151_v37, %v6147_v62  ;;  %v1502_v47 = vpop.permute.xlu0 %1501 }
0x1014   :  { %v1403_v40 = vpack.c.bf16 %v1401_v39, %v1401_v39 }
0x1015   :  { %v6153_v41 = vpop.eup %6152 }
0x1016   :  { %5610 = vmatmul.mubr.msk.bf16.vlgmr.msra.gmra.mrb[40].mxu0 %vm122_vm2, %v1403_v40  ;;  %v1402_v43 = vmul.f32 %v6153_v41, %v6149_v31 }
0x1017   :  { %5620 = vmatpush3.bf16.xpose.msra.mxu0 %v1509_v42  ;;  %5621 = vmatprep.mubr.msk.bf16.mxu0 %vm6267_vm0, %v6266_v0 }
0x1018   :  { %v1404_v45 = vpack.c.bf16 %v1402_v43, %v1402_v43  ;;  %5631 = vmatprep.subr.bf16.mxu0 %v6266_v0 }
0x101a   :  { %5616 = vmatmul.mubr.msk.bf16.vlgmr.msra.gmra.mrb[48].mxu1 %vm122_vm2, %v1404_v45 }
0x101b   :  { %5626 = vmatpush3.bf16.xpose.msra.mxu1 %v1559_v46  ;;  %5627 = vmatprep.mubr.msk.bf16.mxu1 %vm6267_vm0, %v6266_v0 }
0x101c   :  { %5637 = vmatprep.subr.bf16.mxu1 %v6266_v0 }
0x101e   :  { %5622 = vmatmul.mubr.msk.bf16.vlgmr.msra.gmra.mrb[44].mxu0 %vm122_vm2, %v1502_v47 }
0x101f   :  { %5633 = vmatprep.mubr.msk.bf16.mxu0 %vm6267_vm0, %v6266_v0 }
0x1022   :  { %5628 = vmatmul.mubr.msk.bf16.vlgmr.msra.gmra.mrb[52].mxu1 %vm122_vm2, %v1552_v50 }
0x1023   :  { %5639 = vmatprep.mubr.msk.bf16.mxu1 %vm6267_vm0, %v6266_v0 }
0x10e9   :  { %v6671_v51 = vpop.f32.mrb[40].mxu0 }
0x10ea   :  { %v5611_v52 = vpop.f32.mrb[41].mxu0 }
0x10eb   :  { %v1450_v53 = vpop.f32.mrb[42].mxu0 }
0x10ec   :  { %v5612_v54 = vpop.f32.mrb[43].mxu0 }
0x10ed   :  { %v6673_v55 = vpop.f32.mrb[48].mxu1 }
0x10ee   :  { %v5617_v56 = vpop.f32.mrb[49].mxu1 }
0x10ef   :  { %v1498_v59 = vpop.f32.mrb[50].mxu1 }
0x10f0   :  { %v5618_v61 = vpop.f32.mrb[51].mxu1 }
0x10f1   :  { %v1545_v1 = vpop.f32.mrb[44].mxu0 }
0x10f2   :  { %v1601_v2 = vmul.f32 0.35355338, %v1545_v1  ;;  %v5623_v6 = vpop.f32.mrb[45].mxu0 }
0x10f3   :  { %v1548_v7 = vpop.f32.mrb[46].mxu0 }
0x10f4   :  { %v5624_v8 = vpop.f32.mrb[47].mxu0  ;;  %v1603_v5 = vsel %vm122_vm2, %v1601_v2, -inf }
0x10f5   :  { %1604 = vmax.xlane.f32.xlu0 %v1603_v5  ;;  %v1595_v9 = vpop.f32.mrb[52].mxu1 }
0x10f6   :  { %v1602_v13 = vmul.f32 0.35355338, %v1595_v9  ;;  %v5629_v15 = vpop.f32.mrb[53].mxu1 }
0x10f7   :  { %v1598_v16 = vpop.f32.mrb[54].mxu1 }
0x10f8   :  { %v5630_v17 = vpop.f32.mrb[55].mxu1  ;;  %v1606_v18 = vsel %vm122_vm2, %v1602_v13, -inf }
0x10f9   :  { %1607 = vmax.xlane.f32.xlu1 %v1606_v18 }
0x110a   :  { %1627 = vrot.lane.b32.xlu1 %v6613_v57, %s6271_s24 }
0x110e   :  { %1725 = vrot.lane.b32.xlu1 %v6613_v57, %s6275_s28 }
0x1112   :  { %1775 = vrot.lane.b32.xlu1 %v6615_v60, %s6275_s28 }
0x1116   :  { %1773 = vrot.lane.b32.xlu1 %v6625_v12, %s6275_s28 }
0x1182   :  { %v1605_v19 = vpop.xlane.xlu0 %1604 }
0x1183   :  { %v1609_v20 = vsub.f32 %v1601_v2, %v1605_v19 }
0x1185   :  { %v1611_v21 = vmul.f32 1.442695, %v1609_v20 }
0x1186   :  { %v1608_v22 = vpop.xlane.xlu1 %1607 }
0x1187   :  { %6154 = vpow2.f32 %v1611_v21  ;;  %v1610_v23 = vsub.f32 %v1602_v13, %v1608_v22 }
0x1189   :  { %v1613_v3 = vmul.f32 1.442695, %v1610_v23 }
0x118a   :  { %v1628_v4 = vpop.permute.xlu1 %1627 }
0x118b   :  { %6156 = vpow2.f32 %v1613_v3  ;;  %v1633_v25 = vsel %vm250_vm4, %v1628_v4, 0 }
0x118c   :  { %5632 = vmatpush3.bf16.msra.mxu0 %v1633_v25 }
0x118d   :  { %5643 = vmatprep.subr.bf16.mxu0 %v6266_v0 }
0x118e   :  { %v1726_v31 = vpop.permute.xlu1 %1725 }
0x118f   :  { %v1731_v35 = vsel %vm122_vm2, %v1726_v31, 0 }
0x1191   :  { %v6155_v26 = vpop.eup %6154 }
0x1192   :  { %v1615_v27 = vsel %vm122_vm2, %v6155_v26, 0.0  ;;  %v1776_v37 = vpop.permute.xlu1 %1775 }
0x1193   :  { %1616 = vadd.xlane.f32.xlu0 %v1615_v27  ;;  %v1781_v39 = vsel %vm122_vm2, %v1776_v37, 0 }
0x1195   :  { %v6157_v28 = vpop.eup %6156 }
0x1196   :  { %v1618_v29 = vsel %vm122_vm2, %v6157_v28, 0.0  ;;  %v1774_v41 = vpop.permute.xlu1 %1773 }
0x1197   :  { %1619 = vadd.xlane.f32.xlu0 %v1618_v29 }
0x11ad   :  { %1675 = vrot.lane.b32.xlu0 %v6615_v60, %s6271_s24 }
0x11b1   :  { %1723 = vrot.lane.b32.xlu0 %v6623_v10, %s6275_s28 }
0x1220   :  { %v1617_v11 = vpop.xlane.xlu0 %1616 }
0x1221   :  { %6158 = vrcp.f32 %v1617_v11 }
0x1224   :  { %v1620_v30 = vpop.xlane.xlu0 %1619 }
0x1225   :  { %6160 = vrcp.f32 %v1620_v30 }
0x1228   :  { %v1676_v58 = vpop.permute.xlu0 %1675 }
0x1229   :  { %v1681_v62 = vsel %vm250_vm4, %v1676_v58, 0 }
0x122a   :  { %5638 = vmatpush3.bf16.msra.mxu1 %v1681_v62 }
0x122b   :  { %v6159_v63 = vpop.eup %6158  ;;  %5649 = vmatprep.subr.bf16.mxu1 %v6266_v0 }
0x122c   :  { %v1623_v32 = vmul.f32 %v6159_v63, %v6155_v26  ;;  %v1724_v40 = vpop.permute.xlu0 %1723 }
0x122e   :  { %v1625_v33 = vpack.c.bf16 %v1623_v32, %v1623_v32 }
0x122f   :  { %v6161_v34 = vpop.eup %6160 }
0x1230   :  { %5634 = vmatmul.mubr.msk.bf16.vlgmr.msra.gmra.mrb[48].mxu0 %vm122_vm2, %v1625_v33  ;;  %v1624_v36 = vmul.f32 %v6161_v34, %v6157_v28 }
0x1231   :  { %5644 = vmatpush3.bf16.xpose.msra.mxu0 %v1731_v35  ;;  %5645 = vmatprep.mubr.msk.bf16.mxu0 %vm6267_vm0, %v6266_v0 }
0x1232   :  { %v1626_v38 = vpack.c.bf16 %v1624_v36, %v1624_v36  ;;  %5655 = vmatprep.subr.bf16.mxu0 %v6266_v0 }
0x1234   :  { %5640 = vmatmul.mubr.msk.bf16.vlgmr.msra.gmra.mrb[56].mxu1 %vm122_vm2, %v1626_v38 }
0x1235   :  { %5650 = vmatpush3.bf16.xpose.msra.mxu1 %v1781_v39  ;;  %5651 = vmatprep.mubr.msk.bf16.mxu1 %vm6267_vm0, %v6266_v0 }
0x1236   :  { %5661 = vmatprep.subr.bf16.mxu1 %v6266_v0 }
0x1238   :  { %5646 = vmatmul.mubr.msk.bf16.vlgmr.msra.gmra.mrb[52].mxu0 %vm122_vm2, %v1724_v40 }
0x1239   :  { %5657 = vmatprep.mubr.msk.bf16.mxu0 %vm6267_vm0, %v6266_v0 }
0x123c   :  { %5652 = vmatmul.mubr.msk.bf16.vlgmr.msra.gmra.mrb[60].mxu1 %vm122_vm2, %v1774_v41 }
0x123d   :  { %5663 = vmatprep.mubr.msk.bf16.mxu1 %vm6267_vm0, %v6266_v0 }
0x1303   :  { %v6711_v42 = vpop.f32.mrb[48].mxu0 }
0x1304   :  { %v5635_v43 = vpop.f32.mrb[49].mxu0 }
0x1305   :  { %v1672_v44 = vpop.f32.mrb[50].mxu0 }
0x1306   :  { %v5636_v45 = vpop.f32.mrb[51].mxu0 }
0x1307   :  { %v6713_v46 = vpop.f32.mrb[56].mxu1 }
0x1308   :  { %v6027_v47 = vpack.i.bf16 %v6713_v46, %v6711_v42  ;;  %v5641_v50 = vpop.f32.mrb[57].mxu1 }
0x1309   :  { %v1720_v52 = vpop.f32.mrb[58].mxu1 }
0x130a   :  { %v5642_v53 = vpop.f32.mrb[59].mxu1 }
0x130b   :  { %v1767_v54 = vpop.f32.mrb[52].mxu0 }
0x130c   :  { %v1823_v56 = vmul.f32 0.35355338, %v1767_v54  ;;  %v5647_v59 = vpop.f32.mrb[53].mxu0 }
0x130d   :  { %v1770_v61 = vpop.f32.mrb[54].mxu0 }
0x130e   :  { %v5648_v1 = vpop.f32.mrb[55].mxu0  ;;  %v1825_v2 = vsel %vm122_vm2, %v1823_v56, -inf }
0x130f   :  { %1826 = vmax.xlane.f32.xlu0 %v1825_v2  ;;  %v1817_v6 = vpop.f32.mrb[60].mxu1 }
0x1310   :  { %v1824_v7 = vmul.f32 0.35355338, %v1817_v6  ;;  %v5653_v8 = vpop.f32.mrb[61].mxu1 }
0x1311   :  { %v1820_v5 = vpop.f32.mrb[62].mxu1 }
0x1312   :  { %v5654_v9 = vpop.f32.mrb[63].mxu1  ;;  %v1828_v13 = vsel %vm122_vm2, %v1824_v7, -inf }
0x1313   :  { %1829 = vmax.xlane.f32.xlu1 %v1828_v13 }
0x1324   :  { %1849 = vrot.lane.b32.xlu1 %v6613_v57, %s6274_s27 }
0x1328   :  { %1947 = vrot.lane.b32.xlu1 %v6613_v57, %s6278_s11 }
0x132c   :  { %1997 = vrot.lane.b32.xlu1 %v6615_v60, %s6278_s11 }
0x1330   :  { %1995 = vrot.lane.b32.xlu1 %v6625_v12, %s6278_s11 }
0x139c   :  { %v1827_v15 = vpop.xlane.xlu0 %1826 }
0x139d   :  { %v1831_v16 = vsub.f32 %v1823_v56, %v1827_v15 }
0x139f   :  { %v1833_v17 = vmul.f32 1.442695, %v1831_v16 }
0x13a0   :  { %v1830_v18 = vpop.xlane.xlu1 %1829 }
0x13a1   :  { %6162 = vpow2.f32 %v1833_v17  ;;  %v1832_v19 = vsub.f32 %v1824_v7, %v1830_v18 }
0x13a3   :  { %v1835_v20 = vmul.f32 1.442695, %v1832_v19 }
0x13a4   :  { %v1850_v21 = vpop.permute.xlu1 %1849 }
0x13a5   :  { %6164 = vpow2.f32 %v1835_v20  ;;  %v1855_v22 = vsel %vm250_vm4, %v1850_v21, 0 }
0x13a6   :  { %5656 = vmatpush3.bf16.msra.mxu0 %v1855_v22 }
0x13a7   :  { %5667 = vmatprep.subr.bf16.mxu0 %v6266_v0 }
0x13a8   :  { %v1948_v11 = vpop.permute.xlu1 %1947 }
0x13a9   :  { %v1953_v63 = vsel %vm122_vm2, %v1948_v11, 0 }
0x13ab   :  { %v6163_v23 = vpop.eup %6162 }
0x13ac   :  { %v1837_v3 = vsel %vm122_vm2, %v6163_v23, 0.0  ;;  %v1998_v31 = vpop.permute.xlu1 %1997 }
0x13ad   :  { %1838 = vadd.xlane.f32.xlu0 %v1837_v3  ;;  %v2003_v33 = vsel %vm122_vm2, %v1998_v31, 0 }
0x13af   :  { %v6165_v4 = vpop.eup %6164 }
0x13b0   :  { %v1840_v12 = vsel %vm122_vm2, %v6165_v4, 0.0  ;;  %v1996_v35 = vpop.permute.xlu1 %1995 }
0x13b1   :  { %1841 = vadd.xlane.f32.xlu0 %v1840_v12 }
0x13c7   :  { %1897 = vrot.lane.b32.xlu0 %v6615_v60, %s6274_s27 }
0x13cb   :  { %1945 = vrot.lane.b32.xlu0 %v6623_v10, %s6278_s11 }
0x143a   :  { %v1839_v25 = vpop.xlane.xlu0 %1838 }
0x143b   :  { %6166 = vrcp.f32 %v1839_v25 }
0x143e   :  { %v1842_v26 = vpop.xlane.xlu0 %1841 }
0x143f   :  { %6168 = vrcp.f32 %v1842_v26 }
0x1442   :  { %v1898_v27 = vpop.permute.xlu0 %1897 }
0x1443   :  { %v1903_v28 = vsel %vm250_vm4, %v1898_v27, 0  ;;  %v6078_v27 = vld [vmem:[%s7404_s5] sm:$0xff]  }
0x1444   :  { %5662 = vmatpush3.bf16.msra.mxu1 %v1903_v28  ;;  %v6079_v28 = vld [vmem:[%s7404_s5 + $0x8] sm:$0xff]  }
0x1445   :  { %v6167_v29 = vpop.eup %6166  ;;  %5673 = vmatprep.subr.bf16.mxu1 %v6266_v0 }
0x1446   :  { %v1845_v30 = vmul.f32 %v6167_v29, %v6163_v23  ;;  %v1946_v34 = vpop.permute.xlu0 %1945 }
0x1448   :  { %v1847_v58 = vpack.c.bf16 %v1845_v30, %v1845_v30 }
0x1449   :  { %v6169_v62 = vpop.eup %6168 }
0x144a   :  { %5658 = vmatmul.mubr.msk.bf16.vlgmr.msra.gmra.mrb[56].mxu0 %vm122_vm2, %v1847_v58  ;;  %v1846_v10 = vmul.f32 %v6169_v62, %v6165_v4 }
0x144b   :  { %5668 = vmatpush3.bf16.xpose.msra.mxu0 %v1953_v63  ;;  %5669 = vmatprep.mubr.msk.bf16.mxu0 %vm6267_vm0, %v6266_v0 }
0x144c   :  { %v1848_v32 = vpack.c.bf16 %v1846_v10, %v1846_v10  ;;  %5679 = vmatprep.subr.bf16.mxu0 %v6266_v0 }
0x144e   :  { %5664 = vmatmul.mubr.msk.bf16.vlgmr.msra.gmra.mrb[64].mxu1 %vm122_vm2, %v1848_v32 }
0x144f   :  { %5674 = vmatpush3.bf16.xpose.msra.mxu1 %v2003_v33  ;;  %5675 = vmatprep.mubr.msk.bf16.mxu1 %vm6267_vm0, %v6266_v0 }
0x1450   :  { %5685 = vmatprep.subr.bf16.mxu1 %v6266_v0 }
0x1452   :  { %5670 = vmatmul.mubr.msk.bf16.vlgmr.msra.gmra.mrb[60].mxu0 %vm122_vm2, %v1946_v34 }
0x1453   :  { %5681 = vmatprep.mubr.msk.bf16.mxu0 %vm6267_vm0, %v6266_v0 }
0x1456   :  { %5676 = vmatmul.mubr.msk.bf16.vlgmr.msra.gmra.mrb[68].mxu1 %vm122_vm2, %v1996_v35 }
0x1457   :  { %5687 = vmatprep.mubr.msk.bf16.mxu1 %vm6267_vm0, %v6266_v0 }
0x151d   :  { %v1891_v36 = vpop.f32.mrb[56].mxu0 }
0x151e   :  { %v5659_v37 = vpop.f32.mrb[57].mxu0 }
0x151f   :  { %v1894_v38 = vpop.f32.mrb[58].mxu0 }
0x1520   :  { %v5660_v39 = vpop.f32.mrb[59].mxu0 }
0x1521   :  { %v1939_v40 = vpop.f32.mrb[64].mxu1 }
0x1522   :  { %v6032_v41 = vpack.i.bf16 %v1939_v40, %v1891_v36  ;;  %v5665_v43 = vpop.f32.mrb[65].mxu1 }
0x1523   :  { %v1942_v44 = vpop.f32.mrb[66].mxu1 }
0x1524   :  { %v5666_v45 = vpop.f32.mrb[67].mxu1 }
0x1525   :  { %v1989_v50 = vpop.f32.mrb[60].mxu0 }
0x1526   :  { %v2045_v52 = vmul.f32 0.35355338, %v1989_v50  ;;  %v5671_v53 = vpop.f32.mrb[61].mxu0 }
0x1527   :  { %v1992_v54 = vpop.f32.mrb[62].mxu0 }
0x1528   :  { %v5672_v56 = vpop.f32.mrb[63].mxu0  ;;  %v2047_v59 = vsel %vm122_vm2, %v2045_v52, -inf }
0x1529   :  { %2048 = vmax.xlane.f32.xlu0 %v2047_v59  ;;  %v2039_v61 = vpop.f32.mrb[68].mxu1 }
0x152a   :  { %v2046_v1 = vmul.f32 0.35355338, %v2039_v61  ;;  %v5677_v2 = vpop.f32.mrb[69].mxu1 }
0x152b   :  { %v2042_v6 = vpop.f32.mrb[70].mxu1 }
0x152c   :  { %v5678_v7 = vpop.f32.mrb[71].mxu1  ;;  %v2050_v8 = vsel %vm122_vm2, %v2046_v1, -inf }
0x152d   :  { %2051 = vmax.xlane.f32.xlu1 %v2050_v8 }
0x153e   :  { %2071 = vrot.lane.b32.xlu1 %v6613_v57, %s6277_s30 }
0x1542   :  { %6028 = vrot.lane.b32.xlu1 %v6027_v47, %s6280_s13 }
0x1546   :  { %6033 = vrot.lane.b32.xlu1 %v6032_v41, %s6281_s14 }
0x15b6   :  { %v2049_v5 = vpop.xlane.xlu0 %2048 }
0x15b7   :  { %v2053_v9 = vsub.f32 %v2045_v52, %v2049_v5 }
0x15b9   :  { %v2055_v13 = vmul.f32 1.442695, %v2053_v9 }
0x15ba   :  { %v2052_v15 = vpop.xlane.xlu1 %2051 }
0x15bb   :  { %6170 = vpow2.f32 %v2055_v13  ;;  %v2054_v16 = vsub.f32 %v2046_v1, %v2052_v15 }
0x15bd   :  { %v2057_v17 = vmul.f32 1.442695, %v2054_v16 }
0x15be   :  { %v2072_v18 = vpop.permute.xlu1 %2071 }
0x15bf   :  { %6172 = vpow2.f32 %v2057_v17  ;;  %v2077_v19 = vsel %vm250_vm4, %v2072_v18, 0 }
0x15c0   :  { %5680 = vmatpush3.bf16.msra.mxu0 %v2077_v19 }
0x15c1   :  { %5691 = vmatprep.subr.bf16.mxu0 %v6266_v0 }
0x15c2   :  { %v6029_v33 = vpop.permute.xlu1 %6028 }
0x15c3   :  { %v6031_v35 = vunpack.i.h.bf16 %v6029_v33  ;;  %v6030_v36 = vunpack.i.l.bf16 %v6029_v33 }
0x15c5   :  { %v6171_v57 = vpop.eup %6170  ;;  %v2192_v40 = vsel %vm122_vm2, %v6673_v55, %v6031_v35  ;;  %v2191_v41 = vsel %vm122_vm2, %v6671_v51, %v6030_v36  ;;  %v5135_v51 = vld [vmem:[%s7400_s9 + $0x3] ss:$0 sm:$0xff]  ;;  %v6089_v35 = vld [vmem:[%s7406_s7 + $0x38] sm:$0xff]   ;;  %v5141_v36 = vld [vmem:[%s7400_s9 + $0xa] ss:$0 sm:$0xff] }
0x15c6   :  { %v2059_v42 = vsel %vm122_vm2, %v6171_v57, 0.0  ;;  %v6034_v34 = vpop.permute.xlu1 %6033 }
0x15c7   :  { %2060 = vadd.xlane.f32.xlu0 %v2059_v42  ;;  %v6036_v37 = vunpack.i.h.bf16 %v6034_v34  ;;  %v6035_v38 = vunpack.i.l.bf16 %v6034_v34  ;;  %v6088_v34 = vld [vmem:[%s7406_s7 + $0x30] sm:$0xff]  }
0x15c9   :  { %v6173_v46 = vpop.eup %6172  ;;  %v2193_v45 = vsel %vm1040_vm5, %v2191_v41, %v6035_v38  ;;  %v2194_v50 = vsel %vm1040_vm5, %v2192_v40, %v6036_v37 }
0x15ca   :  { %v2062_v47 = vsel %vm122_vm2, %v6173_v46, 0.0 }
0x15cb   :  { %2063 = vadd.xlane.f32.xlu0 %v2062_v47  ;;  %v6082_v47 = vld [vmem:[%s7406_s7] sm:$0xff]  }
0x15e1   :  { %2119 = vrot.lane.b32.xlu0 %v6615_v60, %s6277_s30 }
0x1654   :  { %v2061_v20 = vpop.xlane.xlu0 %2060 }
0x1655   :  { %6174 = vrcp.f32 %v2061_v20  ;;  %v6083_v20 = vld [vmem:[%s7406_s7 + $0x8] sm:$0xff]  }
0x1658   :  { %v2064_v21 = vpop.xlane.xlu0 %2063 }
0x1659   :  { %6176 = vrcp.f32 %v2064_v21  ;;  %v6084_v21 = vld [vmem:[%s7406_s7 + $0x10] sm:$0xff]  }
0x165c   :  { %v2120_v22 = vpop.permute.xlu0 %2119 }
0x165d   :  { %v2125_v23 = vsel %vm250_vm4, %v2120_v22, 0  ;;  %v6085_v22 = vld [vmem:[%s7406_s7 + $0x18] sm:$0xff]  }
0x165e   :  { %5686 = vmatpush3.bf16.msra.mxu1 %v2125_v23  ;;  %v6086_v23 = vld [vmem:[%s7406_s7 + $0x20] sm:$0xff]  }
0x165f   :  { %v6175_v3 = vpop.eup %6174  ;;  %5699 = vmatprep.subr.bf16.mxu1 %v6266_v0 }
0x1660   :  { %v2067_v4 = vmul.f32 %v6175_v3, %v6171_v57  ;;  %v6087_v3 = vld [vmem:[%s7406_s7 + $0x28] sm:$0xff]  }
0x1662   :  { %v2069_v12 = vpack.c.bf16 %v2067_v4, %v2067_v4 }
0x1663   :  { %v6177_v25 = vpop.eup %6176 }
0x1664   :  { %5682 = vmatmul.mubr.msk.bf16.vlgmr.msra.gmra.mrb[64].mxu0 %vm122_vm2, %v2069_v12  ;;  %v2068_v26 = vmul.f32 %v6177_v25, %v6173_v46  ;;  %v6081_v46 = vld [vmem:[%s7405_s6 + $0x8] sm:$0xff]  }
0x1665   :  { %5695 = vmatprep.mubr.msk.bf16.mxu0 %vm6267_vm0, %v6266_v0  ;;  %5692 = vmatpush3.bf16.msra.mxu0 %v6078_v27 }
0x1666   :  { %v2070_v60 = vpack.c.bf16 %v2068_v26, %v2068_v26  ;;  %5693 = vmatprep.subr.bf16.mxu0 %v6266_v0 }
0x1668   :  { %5688 = vmatmul.mubr.msk.bf16.vlgmr.msra.gmra.mrb[72].mxu1 %vm122_vm2, %v2070_v60 }
0x1669   :  { %5703 = vmatprep.mubr.msk.bf16.mxu1 %vm6267_vm0, %v6266_v0  ;;  %5694 = vmatpush3.bf16.msra.mxu0 %v6079_v28 }
0x166a   :  { %5707 = vmatprep.subr.bf16.mxu0 %v6266_v0 }
0x1737   :  { %v2113_v29 = vpop.f32.mrb[64].mxu0 }
0x1738   :  { %v5683_v11 = vpop.f32.mrb[65].mxu0 }
0x1739   :  { %v2116_v30 = vpop.f32.mrb[66].mxu0 }
0x173a   :  { %v5684_v58 = vpop.f32.mrb[67].mxu0 }
0x173b   :  { %v2161_v62 = vpop.f32.mrb[72].mxu1 }
0x173c   :  { %v6037_v63 = vpack.i.bf16 %v2161_v62, %v2113_v29  ;;  %v5689_v10 = vpop.f32.mrb[73].mxu1  ;;  %v5139_v29 = vld [vmem:[%s7400_s9 + $0x5] ss:$0 sm:$0xff] }
0x173d   :  { %v2164_v31 = vpop.f32.mrb[74].mxu1 }
0x173e   :  { %6038 = vrot.lane.b32.xlu0 %v6037_v63, %s6282_s19  ;;  %v5690_v32 = vpop.f32.mrb[75].mxu1  ;;  %v5140_v63 = vld [vmem:[%s7400_s9 + $0x8] ss:$0 sm:$0xff] }
0x17b0   :  { %v6039_v39 = vpop.permute.xlu0 %6038 }
0x17b1   :  { %v6041_v43 = vunpack.i.h.bf16 %v6039_v39  ;;  %v6040_v44 = vunpack.i.l.bf16 %v6039_v39 }
0x17b3   :  { %v2196_v52 = vsel %vm1043_vm6, %v2194_v50, %v6041_v43  ;;  %v2195_v53 = vsel %vm1043_vm6, %v2193_v45, %v6040_v44 }
0x17b4   :  { %v2197_v54 = vpack.c.bf16 %v2196_v52, %v2195_v53  ;;  %v5145_v52 = vld [vmem:[%s7400_s9 + $0xb] ss:$0 sm:$0xff] }
0x17b6   :  { %5696 = vmatmul.mubr.msk.bf16.vlgmr.msra.gmra.mrb[68].mxu0 %vm69_vm1, %v2197_v54 }
0x17b7   :  { %5723 = vmatprep.mubr.msk.bf16.mxu0 %vm6267_vm0, %v6266_v0  ;;  %5708 = vmatpush3.bf16.msra.mxu0 %v6082_v47 }
0x17b8   :  { %5709 = vmatprep.subr.bf16.mxu0 %v6266_v0 }
0x17bb   :  { %5710 = vmatpush3.bf16.msra.mxu0 %v6083_v20 }
0x17bc   :  { %5711 = vmatprep.subr.bf16.mxu0 %v6266_v0 }
0x17bf   :  { %5712 = vmatpush3.bf16.msra.mxu0 %v6084_v21 }
0x17c0   :  { %5713 = vmatprep.subr.bf16.mxu0 %v6266_v0 }
0x17c3   :  { %5714 = vmatpush3.bf16.msra.mxu0 %v6085_v22 }
0x17c4   :  { %5715 = vmatprep.subr.bf16.mxu0 %v6266_v0 }
0x17c7   :  { %5716 = vmatpush3.bf16.msra.mxu0 %v6086_v23  ;;  %v5154_v23 = vld [vmem:[%s7400_s9 + $0x6] ss:$0 sm:$0xff] }
0x17c8   :  { %5717 = vmatprep.subr.bf16.mxu0 %v6266_v0 }
0x17cb   :  { %5718 = vmatpush3.bf16.msra.mxu0 %v6087_v3 }
0x17cc   :  { %5719 = vmatprep.subr.bf16.mxu0 %v6266_v0 }
0x17cf   :  { %5720 = vmatpush3.bf16.msra.mxu0 %v6088_v34 }
0x17d0   :  { %5721 = vmatprep.subr.bf16.mxu0 %v6266_v0 }
0x17d3   :  { %5722 = vmatpush3.bf16.msra.mxu0 %v6089_v35 }
0x17d4   :  { %5753 = vmatprep.subr.bf16.mxu0 %v6266_v0 }
0x1889   :  { %v2256_v55 = vpop.f32.mrb[68].mxu0 }
0x188a   :  { %v2257_v56 = vadd.f32 %v5135_v51, %v2256_v55  ;;  %v5697_v59 = vpop.f32.mrb[69].mxu0 }
0x188b   :  { %v2259_v61 = vpop.f32.mrb[70].mxu0 }
0x188c   :  { %v2260_v1 = vadd.f32 %v5135_v51, %v2259_v61  ;;  %v5698_v2 = vpop.f32.mrb[71].mxu0  ;;  %v2263_v6 = vadd.f32 %v2257_v56, %v6604_v48 }
0x188e   :  { %v2267_v7 = vsel %vm69_vm1, %v2263_v6, 0.0  ;;  %v2264_v8 = vadd.f32 %v2260_v1, %v6606_v49  ;;  %v6080_v49 = vld [vmem:[%s7405_s6] sm:$0xff]  }
0x188f   :  { %2268 = vadd.xlane.f32.xlu1 %v2267_v7  ;;  %5700 = vmatpush3.bf16.msra.mxu1 %v6080_v49 }
0x1890   :  { %v2270_v5 = vsel %vm69_vm1, %v2264_v8, 0.0  ;;  %5701 = vmatprep.subr.bf16.mxu1 %v6266_v0 }
0x1891   :  { %2271 = vadd.xlane.f32.xlu0 %v2270_v5 }
0x1893   :  { %5702 = vmatpush3.bf16.msra.mxu1 %v6081_v46 }
0x1894   :  { %5727 = vmatprep.subr.bf16.mxu1 %v6266_v0 }
0x191c   :  { %v2269_v9 = vpop.xlane.xlu1 %2268 }
0x191d   :  { %v2273_v13 = vmul.f32 0.03125, %v2269_v9 }
0x191e   :  { %v2272_v15 = vpop.xlane.xlu0 %2271 }
0x191f   :  { %v2275_v16 = vsub.f32 %v2263_v6, %v2273_v13  ;;  %v2274_v17 = vmul.f32 0.03125, %v2272_v15 }
0x1921   :  { %v2276_v18 = vsub.f32 %v2264_v8, %v2274_v17  ;;  %v2277_v19 = vmul.f32 %v2275_v16, %v2275_v16 }
0x1923   :  { %v2279_v57 = vsel %vm69_vm1, %v2277_v19, 0.0  ;;  %v2278_v42 = vmul.f32 %v2276_v18, %v2276_v18 }
0x1924   :  { %2280 = vadd.xlane.f32.xlu0 %v2279_v57  ;;  %v6090_v57 = vld [vmem:[%s7398_s2 + $0x10] sm:$0xff]  }
0x1925   :  { %v2282_v48 = vsel %vm69_vm1, %v2278_v42, 0.0  ;;  %v6091_v42 = vld [vmem:[%s7398_s2 + $0x18] sm:$0xff]  }
0x1926   :  { %2283 = vadd.xlane.f32.xlu1 %v2282_v48 }
0x19b1   :  { %v2281_v4 = vpop.xlane.xlu0 %2280 }
0x19b2   :  { %v2285_v12 = vmul.f32 0.03125, %v2281_v4 }
0x19b3   :  { %v2284_v25 = vpop.xlane.xlu1 %2283 }
0x19b4   :  { %v2287_v26 = vadd.f32 1e-05, %v2285_v12  ;;  %v2286_v60 = vmul.f32 0.03125, %v2284_v25 }
0x19b6   :  { %6178 = vrsqrt.f32 %v2287_v26  ;;  %v2288_v27 = vadd.f32 1e-05, %v2286_v60  ;;  %v5155_v26 = vld [vmem:[%s7400_s9 + $0x9] ss:$0 sm:$0xff] }
0x19b8   :  { %6180 = vrsqrt.f32 %v2288_v27 }
0x19c0   :  { %v6179_v28 = vpop.eup %6178 }
0x19c1   :  { %v2291_v11 = vmul.f32 %v6179_v28, %v2275_v16 }
0x19c2   :  { %v6181_v30 = vpop.eup %6180 }
0x19c3   :  { %v2297_v58 = vmul.f32 %v5139_v29, %v2291_v11  ;;  %v2292_v62 = vmul.f32 %v6181_v30, %v2276_v18  ;;  %v5160_v11 = vld [vmem:[%s7400_s9 + $0xc] ss:$0 sm:$0xff] }
0x19c5   :  { %v2298_v10 = vmul.f32 %v5139_v29, %v2292_v62  ;;  %v2303_v31 = vadd.f32 %v5140_v63, %v2297_v58 }
0x19c7   :  { %v2304_v32 = vadd.f32 %v5140_v63, %v2298_v10 }
0x19c9   :  { %v2305_v33 = vpack.c.bf16 %v2304_v32, %v2303_v31 }
0x19cb   :  { %5704 = vmatmul.mubr.msk.bf16.vlgmr.msra.gmra.mrb[76].mxu1 %vm69_vm1, %v2305_v33 }
0x19cc   :  { %5731 = vmatprep.mubr.msk.bf16.mxu1 %vm6267_vm0, %v6266_v0  ;;  %5728 = vmatpush3.bf16.msra.mxu1 %v6090_v57 }
0x19cd   :  { %5729 = vmatprep.subr.bf16.mxu1 %v6266_v0 }
0x19d0   :  { %5730 = vmatpush3.bf16.msra.mxu1 %v6091_v42 }
0x19d1   :  { %5735 = vmatprep.subr.bf16.mxu1 %v6266_v0 }
0x1a9e   :  { %v2364_v37 = vpop.f32.mrb[76].mxu1 }
0x1a9f   :  { %v2365_v38 = vadd.f32 %v5141_v36, %v2364_v37  ;;  %v5705_v39 = vpop.f32.mrb[77].mxu1 }
0x1aa0   :  { %v2367_v40 = vpop.f32.mrb[78].mxu1 }
0x1aa1   :  { %v2368_v41 = vadd.f32 %v5141_v36, %v2367_v40  ;;  %v5706_v43 = vpop.f32.mrb[79].mxu1  ;;  %v2371_v44 = vmax.f32 %v2365_v38, 0.0 }
0x1aa3   :  { %v2372_v45 = vmax.f32 %v2368_v41, 0.0 }
0x1aa5   :  { %v2373_v50 = vpack.c.bf16 %v2372_v45, %v2371_v44 }
0x1aa7   :  { %5724 = vmatmul.mubr.bf16.vlgmr.msra.gmra.mrb[72].mxu0 %v2373_v50 }
0x1aa8   :  { %5755 = vmatprep.mubr.msk.bf16.mxu0 %vm6267_vm0, %v6266_v0 }
0x1b7a   :  { %v2477_v53 = vpop.f32.mrb[72].mxu0 }
0x1b7b   :  { %v2478_v54 = vadd.f32 %v5145_v52, %v2477_v53  ;;  %v5725_v51 = vpop.f32.mrb[73].mxu0 }
0x1b7c   :  { %v2480_v55 = vpop.f32.mrb[74].mxu0 }
0x1b7d   :  { %v2481_v56 = vadd.f32 %v5145_v52, %v2480_v55  ;;  %v5726_v59 = vpop.f32.mrb[75].mxu0  ;;  %v2484_v61 = vadd.f32 %v2478_v54, %v2303_v31 }
0x1b7f   :  { %v2485_v1 = vadd.f32 %v2481_v56, %v2304_v32  ;;  %v2488_v2 = vsel %vm69_vm1, %v2484_v61, 0.0 }
0x1b80   :  { %2489 = vadd.xlane.f32.xlu0 %v2488_v2 }
0x1b81   :  { %v2491_v6 = vsel %vm69_vm1, %v2485_v1, 0.0 }
0x1b82   :  { %2492 = vadd.xlane.f32.xlu1 %v2491_v6 }
0x1c0d   :  { %v2490_v7 = vpop.xlane.xlu0 %2489 }
0x1c0e   :  { %v2494_v8 = vmul.f32 0.03125, %v2490_v7 }
0x1c0f   :  { %v2493_v5 = vpop.xlane.xlu1 %2492 }
0x1c10   :  { %v2496_v9 = vsub.f32 %v2484_v61, %v2494_v8  ;;  %v2495_v13 = vmul.f32 0.03125, %v2493_v5 }
0x1c12   :  { %v2497_v15 = vsub.f32 %v2485_v1, %v2495_v13  ;;  %v2498_v16 = vmul.f32 %v2496_v9, %v2496_v9 }
0x1c14   :  { %v2500_v17 = vsel %vm69_vm1, %v2498_v16, 0.0  ;;  %v2499_v18 = vmul.f32 %v2497_v15, %v2497_v15 }
0x1c15   :  { %2501 = vadd.xlane.f32.xlu0 %v2500_v17 }
0x1c16   :  { %v2503_v19 = vsel %vm69_vm1, %v2499_v18, 0.0 }
0x1c17   :  { %2504 = vadd.xlane.f32.xlu1 %v2503_v19 }
0x1ca2   :  { %v2502_v48 = vpop.xlane.xlu0 %2501 }
0x1ca3   :  { %v2506_v49 = vmul.f32 0.03125, %v2502_v48 }
0x1ca4   :  { %v2505_v46 = vpop.xlane.xlu1 %2504 }
0x1ca5   :  { %v2508_v47 = vadd.f32 1e-05, %v2506_v49  ;;  %v2507_v20 = vmul.f32 0.03125, %v2505_v46 }
0x1ca7   :  { %6182 = vrsqrt.f32 %v2508_v47  ;;  %v2509_v21 = vadd.f32 1e-05, %v2507_v20 }
0x1ca9   :  { %6184 = vrsqrt.f32 %v2509_v21 }
0x1cb1   :  { %v6183_v22 = vpop.eup %6182 }
0x1cb2   :  { %v2512_v3 = vmul.f32 %v6183_v22, %v2496_v9 }
0x1cb3   :  { %v6185_v4 = vpop.eup %6184 }
0x1cb4   :  { %v2518_v12 = vmul.f32 %v5154_v23, %v2512_v3  ;;  %v2513_v25 = vmul.f32 %v6185_v4, %v2497_v15 }
0x1cb6   :  { %v2519_v60 = vmul.f32 %v5154_v23, %v2513_v25  ;;  %v6880_v27 = vadd.f32 %v5155_v26, %v2518_v12 }
0x1cb8   :  { %v6882_v28 = vadd.f32 %v5155_v26, %v2519_v60 }
0x1cba   :  { %v2526_v29 = vpack.c.bf16 %v6882_v28, %v6880_v27 }
0x1cbc   :  { %5732 = vmatmul.mubr.msk.bf16.vlgmr.msra.gmra.mrb[80].mxu1 %vm69_vm1, %v2526_v29 }
0x1cbd   :  { %5737 = vmatprep.mubr.msk.bf16.mxu1 %vm6267_vm0, %v6266_v0 }
0x1d8f   :  { %v2586_v30 = vpop.f32.mrb[80].mxu1 }
0x1d90   :  { %v2587_v58 = vadd.f32 %v5160_v11, %v2586_v30  ;;  %v5733_v62 = vpop.f32.mrb[81].mxu1 }
0x1d91   :  { %v2589_v63 = vpop.f32.mrb[82].mxu1 }
0x1d92   :  { %v6892_v10 = vpack.c.bf16 %v2587_v58, %v2587_v58  ;;  %v2590_v31 = vadd.f32 %v5160_v11, %v2589_v63  ;;  %v5734_v32 = vpop.f32.mrb[83].mxu1 }
0x1d94   :  { %v6894_v33 = vpack.c.bf16 %v2590_v31, %v2590_v31  ;;  %2599 = vrot.lane.b32.xlu0 %v6892_v10, %s6268_s0 }
0x1d96   :  { %2647 = vrot.lane.b32.xlu1 %v6894_v33, %s6268_s0 }
0x1e06   :  { %v2600_v34 = vpop.permute.xlu0 %2599 }
0x1e07   :  { %v2605_v35 = vsel %vm122_vm2, %v2600_v34, 0 }
0x1e08   :  { %5736 = vmatpush3.bf16.xpose.msra.mxu1 %v2605_v35  ;;  %v2648_v36 = vpop.permute.xlu1 %2647 }
0x1e09   :  { %5741 = vmatprep.subr.bf16.mxu1 %v6266_v0  ;;  %v2653_v37 = vsel %vm122_vm2, %v2648_v36, 0 }
0x1e0f   :  { %5738 = vmatmul.mubr.msk.bf16.vlgmr.msra.gmra.mrb[84].mxu1 %vm122_vm2, %v6892_v10 }
0x1e10   :  { %5742 = vmatpush3.bf16.xpose.msra.mxu1 %v2653_v37  ;;  %5743 = vmatprep.mubr.msk.bf16.mxu1 %vm6267_vm0, %v6266_v0 }
0x1e11   :  { %5747 = vmatprep.subr.bf16.mxu1 %v6266_v0 }
0x1e17   :  { %5744 = vmatmul.mubr.msk.bf16.vlgmr.msra.gmra.mrb[88].mxu1 %vm122_vm2, %v6894_v33 }
0x1e18   :  { %5749 = vmatprep.mubr.msk.bf16.mxu1 %vm6267_vm0, %v6266_v0 }
0x1ee2   :  { %v2641_v38 = vpop.f32.mrb[84].mxu1 }
0x1ee3   :  { %v2695_v39 = vmul.f32 0.35355338, %v2641_v38  ;;  %v5739_v40 = vpop.f32.mrb[85].mxu1 }
0x1ee4   :  { %v2644_v41 = vpop.f32.mrb[86].mxu1 }
0x1ee5   :  { %v2697_v43 = vadd.f32 %v2695_v39, %v6390_v24  ;;  %v5740_v44 = vpop.f32.mrb[87].mxu1 }
0x1ee7   :  { %v2699_v45 = vsel %vm122_vm2, %v2697_v43, -inf }
0x1ee8   :  { %2700 = vmax.xlane.f32.xlu1 %v2699_v45 }
0x1eea   :  { %v2689_v50 = vpop.f32.mrb[88].mxu1 }
0x1eeb   :  { %v2696_v52 = vmul.f32 0.35355338, %v2689_v50  ;;  %v5745_v53 = vpop.f32.mrb[89].mxu1 }
0x1eec   :  { %v2692_v54 = vpop.f32.mrb[90].mxu1 }
0x1eed   :  { %v5746_v51 = vpop.f32.mrb[91].mxu1  ;;  %v2698_v55 = vadd.f32 %v2696_v52, %v6390_v24 }
0x1eef   :  { %v2702_v56 = vsel %vm122_vm2, %v2698_v55, -inf }
0x1ef0   :  { %2703 = vmax.xlane.f32.xlu0 %v2702_v56 }
0x1ef9   :  { %2771 = vrot.lane.b32.xlu1 %v6894_v33, %s6270_s23 }
0x1f06   :  { %2723 = vrot.lane.b32.xlu0 %v6892_v10, %s6270_s23 }
0x1f75   :  { %v2701_v59 = vpop.xlane.xlu1 %2700 }
0x1f76   :  { %v2705_v61 = vsub.f32 %v2697_v43, %v2701_v59 }
0x1f78   :  { %v2707_v1 = vmul.f32 1.442695, %v2705_v61 }
0x1f79   :  { %v2772_v2 = vpop.permute.xlu1 %2771 }
0x1f7a   :  { %6186 = vpow2.f32 %v2707_v1  ;;  %v2777_v6 = vsel %vm250_vm4, %v2772_v2, 0 }
0x1f7b   :  { %5754 = vmatpush3.bf16.msra.mxu0 %v2777_v6 }
0x1f7c   :  { %5765 = vmatprep.subr.bf16.mxu0 %v6266_v0 }
0x1f7d   :  { %v2704_v7 = vpop.xlane.xlu0 %2703 }
0x1f7e   :  { %v2706_v8 = vsub.f32 %v2698_v55, %v2704_v7 }
0x1f80   :  { %v2709_v5 = vmul.f32 1.442695, %v2706_v8 }
0x1f81   :  { %v2724_v9 = vpop.permute.xlu0 %2723 }
0x1f82   :  { %6188 = vpow2.f32 %v2709_v5  ;;  %v2729_v13 = vsel %vm250_vm4, %v2724_v9, 0 }
0x1f83   :  { %5748 = vmatpush3.bf16.msra.mxu1 %v2729_v13 }
0x1f84   :  { %v6187_v15 = vpop.eup %6186  ;;  %5759 = vmatprep.subr.bf16.mxu1 %v6266_v0 }
0x1f85   :  { %v2711_v16 = vsel %vm122_vm2, %v6187_v15, 0.0 }
0x1f86   :  { %2712 = vadd.xlane.f32.xlu0 %v2711_v16 }
0x1f8c   :  { %v6189_v17 = vpop.eup %6188 }
0x1f8d   :  { %v2714_v18 = vsel %vm122_vm2, %v6189_v17, 0.0 }
0x1f8e   :  { %2715 = vadd.xlane.f32.xlu1 %v2714_v18 }
0x1f9c   :  { %2871 = vrot.lane.b32.xlu0 %v6894_v33, %s6271_s24 }
0x1f9f   :  { %2821 = vrot.lane.b32.xlu1 %v6892_v10, %s6271_s24 }
0x1fa0   :  { %2869 = vrot.lane.b32.xlu0 %v6894_v33, %s6272_s25 }
0x1fa3   :  { %2819 = vrot.lane.b32.xlu1 %v6892_v10, %s6272_s25 }
0x2013   :  { %v2713_v19 = vpop.xlane.xlu0 %2712 }
0x2014   :  { %6190 = vrcp.f32 %v2713_v19 }
0x2017   :  { %v2872_v22 = vpop.permute.xlu0 %2871 }
0x2018   :  { %v2877_v4 = vsel %vm122_vm2, %v2872_v22, 0 }
0x201b   :  { %v2716_v57 = vpop.xlane.xlu1 %2715  ;;  %v2870_v12 = vpop.permute.xlu0 %2869 }
0x201c   :  { %6192 = vrcp.f32 %v2716_v57 }
0x201e   :  { %v6191_v42 = vpop.eup %6190 }
0x201f   :  { %v2719_v48 = vmul.f32 %v6191_v42, %v6187_v15  ;;  %v2822_v49 = vpop.permute.xlu1 %2821 }
0x2020   :  { %v2827_v47 = vsel %vm122_vm2, %v2822_v49, 0 }
0x2021   :  { %v2721_v46 = vpack.c.bf16 %v2719_v48, %v2719_v48 }
0x2023   :  { %5750 = vmatmul.mubr.msk.bf16.vlgmr.msra.gmra.mrb[92].mxu1 %vm122_vm2, %v2721_v46  ;;  %v2820_v3 = vpop.permute.xlu1 %2819 }
0x2024   :  { %5760 = vmatpush3.bf16.xpose.msra.mxu1 %v2827_v47  ;;  %5761 = vmatprep.mubr.msk.bf16.mxu1 %vm6267_vm0, %v6266_v0 }
0x2025   :  { %5771 = vmatprep.subr.bf16.mxu1 %v6266_v0 }
0x2026   :  { %v6193_v20 = vpop.eup %6192 }
0x2027   :  { %v2720_v21 = vmul.f32 %v6193_v20, %v6189_v17 }
0x2029   :  { %v2722_v23 = vpack.c.bf16 %v2720_v21, %v2720_v21 }
0x202b   :  { %5756 = vmatmul.mubr.msk.bf16.vlgmr.msra.gmra.mrb[76].mxu0 %vm122_vm2, %v2722_v23  ;;  %5762 = vmatmul.mubr.msk.bf16.vlgmr.msra.gmra.mrb[96].mxu1 %vm122_vm2, %v2820_v3 }
0x202c   :  { %5766 = vmatpush3.bf16.xpose.msra.mxu0 %v2877_v4  ;;  %5767 = vmatprep.mubr.msk.bf16.mxu0 %vm6267_vm0, %v6266_v0 }
0x202d   :  { %5777 = vmatprep.subr.bf16.mxu0 %v6266_v0  ;;  %5773 = vmatprep.mubr.msk.bf16.mxu1 %vm6267_vm0, %v6266_v0 }
0x2033   :  { %5768 = vmatmul.mubr.msk.bf16.vlgmr.msra.gmra.mrb[80].mxu0 %vm122_vm2, %v2870_v12 }
0x2034   :  { %5779 = vmatprep.mubr.msk.bf16.mxu0 %vm6267_vm0, %v6266_v0 }
0x20f6   :  { %v6950_v25 = vpop.f32.mrb[92].mxu1 }
0x20f7   :  { %v5751_v26 = vpop.f32.mrb[93].mxu1 }
0x20f8   :  { %v2768_v60 = vpop.f32.mrb[94].mxu1 }
0x20f9   :  { %v5752_v29 = vpop.f32.mrb[95].mxu1 }
0x20fe   :  { %v6952_v11 = vpop.f32.mrb[76].mxu0  ;;  %v2863_v30 = vpop.f32.mrb[96].mxu1 }
0x20ff   :  { %v2919_v58 = vmul.f32 0.35355338, %v2863_v30  ;;  %v5757_v62 = vpop.f32.mrb[77].mxu0  ;;  %v5763_v63 = vpop.f32.mrb[97].mxu1 }
0x2100   :  { %v2816_v31 = vpop.f32.mrb[78].mxu0  ;;  %v2866_v32 = vpop.f32.mrb[98].mxu1 }
0x2101   :  { %v2921_v34 = vadd.f32 %v2919_v58, %v6390_v24  ;;  %v5758_v35 = vpop.f32.mrb[79].mxu0  ;;  %v5764_v36 = vpop.f32.mrb[99].mxu1 }
0x2103   :  { %v2923_v37 = vsel %vm122_vm2, %v2921_v34, -inf }
0x2104   :  { %2924 = vmax.xlane.f32.xlu1 %v2923_v37 }
0x2106   :  { %v2913_v38 = vpop.f32.mrb[80].mxu0 }
0x2107   :  { %v2920_v39 = vmul.f32 0.35355338, %v2913_v38  ;;  %v5769_v40 = vpop.f32.mrb[81].mxu0 }
0x2108   :  { %v2916_v41 = vpop.f32.mrb[82].mxu0 }
0x2109   :  { %v2922_v43 = vadd.f32 %v2920_v39, %v6390_v24  ;;  %v5770_v44 = vpop.f32.mrb[83].mxu0 }
0x210b   :  { %v2926_v45 = vsel %vm122_vm2, %v2922_v43, -inf }
0x210c   :  { %2927 = vmax.xlane.f32.xlu0 %v2926_v45 }
0x2115   :  { %2995 = vrot.lane.b32.xlu1 %v6894_v33, %s6273_s26 }
0x2122   :  { %2947 = vrot.lane.b32.xlu0 %v6892_v10, %s6273_s26 }
0x2191   :  { %v2925_v50 = vpop.xlane.xlu1 %2924 }
0x2192   :  { %v2929_v52 = vsub.f32 %v2921_v34, %v2925_v50 }
0x2194   :  { %v2931_v53 = vmul.f32 1.442695, %v2929_v52 }
0x2195   :  { %v2996_v54 = vpop.permute.xlu1 %2995 }
0x2196   :  { %6194 = vpow2.f32 %v2931_v53  ;;  %v3001_v51 = vsel %vm250_vm4, %v2996_v54, 0 }
0x2197   :  { %5778 = vmatpush3.bf16.msra.mxu0 %v3001_v51 }
0x2198   :  { %5789 = vmatprep.subr.bf16.mxu0 %v6266_v0 }
0x2199   :  { %v2928_v55 = vpop.xlane.xlu0 %2927 }
0x219a   :  { %v2930_v56 = vsub.f32 %v2922_v43, %v2928_v55 }
0x219c   :  { %v2933_v59 = vmul.f32 1.442695, %v2930_v56 }
0x219d   :  { %v2948_v61 = vpop.permute.xlu0 %2947 }
0x219e   :  { %6196 = vpow2.f32 %v2933_v59  ;;  %v2953_v1 = vsel %vm250_vm4, %v2948_v61, 0 }
0x219f   :  { %5772 = vmatpush3.bf16.msra.mxu1 %v2953_v1 }
0x21a0   :  { %v6195_v2 = vpop.eup %6194  ;;  %5783 = vmatprep.subr.bf16.mxu1 %v6266_v0 }
0x21a1   :  { %v2935_v6 = vsel %vm122_vm2, %v6195_v2, 0.0 }
0x21a2   :  { %2936 = vadd.xlane.f32.xlu0 %v2935_v6 }
0x21a8   :  { %v6197_v7 = vpop.eup %6196 }
0x21a9   :  { %v2938_v8 = vsel %vm122_vm2, %v6197_v7, 0.0 }
0x21aa   :  { %2939 = vadd.xlane.f32.xlu1 %v2938_v8 }
0x21b8   :  { %3095 = vrot.lane.b32.xlu0 %v6894_v33, %s6274_s27 }
0x21bb   :  { %3045 = vrot.lane.b32.xlu1 %v6892_v10, %s6274_s27 }
0x21bc   :  { %3093 = vrot.lane.b32.xlu0 %v6894_v33, %s6275_s28 }
0x21bf   :  { %3043 = vrot.lane.b32.xlu1 %v6892_v10, %s6275_s28 }
0x222f   :  { %v2937_v5 = vpop.xlane.xlu0 %2936 }
0x2230   :  { %6198 = vrcp.f32 %v2937_v5 }
0x2233   :  { %v3096_v42 = vpop.permute.xlu0 %3095 }
0x2234   :  { %v3101_v46 = vsel %vm122_vm2, %v3096_v42, 0 }
0x2237   :  { %v2940_v9 = vpop.xlane.xlu1 %2939  ;;  %v3094_v47 = vpop.permute.xlu0 %3093 }
0x2238   :  { %6200 = vrcp.f32 %v2940_v9 }
0x223a   :  { %v6199_v13 = vpop.eup %6198 }
0x223b   :  { %v2943_v15 = vmul.f32 %v6199_v13, %v6195_v2  ;;  %v3046_v16 = vpop.permute.xlu1 %3045 }
0x223c   :  { %v3051_v18 = vsel %vm122_vm2, %v3046_v16, 0 }
0x223d   :  { %v2945_v17 = vpack.c.bf16 %v2943_v15, %v2943_v15 }
0x223f   :  { %5774 = vmatmul.mubr.msk.bf16.vlgmr.msra.gmra.mrb[100].mxu1 %vm122_vm2, %v2945_v17  ;;  %v3044_v49 = vpop.permute.xlu1 %3043 }
0x2240   :  { %5784 = vmatpush3.bf16.xpose.msra.mxu1 %v3051_v18  ;;  %5785 = vmatprep.mubr.msk.bf16.mxu1 %vm6267_vm0, %v6266_v0 }
0x2241   :  { %5795 = vmatprep.subr.bf16.mxu1 %v6266_v0 }
0x2242   :  { %v6201_v19 = vpop.eup %6200 }
0x2243   :  { %v2944_v57 = vmul.f32 %v6201_v19, %v6197_v7 }
0x2245   :  { %v2946_v48 = vpack.c.bf16 %v2944_v57, %v2944_v57 }
0x2247   :  { %5780 = vmatmul.mubr.msk.bf16.vlgmr.msra.gmra.mrb[84].mxu0 %vm122_vm2, %v2946_v48  ;;  %5786 = vmatmul.mubr.msk.bf16.vlgmr.msra.gmra.mrb[104].mxu1 %vm122_vm2, %v3044_v49 }
0x2248   :  { %5790 = vmatpush3.bf16.xpose.msra.mxu0 %v3101_v46  ;;  %5791 = vmatprep.mubr.msk.bf16.mxu0 %vm6267_vm0, %v6266_v0 }
0x2249   :  { %5801 = vmatprep.subr.bf16.mxu0 %v6266_v0  ;;  %5797 = vmatprep.mubr.msk.bf16.mxu1 %vm6267_vm0, %v6266_v0 }
0x224f   :  { %5792 = vmatmul.mubr.msk.bf16.vlgmr.msra.gmra.mrb[88].mxu0 %vm122_vm2, %v3094_v47 }
0x2250   :  { %5803 = vmatprep.mubr.msk.bf16.mxu0 %vm6267_vm0, %v6266_v0 }
0x2312   :  { %v6992_v20 = vpop.f32.mrb[100].mxu1 }
0x2313   :  { %v5775_v21 = vpop.f32.mrb[101].mxu1 }
0x2314   :  { %v2992_v22 = vpop.f32.mrb[102].mxu1 }
0x2315   :  { %v5776_v23 = vpop.f32.mrb[103].mxu1 }
0x231a   :  { %v6994_v3 = vpop.f32.mrb[84].mxu0  ;;  %v3087_v4 = vpop.f32.mrb[104].mxu1 }
0x231b   :  { %v6042_v12 = vpack.i.bf16 %v6994_v3, %v6992_v20  ;;  %v3143_v26 = vmul.f32 0.35355338, %v3087_v4  ;;  %v5781_v60 = vpop.f32.mrb[85].mxu0  ;;  %v5787_v29 = vpop.f32.mrb[105].mxu1 }
0x231c   :  { %v3040_v30 = vpop.f32.mrb[86].mxu0  ;;  %v3090_v58 = vpop.f32.mrb[106].mxu1 }
0x231d   :  { %v3145_v62 = vadd.f32 %v3143_v26, %v6390_v24  ;;  %v5782_v63 = vpop.f32.mrb[87].mxu0  ;;  %v5788_v31 = vpop.f32.mrb[107].mxu1 }
0x231f   :  { %v3147_v32 = vsel %vm122_vm2, %v3145_v62, -inf }
0x2320   :  { %3148 = vmax.xlane.f32.xlu1 %v3147_v32 }
0x2322   :  { %v3137_v34 = vpop.f32.mrb[88].mxu0 }
0x2323   :  { %v3144_v35 = vmul.f32 0.35355338, %v3137_v34  ;;  %v5793_v36 = vpop.f32.mrb[89].mxu0 }
0x2324   :  { %v3140_v37 = vpop.f32.mrb[90].mxu0 }
0x2325   :  { %v3146_v38 = vadd.f32 %v3144_v35, %v6390_v24  ;;  %v5794_v39 = vpop.f32.mrb[91].mxu0 }
0x2327   :  { %v3150_v40 = vsel %vm122_vm2, %v3146_v38, -inf }
0x2328   :  { %3151 = vmax.xlane.f32.xlu0 %v3150_v40 }
0x2331   :  { %3219 = vrot.lane.b32.xlu1 %v6894_v33, %s6276_s29 }
0x233e   :  { %3171 = vrot.lane.b32.xlu0 %v6892_v10, %s6276_s29 }
0x23ad   :  { %v3149_v41 = vpop.xlane.xlu1 %3148 }
0x23ae   :  { %v3153_v43 = vsub.f32 %v3145_v62, %v3149_v41 }
0x23b0   :  { %v3155_v44 = vmul.f32 1.442695, %v3153_v43 }
0x23b1   :  { %v3220_v45 = vpop.permute.xlu1 %3219 }
0x23b2   :  { %6202 = vpow2.f32 %v3155_v44  ;;  %v3225_v50 = vsel %vm250_vm4, %v3220_v45, 0 }
0x23b3   :  { %5802 = vmatpush3.bf16.msra.mxu0 %v3225_v50 }
0x23b4   :  { %5813 = vmatprep.subr.bf16.mxu0 %v6266_v0 }
0x23b5   :  { %v3152_v52 = vpop.xlane.xlu0 %3151 }
0x23b6   :  { %v3154_v53 = vsub.f32 %v3146_v38, %v3152_v52 }
0x23b8   :  { %v3157_v54 = vmul.f32 1.442695, %v3154_v53 }
0x23b9   :  { %v3172_v51 = vpop.permute.xlu0 %3171 }
0x23ba   :  { %6204 = vpow2.f32 %v3157_v54  ;;  %v3177_v55 = vsel %vm250_vm4, %v3172_v51, 0 }
0x23bb   :  { %5796 = vmatpush3.bf16.msra.mxu1 %v3177_v55 }
0x23bc   :  { %v6203_v56 = vpop.eup %6202  ;;  %5807 = vmatprep.subr.bf16.mxu1 %v6266_v0 }
0x23bd   :  { %v3159_v59 = vsel %vm122_vm2, %v6203_v56, 0.0 }
0x23be   :  { %3160 = vadd.xlane.f32.xlu0 %v3159_v59 }
0x23c4   :  { %v6205_v61 = vpop.eup %6204 }
0x23c5   :  { %v3162_v1 = vsel %vm122_vm2, %v6205_v61, 0.0 }
0x23c6   :  { %3163 = vadd.xlane.f32.xlu1 %v3162_v1 }
0x23d4   :  { %3319 = vrot.lane.b32.xlu0 %v6894_v33, %s6277_s30 }
0x23d7   :  { %3269 = vrot.lane.b32.xlu1 %v6892_v10, %s6277_s30 }
0x23d8   :  { %3317 = vrot.lane.b32.xlu0 %v6894_v33, %s6278_s11 }
0x23db   :  { %3267 = vrot.lane.b32.xlu1 %v6892_v10, %s6278_s11 }
0x244b   :  { %v3161_v2 = vpop.xlane.xlu0 %3160 }
0x244c   :  { %6206 = vrcp.f32 %v3161_v2 }
0x244f   :  { %v3320_v17 = vpop.permute.xlu0 %3319 }
0x2450   :  { %v3325_v57 = vsel %vm122_vm2, %v3320_v17, 0 }
0x2453   :  { %v3164_v6 = vpop.xlane.xlu1 %3163  ;;  %v3318_v42 = vpop.permute.xlu0 %3317 }
0x2454   :  { %6208 = vrcp.f32 %v3164_v6  ;;  %v6092_v6 = vld [vmem:[%s7401_s3 + $0x10] sm:$0xff]  }
0x2456   :  { %v6207_v7 = vpop.eup %6206 }
0x2457   :  { %v3167_v8 = vmul.f32 %v6207_v7, %v6203_v56  ;;  %v3270_v5 = vpop.permute.xlu1 %3269  ;;  %v6093_v7 = vld [vmem:[%s7401_s3 + $0x18] sm:$0xff]  }
0x2458   :  { %v3275_v13 = vsel %vm122_vm2, %v3270_v5, 0 }
0x2459   :  { %v3169_v9 = vpack.c.bf16 %v3167_v8, %v3167_v8 }
0x245b   :  { %5798 = vmatmul.mubr.msk.bf16.vlgmr.msra.gmra.mrb[108].mxu1 %vm122_vm2, %v3169_v9  ;;  %v3268_v19 = vpop.permute.xlu1 %3267 }
0x245c   :  { %5808 = vmatpush3.bf16.xpose.msra.mxu1 %v3275_v13  ;;  %5809 = vmatprep.mubr.msk.bf16.mxu1 %vm6267_vm0, %v6266_v0 }
0x245d   :  { %5819 = vmatprep.subr.bf16.mxu1 %v6266_v0 }
0x245e   :  { %v6209_v15 = vpop.eup %6208 }
0x245f   :  { %v3168_v16 = vmul.f32 %v6209_v15, %v6205_v61 }
0x2461   :  { %v3170_v18 = vpack.c.bf16 %v3168_v16, %v3168_v16 }
0x2463   :  { %5804 = vmatmul.mubr.msk.bf16.vlgmr.msra.gmra.mrb[92].mxu0 %vm122_vm2, %v3170_v18  ;;  %5810 = vmatmul.mubr.msk.bf16.vlgmr.msra.gmra.mrb[112].mxu1 %vm122_vm2, %v3268_v19 }
0x2464   :  { %5814 = vmatpush3.bf16.xpose.msra.mxu0 %v3325_v57  ;;  %5815 = vmatprep.mubr.msk.bf16.mxu0 %vm6267_vm0, %v6266_v0 }
0x2465   :  { %5825 = vmatprep.subr.bf16.mxu0 %v6266_v0  ;;  %5821 = vmatprep.mubr.msk.bf16.mxu1 %vm6267_vm0, %v6266_v0 }
0x246b   :  { %5816 = vmatmul.mubr.msk.bf16.vlgmr.msra.gmra.mrb[96].mxu0 %vm122_vm2, %v3318_v42 }
0x246c   :  { %5827 = vmatprep.mubr.msk.bf16.mxu0 %vm6267_vm0, %v6266_v0 }
0x252e   :  { %v3213_v48 = vpop.f32.mrb[108].mxu1 }
0x252f   :  { %v5799_v49 = vpop.f32.mrb[109].mxu1 }
0x2530   :  { %v3216_v46 = vpop.f32.mrb[110].mxu1 }
0x2531   :  { %v5800_v47 = vpop.f32.mrb[111].mxu1 }
0x2536   :  { %v3261_v21 = vpop.f32.mrb[92].mxu0  ;;  %v3311_v22 = vpop.f32.mrb[112].mxu1 }
0x2537   :  { %v6047_v23 = vpack.i.bf16 %v3261_v21, %v3213_v48  ;;  %v3367_v4 = vmul.f32 0.35355338, %v3311_v22  ;;  %v5805_v26 = vpop.f32.mrb[93].mxu0  ;;  %v5811_v60 = vpop.f32.mrb[113].mxu1 }
0x2538   :  { %v3264_v29 = vpop.f32.mrb[94].mxu0  ;;  %v3314_v30 = vpop.f32.mrb[114].mxu1 }
0x2539   :  { %v3369_v58 = vadd.f32 %v3367_v4, %v6390_v24  ;;  %v5806_v62 = vpop.f32.mrb[95].mxu0  ;;  %v5812_v63 = vpop.f32.mrb[115].mxu1 }
0x253b   :  { %v3371_v31 = vsel %vm122_vm2, %v3369_v58, -inf }
0x253c   :  { %3372 = vmax.xlane.f32.xlu1 %v3371_v31 }
0x253e   :  { %v3361_v32 = vpop.f32.mrb[96].mxu0 }
0x253f   :  { %v3368_v34 = vmul.f32 0.35355338, %v3361_v32  ;;  %v5817_v35 = vpop.f32.mrb[97].mxu0 }
0x2540   :  { %v3364_v36 = vpop.f32.mrb[98].mxu0 }
0x2541   :  { %v3370_v37 = vadd.f32 %v3368_v34, %v6390_v24  ;;  %v5818_v38 = vpop.f32.mrb[99].mxu0 }
0x2543   :  { %v3374_v39 = vsel %vm122_vm2, %v3370_v37, -inf }
0x2544   :  { %3375 = vmax.xlane.f32.xlu0 %v3374_v39 }
0x25c9   :  { %v3373_v40 = vpop.xlane.xlu1 %3372 }
0x25ca   :  { %v3377_v41 = vsub.f32 %v3369_v58, %v3373_v40  ;;  %v6094_v40 = vld [vmem:[%s7402_s4 + $0x10] sm:$0xff]  }
0x25cc   :  { %v3379_v43 = vmul.f32 1.442695, %v3377_v41 }
0x25ce   :  { %6210 = vpow2.f32 %v3379_v43 }
0x25d1   :  { %v3376_v44 = vpop.xlane.xlu0 %3375 }
0x25d2   :  { %v3378_v45 = vsub.f32 %v3370_v37, %v3376_v44 }
0x25d4   :  { %v3381_v50 = vmul.f32 1.442695, %v3378_v45 }
0x25d6   :  { %6212 = vpow2.f32 %v3381_v50 }
0x25d8   :  { %v6211_v52 = vpop.eup %6210 }
0x25d9   :  { %v3383_v53 = vsel %vm122_vm2, %v6211_v52, 0.0 }
0x25da   :  { %3384 = vadd.xlane.f32.xlu0 %v3383_v53 }
0x25e0   :  { %v6213_v54 = vpop.eup %6212 }
0x25e1   :  { %v3386_v51 = vsel %vm122_vm2, %v6213_v54, 0.0 }
0x25e2   :  { %3387 = vadd.xlane.f32.xlu1 %v3386_v51 }
0x25f0   :  { %3395 = vrot.lane.b32.xlu0 %v6892_v10, %s6279_s12 }
0x25f3   :  { %3443 = vrot.lane.b32.xlu1 %v6894_v33, %s6279_s12 }
0x25f4   :  { %6048 = vrot.lane.b32.xlu0 %v6047_v23, %s6281_s14 }
0x25f7   :  { %6043 = vrot.lane.b32.xlu1 %v6042_v12, %s6280_s13 }
0x2667   :  { %v3385_v24 = vpop.xlane.xlu0 %3384 }
0x2668   :  { %6214 = vrcp.f32 %v3385_v24 }
0x266b   :  { %v3396_v55 = vpop.permute.xlu0 %3395 }
0x266c   :  { %v3401_v56 = vsel %vm250_vm4, %v3396_v55, 0  ;;  %v5196_v55 = vld [vmem:[%s7400_s9 + $0xe] ss:$0 sm:$0xff] }
0x266d   :  { %5820 = vmatpush3.bf16.msra.mxu1 %v3401_v56 }
0x266e   :  { %5831 = vmatprep.subr.bf16.mxu1 %v6266_v0 }
0x266f   :  { %v3388_v59 = vpop.xlane.xlu1 %3387  ;;  %v6049_v49 = vpop.permute.xlu0 %6048 }
0x2670   :  { %6216 = vrcp.f32 %v3388_v59  ;;  %v6051_v21 = vunpack.i.h.bf16 %v6049_v49  ;;  %v6050_v22 = vunpack.i.l.bf16 %v6049_v49 }
0x2672   :  { %v6215_v10 = vpop.eup %6214 }
0x2673   :  { %v3391_v61 = vmul.f32 %v6215_v10, %v6211_v52  ;;  %v3444_v33 = vpop.permute.xlu1 %3443 }
0x2674   :  { %v3449_v1 = vsel %vm250_vm4, %v3444_v33, 0 }
0x2675   :  { %5826 = vmatpush3.bf16.msra.mxu0 %v3449_v1  ;;  %v3393_v2 = vpack.c.bf16 %v3391_v61, %v3391_v61 }
0x2676   :  { %5839 = vmatprep.subr.bf16.mxu0 %v6266_v0 }
0x2677   :  { %5822 = vmatmul.mubr.msk.bf16.vlgmr.msra.gmra.mrb[116].mxu1 %vm122_vm2, %v3393_v2  ;;  %v6044_v57 = vpop.permute.xlu1 %6043 }
0x2678   :  { %5835 = vmatprep.mubr.msk.bf16.mxu1 %vm6267_vm0, %v6266_v0  ;;  %5832 = vmatpush3.bf16.msra.mxu1 %v6092_v6  ;;  %v6046_v42 = vunpack.i.h.bf16 %v6044_v57  ;;  %v6045_v48 = vunpack.i.l.bf16 %v6044_v57 }
0x2679   :  { %5833 = vmatprep.subr.bf16.mxu1 %v6266_v0 }
0x267a   :  { %v6217_v20 = vpop.eup %6216  ;;  %v3516_v46 = vsel %vm122_vm2, %v6952_v11, %v6046_v42  ;;  %v3515_v47 = vsel %vm122_vm2, %v6950_v25, %v6045_v48  ;;  %v5186_v25 = vld [vmem:[%s7400_s9 + $0xd] ss:$0 sm:$0xff] }
0x267b   :  { %v3392_v3 = vmul.f32 %v6217_v20, %v6213_v54  ;;  %v3517_v60 = vsel %vm1040_vm5, %v3515_v47, %v6050_v22  ;;  %v3518_v29 = vsel %vm1040_vm5, %v3516_v46, %v6051_v21 }
0x267c   :  { %5834 = vmatpush3.bf16.msra.mxu1 %v6093_v7 }
0x267d   :  { %v3394_v12 = vpack.c.bf16 %v3392_v3, %v3392_v3  ;;  %5847 = vmatprep.subr.bf16.mxu1 %v6266_v0 }
0x267f   :  { %5828 = vmatmul.mubr.msk.bf16.vlgmr.msra.gmra.mrb[100].mxu0 %vm122_vm2, %v3394_v12  ;;  %v5190_v12 = vld [vmem:[%s7400_s9 + $0x10] ss:$0 sm:$0xff] }
0x2680   :  { %5843 = vmatprep.mubr.msk.bf16.mxu0 %vm6267_vm0, %v6266_v0  ;;  %5840 = vmatpush3.bf16.msra.mxu0 %v6094_v40 }
0x2681   :  { %5841 = vmatprep.subr.bf16.mxu0 %v6266_v0 }
0x274a   :  { %v3437_v8 = vpop.f32.mrb[116].mxu1 }
0x274b   :  { %v5823_v5 = vpop.f32.mrb[117].mxu1 }
0x274c   :  { %v3440_v9 = vpop.f32.mrb[118].mxu1  ;;  %v5191_v5 = vld [vmem:[%s7400_s9 + $0x13] ss:$0 sm:$0xff] }
0x274d   :  { %v5824_v13 = vpop.f32.mrb[119].mxu1 }
0x2752   :  { %v3485_v15 = vpop.f32.mrb[100].mxu0 }
0x2753   :  { %v6052_v16 = vpack.i.bf16 %v3485_v15, %v3437_v8  ;;  %v5829_v17 = vpop.f32.mrb[101].mxu0 }
0x2754   :  { %v3488_v18 = vpop.f32.mrb[102].mxu0 }
0x2755   :  { %v5830_v19 = vpop.f32.mrb[103].mxu0  ;;  %6053 = vrot.lane.b32.xlu1 %v6052_v16, %s6282_s19 }
0x27c7   :  { %v6054_v23 = vpop.permute.xlu1 %6053 }
0x27c8   :  { %v6056_v4 = vunpack.i.h.bf16 %v6054_v23  ;;  %v6055_v26 = vunpack.i.l.bf16 %v6054_v23 }
0x27ca   :  { %v3520_v30 = vsel %vm1043_vm6, %v3518_v29, %v6056_v4  ;;  %v3519_v58 = vsel %vm1043_vm6, %v3517_v60, %v6055_v26 }
0x27cb   :  { %v3521_v62 = vpack.c.bf16 %v3520_v30, %v3519_v58 }
0x27cd   :  { %5836 = vmatmul.mubr.msk.bf16.vlgmr.msra.gmra.mrb[120].mxu1 %vm69_vm1, %v3521_v62 }
0x27ce   :  { %5851 = vmatprep.mubr.msk.bf16.mxu1 %vm6267_vm0, %v6266_v0 }
0x28a0   :  { %v3581_v11 = vpop.f32.mrb[120].mxu1 }
0x28a1   :  { %v3582_v63 = vadd.f32 %v5186_v25, %v3581_v11  ;;  %v5837_v31 = vpop.f32.mrb[121].mxu1 }
0x28a2   :  { %v3584_v32 = vpop.f32.mrb[122].mxu1 }
0x28a3   :  { %v3588_v34 = vadd.f32 %v3582_v63, %v6880_v27  ;;  %v3585_v35 = vadd.f32 %v5186_v25, %v3584_v32  ;;  %v5838_v36 = vpop.f32.mrb[123].mxu1  ;;  %v6095_v27 = vld [vmem:[%s7402_s4 + $0x18] sm:$0xff]  }
0x28a4   :  { %5842 = vmatpush3.bf16.msra.mxu0 %v6095_v27 }
0x28a5   :  { %v3589_v37 = vadd.f32 %v3585_v35, %v6882_v28  ;;  %v3592_v38 = vsel %vm69_vm1, %v3588_v34, 0.0  ;;  %5855 = vmatprep.subr.bf16.mxu0 %v6266_v0 }
0x28a6   :  { %3593 = vadd.xlane.f32.xlu0 %v3592_v38 }
0x28a7   :  { %v3595_v39 = vsel %vm69_vm1, %v3589_v37, 0.0 }
0x28a8   :  { %3596 = vadd.xlane.f32.xlu1 %v3595_v39 }
0x28b9   :  { %3697 = vrot.lane.b32.xlu1 %v6094_v40, %s6268_s0 }
0x28bd   :  { %3704 = vrot.lane.b32.xlu1 %v5196_v55, %s6268_s0 }
0x2933   :  { %v3594_v28 = vpop.xlane.xlu0 %3593 }
0x2934   :  { %v3598_v41 = vmul.f32 0.03125, %v3594_v28 }
0x2935   :  { %v3597_v43 = vpop.xlane.xlu1 %3596 }
0x2936   :  { %v3600_v44 = vsub.f32 %v3588_v34, %v3598_v41  ;;  %v3599_v45 = vmul.f32 0.03125, %v3597_v43 }
0x2938   :  { %v3601_v50 = vsub.f32 %v3589_v37, %v3599_v45  ;;  %v3602_v52 = vmul.f32 %v3600_v44, %v3600_v44 }
0x2939   :  { %v3698_v24 = vpop.permute.xlu1 %3697 }
0x293a   :  { %v3604_v53 = vsel %vm69_vm1, %v3602_v52, 0.0  ;;  %v3603_v54 = vmul.f32 %v3601_v50, %v3601_v50  ;;  %5848 = vmatpush3.bf16.msra.mxu1 %v3698_v24 }
0x293b   :  { %3605 = vadd.xlane.f32.xlu0 %v3604_v53  ;;  %5849 = vmatprep.subr.bf16.mxu1 %v6266_v0 }
0x293c   :  { %v3607_v51 = vsel %vm69_vm1, %v3603_v54, 0.0 }
0x293d   :  { %v3705_v16 = vpop.permute.xlu1 %3704 }
0x293f   :  { %3608 = vadd.xlane.f32.xlu0 %v3607_v51 }
0x2955   :  { %3699 = vrot.lane.b32.xlu0 %v6095_v27, %s6268_s0 }
0x29c8   :  { %v3606_v56 = vpop.xlane.xlu0 %3605 }
0x29c9   :  { %v3610_v59 = vmul.f32 0.03125, %v3606_v56 }
0x29cb   :  { %v3612_v10 = vadd.f32 1e-05, %v3610_v59 }
0x29cc   :  { %v3609_v61 = vpop.xlane.xlu0 %3608 }
0x29cd   :  { %6218 = vrsqrt.f32 %v3612_v10  ;;  %v3611_v33 = vmul.f32 0.03125, %v3609_v61 }
0x29cf   :  { %v3613_v1 = vadd.f32 1e-05, %v3611_v33 }
0x29d0   :  { %v3700_v2 = vpop.permute.xlu0 %3699 }
0x29d1   :  { %6220 = vrsqrt.f32 %v3613_v1  ;;  %5850 = vmatpush3.bf16.msra.mxu1 %v3700_v2 }
0x29d2   :  { %5861 = vmatprep.subr.bf16.mxu1 %v6266_v0 }
0x29d4   :  { %5852 = vmatmul.mubr.msk.bf16.vlgmr.msra.gmra.mrb[124].mxu1 %vm69_vm1, %v6591_v14 }
0x29d5   :  { %5863 = vmatprep.mubr.msk.bf16.mxu1 %vm6267_vm0, %v6266_v0 }
0x29d7   :  { %v6219_v20 = vpop.eup %6218 }
0x29d8   :  { %v3616_v3 = vmul.f32 %v6219_v20, %v3600_v44 }
0x29da   :  { %v3622_v7 = vmul.f32 %v5190_v12, %v3616_v3 }
0x29db   :  { %v6221_v6 = vpop.eup %6220 }
0x29dc   :  { %v3617_v8 = vmul.f32 %v6221_v6, %v3601_v50  ;;  %v7116_v13 = vadd.f32 %v5191_v5, %v3622_v7 }
0x29de   :  { %v3623_v9 = vmul.f32 %v5190_v12, %v3617_v8 }
0x29e0   :  { %v7118_v14 = vadd.f32 %v5191_v5, %v3623_v9 }
0x29e2   :  { %v3630_v15 = vpack.c.bf16 %v7118_v14, %v7116_v13 }
0x29e4   :  { %5844 = vmatmul.mubr.msk.bf16.vlgmr.msra.gmra.mrb[104].mxu0 %vm69_vm1, %v3630_v15 }
0x29e5   :  { %5857 = vmatprep.mubr.msk.bf16.mxu0 %vm6267_vm0, %v6266_v0 }
0x2aa7   :  { %v3741_v17 = vpop.f32.mrb[124].mxu1 }
0x2aa8   :  { %v5853_v18 = vpop.f32.mrb[125].mxu1  ;;  %v3742_v19 = vadd.f32 %v3741_v17, %v3705_v16 }
0x2aa9   :  { %v3744_v57 = vpop.f32.mrb[126].mxu1 }
0x2aaa   :  { %v3745_v42 = vadd.f32 %v3744_v57, %v3705_v16  ;;  %v7125_v48 = vpack.c.bf16 %v3742_v19, %v3742_v19  ;;  %v5854_v49 = vpop.f32.mrb[127].mxu1 }
0x2aac   :  { %v7127_v46 = vpack.c.bf16 %v3745_v42, %v3745_v42  ;;  %v3764_v47 = vsel %vm122_vm2, %v7125_v48, 0 }
0x2aad   :  { %5856 = vmatpush3.bf16.xpose.msra.mxu0 %v3764_v47 }
0x2aae   :  { %v3810_v21 = vsel %vm122_vm2, %v7127_v46, 0  ;;  %5867 = vmatprep.subr.bf16.mxu0 %v6266_v0 }
0x2aaf   :  { %5862 = vmatpush3.bf16.xpose.msra.mxu1 %v3810_v21 }
0x2ab0   :  { %5873 = vmatprep.subr.bf16.mxu1 %v6266_v0 }
0x2ab7   :  { %v3690_v22 = vpop.f32.mrb[104].mxu0 }
0x2ab8   :  { %v3691_v23 = vadd.f32 %v5196_v55, %v3690_v22  ;;  %v5845_v4 = vpop.f32.mrb[105].mxu0 }
0x2ab9   :  { %v3693_v26 = vpop.f32.mrb[106].mxu0 }
0x2aba   :  { %v7135_v60 = vpack.c.bf16 %v3691_v23, %v3691_v23  ;;  %v3694_v29 = vadd.f32 %v5196_v55, %v3693_v26  ;;  %v5846_v30 = vpop.f32.mrb[107].mxu0 }
0x2abc   :  { %v7137_v58 = vpack.c.bf16 %v3694_v29, %v3694_v29  ;;  %5858 = vmatmul.mubr.msk.bf16.vlgmr.msra.gmra.mrb[108].mxu0 %vm122_vm2, %v7135_v60 }
0x2abd   :  { %5869 = vmatprep.mubr.msk.bf16.mxu0 %vm6267_vm0, %v6266_v0 }
0x2abe   :  { %5864 = vmatmul.mubr.msk.bf16.vlgmr.msra.gmra.mrb[128].mxu1 %vm122_vm2, %v7137_v58 }
0x2abf   :  { %5875 = vmatprep.mubr.msk.bf16.mxu1 %vm6267_vm0, %v6266_v0 }
0x2b8f   :  { %v3800_v62 = vpop.f32.mrb[108].mxu0 }
0x2b90   :  { %v3852_v25 = vmul.f32 0.35355338, %v3800_v62  ;;  %v5859_v11 = vpop.f32.mrb[109].mxu0 }
0x2b91   :  { %v3803_v63 = vpop.f32.mrb[110].mxu0  ;;  %v3846_v31 = vpop.f32.mrb[128].mxu1 }
0x2b92   :  { %v3853_v32 = vmul.f32 0.35355338, %v3846_v31  ;;  %v5860_v34 = vpop.f32.mrb[111].mxu0  ;;  %v5865_v35 = vpop.f32.mrb[129].mxu1  ;;  %v3854_v36 = vsel %vm122_vm2, %v3852_v25, -inf }
0x2b93   :  { %3855 = vmax.xlane.f32.xlu1 %v3854_v36  ;;  %v3849_v37 = vpop.f32.mrb[130].mxu1 }
0x2b94   :  { %v5866_v38 = vpop.f32.mrb[131].mxu1  ;;  %v3857_v39 = vsel %vm122_vm2, %v3853_v32, -inf }
0x2b95   :  { %3858 = vmax.xlane.f32.xlu0 %v3857_v39 }
0x2ba4   :  { %3926 = vrot.lane.b32.xlu1 %v7127_v46, %s6268_s0 }
0x2bab   :  { %3878 = vrot.lane.b32.xlu0 %v7125_v48, %s6268_s0 }
0x2c20   :  { %v3856_v40 = vpop.xlane.xlu1 %3855 }
0x2c21   :  { %v3860_v27 = vsub.f32 %v3852_v25, %v3856_v40 }
0x2c22   :  { %v3859_v28 = vpop.xlane.xlu0 %3858 }
0x2c23   :  { %v3862_v41 = vmul.f32 1.442695, %v3860_v27  ;;  %v3861_v43 = vsub.f32 %v3853_v32, %v3859_v28 }
0x2c24   :  { %v3927_v44 = vpop.permute.xlu1 %3926 }
0x2c25   :  { %6222 = vpow2.f32 %v3862_v41  ;;  %v3864_v45 = vmul.f32 1.442695, %v3861_v43  ;;  %v3932_v50 = vsel %vm250_vm4, %v3927_v44, 0 }
0x2c26   :  { %5874 = vmatpush3.bf16.msra.mxu1 %v3932_v50  ;;  %v3879_v52 = vpop.permute.xlu0 %3878 }
0x2c27   :  { %6224 = vpow2.f32 %v3864_v45  ;;  %v3884_v53 = vsel %vm250_vm4, %v3879_v52, 0  ;;  %5885 = vmatprep.subr.bf16.mxu1 %v6266_v0 }
0x2c28   :  { %5868 = vmatpush3.bf16.msra.mxu0 %v3884_v53 }
0x2c29   :  { %5879 = vmatprep.subr.bf16.mxu0 %v6266_v0 }
0x2c2f   :  { %v6223_v54 = vpop.eup %6222 }
0x2c30   :  { %v3866_v51 = vsel %vm122_vm2, %v6223_v54, 0.0 }
0x2c31   :  { %v6225_v24 = vpop.eup %6224  ;;  %3867 = vadd.xlane.f32.xlu0 %v3866_v51 }
0x2c32   :  { %v3869_v55 = vsel %vm122_vm2, %v6225_v24, 0.0 }
0x2c33   :  { %3870 = vadd.xlane.f32.xlu1 %v3869_v55 }
0x2c44   :  { %3976 = vrot.lane.b32.xlu1 %v7125_v48, %s6272_s25 }
0x2c47   :  { %4026 = vrot.lane.b32.xlu0 %v7127_v46, %s6272_s25 }
0x2c48   :  { %3974 = vrot.lane.b32.xlu1 %v7135_v60, %s6272_s25 }
0x2c4b   :  { %4024 = vrot.lane.b32.xlu0 %v7137_v58, %s6272_s25 }
0x2cbe   :  { %v3868_v56 = vpop.xlane.xlu0 %3867 }
0x2cbf   :  { %6226 = vrcp.f32 %v3868_v56 }
0x2cc0   :  { %v3871_v59 = vpop.xlane.xlu1 %3870 }
0x2cc1   :  { %6228 = vrcp.f32 %v3871_v59 }
0x2cc2   :  { %v4027_v3 = vpop.permute.xlu0 %4026 }
0x2cc3   :  { %v4032_v7 = vsel %vm122_vm2, %v4027_v3, 0 }
0x2cc4   :  { %v3977_v1 = vpop.permute.xlu1 %3976 }
0x2cc5   :  { %v3982_v12 = vsel %vm122_vm2, %v3977_v1, 0 }
0x2cc6   :  { %v4025_v5 = vpop.permute.xlu0 %4024 }
0x2cc8   :  { %v3975_v8 = vpop.permute.xlu1 %3974 }
0x2cc9   :  { %v6227_v10 = vpop.eup %6226 }
0x2cca   :  { %v3874_v61 = vmul.f32 %v6227_v10, %v6223_v54 }
0x2ccb   :  { %v6229_v33 = vpop.eup %6228 }
0x2ccc   :  { %v3875_v2 = vmul.f32 %v6229_v33, %v6225_v24  ;;  %v3876_v20 = vpack.c.bf16 %v3874_v61, %v3874_v61 }
0x2cce   :  { %5870 = vmatmul.mubr.msk.bf16.vlgmr.msra.gmra.mrb[112].mxu0 %vm122_vm2, %v3876_v20  ;;  %v3877_v6 = vpack.c.bf16 %v3875_v2, %v3875_v2 }
0x2ccf   :  { %5880 = vmatpush3.bf16.xpose.msra.mxu0 %v3982_v12  ;;  %5881 = vmatprep.mubr.msk.bf16.mxu0 %vm6267_vm0, %v6266_v0 }
0x2cd0   :  { %5876 = vmatmul.mubr.msk.bf16.vlgmr.msra.gmra.mrb[132].mxu1 %vm122_vm2, %v3877_v6  ;;  %5891 = vmatprep.subr.bf16.mxu0 %v6266_v0 }
0x2cd1   :  { %5886 = vmatpush3.bf16.xpose.msra.mxu1 %v4032_v7  ;;  %5887 = vmatprep.mubr.msk.bf16.mxu1 %vm6267_vm0, %v6266_v0 }
0x2cd2   :  { %5897 = vmatprep.subr.bf16.mxu1 %v6266_v0 }
0x2cd6   :  { %5882 = vmatmul.mubr.msk.bf16.vlgmr.msra.gmra.mrb[116].mxu0 %vm122_vm2, %v3975_v8 }
0x2cd7   :  { %5893 = vmatprep.mubr.msk.bf16.mxu0 %vm6267_vm0, %v6266_v0 }
0x2cd8   :  { %5888 = vmatmul.mubr.msk.bf16.vlgmr.msra.gmra.mrb[136].mxu1 %vm122_vm2, %v4025_v5 }
0x2cd9   :  { %5899 = vmatprep.mubr.msk.bf16.mxu1 %vm6267_vm0, %v6266_v0 }
0x2da1   :  { %v7183_v9 = vpop.f32.mrb[112].mxu0 }
0x2da2   :  { %v5871_v15 = vpop.f32.mrb[113].mxu0 }
0x2da3   :  { %v3923_v16 = vpop.f32.mrb[114].mxu0  ;;  %v7185_v17 = vpop.f32.mrb[132].mxu1 }
0x2da4   :  { %v5872_v18 = vpop.f32.mrb[115].mxu0  ;;  %v5877_v19 = vpop.f32.mrb[133].mxu1 }
0x2da5   :  { %v3971_v57 = vpop.f32.mrb[134].mxu1 }
0x2da6   :  { %v5878_v42 = vpop.f32.mrb[135].mxu1 }
0x2da9   :  { %v4018_v49 = vpop.f32.mrb[116].mxu0 }
0x2daa   :  { %v4074_v47 = vmul.f32 0.35355338, %v4018_v49  ;;  %v5883_v21 = vpop.f32.mrb[117].mxu0 }
0x2dab   :  { %v4021_v22 = vpop.f32.mrb[118].mxu0  ;;  %v4068_v23 = vpop.f32.mrb[136].mxu1 }
0x2dac   :  { %v4075_v4 = vmul.f32 0.35355338, %v4068_v23  ;;  %v5884_v26 = vpop.f32.mrb[119].mxu0  ;;  %v5889_v29 = vpop.f32.mrb[137].mxu1  ;;  %v4076_v30 = vsel %vm122_vm2, %v4074_v47, -inf }
0x2dad   :  { %4077 = vmax.xlane.f32.xlu1 %v4076_v30  ;;  %v4071_v62 = vpop.f32.mrb[138].mxu1 }
0x2dae   :  { %v5890_v25 = vpop.f32.mrb[139].mxu1  ;;  %v4079_v11 = vsel %vm122_vm2, %v4075_v4, -inf }
0x2daf   :  { %4080 = vmax.xlane.f32.xlu0 %v4079_v11 }
0x2dbe   :  { %4148 = vrot.lane.b32.xlu1 %v7127_v46, %s6271_s24 }
0x2dc5   :  { %4100 = vrot.lane.b32.xlu0 %v7125_v48, %s6271_s24 }
0x2e3a   :  { %v4078_v63 = vpop.xlane.xlu1 %4077 }
0x2e3b   :  { %v4082_v31 = vsub.f32 %v4074_v47, %v4078_v63 }
0x2e3c   :  { %v4081_v32 = vpop.xlane.xlu0 %4080 }
0x2e3d   :  { %v4084_v34 = vmul.f32 1.442695, %v4082_v31  ;;  %v4083_v35 = vsub.f32 %v4075_v4, %v4081_v32 }
0x2e3e   :  { %v4149_v36 = vpop.permute.xlu1 %4148 }
0x2e3f   :  { %6230 = vpow2.f32 %v4084_v34  ;;  %v4086_v37 = vmul.f32 1.442695, %v4083_v35  ;;  %v4154_v38 = vsel %vm250_vm4, %v4149_v36, 0 }
0x2e40   :  { %5898 = vmatpush3.bf16.msra.mxu1 %v4154_v38  ;;  %v4101_v39 = vpop.permute.xlu0 %4100 }
0x2e41   :  { %6232 = vpow2.f32 %v4086_v37  ;;  %v4106_v40 = vsel %vm250_vm4, %v4101_v39, 0  ;;  %5909 = vmatprep.subr.bf16.mxu1 %v6266_v0 }
0x2e42   :  { %5892 = vmatpush3.bf16.msra.mxu0 %v4106_v40 }
0x2e43   :  { %5903 = vmatprep.subr.bf16.mxu0 %v6266_v0 }
0x2e49   :  { %v6231_v27 = vpop.eup %6230 }
0x2e4a   :  { %v4088_v28 = vsel %vm122_vm2, %v6231_v27, 0.0 }
0x2e4b   :  { %v6233_v41 = vpop.eup %6232  ;;  %4089 = vadd.xlane.f32.xlu0 %v4088_v28 }
0x2e4c   :  { %v4091_v43 = vsel %vm122_vm2, %v6233_v41, 0.0 }
0x2e4d   :  { %4092 = vadd.xlane.f32.xlu1 %v4091_v43 }
0x2e5e   :  { %4198 = vrot.lane.b32.xlu1 %v7125_v48, %s6275_s28 }
0x2e61   :  { %4248 = vrot.lane.b32.xlu0 %v7127_v46, %s6275_s28 }
0x2e62   :  { %4196 = vrot.lane.b32.xlu1 %v7135_v60, %s6275_s28 }
0x2e65   :  { %4246 = vrot.lane.b32.xlu0 %v7137_v58, %s6275_s28 }
0x2ed8   :  { %v4090_v44 = vpop.xlane.xlu0 %4089 }
0x2ed9   :  { %6234 = vrcp.f32 %v4090_v44 }
0x2eda   :  { %v4093_v45 = vpop.xlane.xlu1 %4092 }
0x2edb   :  { %6236 = vrcp.f32 %v4093_v45 }
0x2edc   :  { %v4249_v55 = vpop.permute.xlu0 %4248 }
0x2edd   :  { %v4254_v10 = vsel %vm122_vm2, %v4249_v55, 0 }
0x2ede   :  { %v4199_v54 = vpop.permute.xlu1 %4198 }
0x2edf   :  { %v4204_v56 = vsel %vm122_vm2, %v4199_v54, 0 }
0x2ee0   :  { %v4247_v33 = vpop.permute.xlu0 %4246 }
0x2ee2   :  { %v4197_v61 = vpop.permute.xlu1 %4196 }
0x2ee3   :  { %v6235_v50 = vpop.eup %6234 }
0x2ee4   :  { %v4096_v52 = vmul.f32 %v6235_v50, %v6231_v27 }
0x2ee5   :  { %v6237_v53 = vpop.eup %6236 }
0x2ee6   :  { %v4097_v51 = vmul.f32 %v6237_v53, %v6233_v41  ;;  %v4098_v24 = vpack.c.bf16 %v4096_v52, %v4096_v52 }
0x2ee8   :  { %5894 = vmatmul.mubr.msk.bf16.vlgmr.msra.gmra.mrb[120].mxu0 %vm122_vm2, %v4098_v24  ;;  %v4099_v59 = vpack.c.bf16 %v4097_v51, %v4097_v51 }
0x2ee9   :  { %5904 = vmatpush3.bf16.xpose.msra.mxu0 %v4204_v56  ;;  %5905 = vmatprep.mubr.msk.bf16.mxu0 %vm6267_vm0, %v6266_v0 }
0x2eea   :  { %5900 = vmatmul.mubr.msk.bf16.vlgmr.msra.gmra.mrb[140].mxu1 %vm122_vm2, %v4099_v59  ;;  %5915 = vmatprep.subr.bf16.mxu0 %v6266_v0 }
0x2eeb   :  { %5910 = vmatpush3.bf16.xpose.msra.mxu1 %v4254_v10  ;;  %5911 = vmatprep.mubr.msk.bf16.mxu1 %vm6267_vm0, %v6266_v0 }
0x2eec   :  { %5921 = vmatprep.subr.bf16.mxu1 %v6266_v0 }
0x2ef0   :  { %5906 = vmatmul.mubr.msk.bf16.vlgmr.msra.gmra.mrb[124].mxu0 %vm122_vm2, %v4197_v61 }
0x2ef1   :  { %5917 = vmatprep.mubr.msk.bf16.mxu0 %vm6267_vm0, %v6266_v0 }
0x2ef2   :  { %5912 = vmatmul.mubr.msk.bf16.vlgmr.msra.gmra.mrb[144].mxu1 %vm122_vm2, %v4247_v33 }
0x2ef3   :  { %5923 = vmatprep.mubr.msk.bf16.mxu1 %vm6267_vm0, %v6266_v0 }
0x2fbb   :  { %v7223_v1 = vpop.f32.mrb[120].mxu0 }
0x2fbc   :  { %v5895_v2 = vpop.f32.mrb[121].mxu0 }
0x2fbd   :  { %v4145_v20 = vpop.f32.mrb[122].mxu0  ;;  %v7225_v3 = vpop.f32.mrb[140].mxu1 }
0x2fbe   :  { %v6057_v12 = vpack.i.bf16 %v7225_v3, %v7223_v1  ;;  %v5896_v6 = vpop.f32.mrb[123].mxu0  ;;  %v5901_v7 = vpop.f32.mrb[141].mxu1 }
0x2fbf   :  { %v4193_v8 = vpop.f32.mrb[142].mxu1 }
0x2fc0   :  { %v5902_v5 = vpop.f32.mrb[143].mxu1 }
0x2fc3   :  { %v4240_v15 = vpop.f32.mrb[124].mxu0 }
0x2fc4   :  { %v4296_v16 = vmul.f32 0.35355338, %v4240_v15  ;;  %v5907_v18 = vpop.f32.mrb[125].mxu0 }
0x2fc5   :  { %v4243_v19 = vpop.f32.mrb[126].mxu0  ;;  %v4290_v57 = vpop.f32.mrb[144].mxu1 }
0x2fc6   :  { %v4297_v42 = vmul.f32 0.35355338, %v4290_v57  ;;  %v5908_v49 = vpop.f32.mrb[127].mxu0  ;;  %v5913_v47 = vpop.f32.mrb[145].mxu1  ;;  %v4298_v21 = vsel %vm122_vm2, %v4296_v16, -inf }
0x2fc7   :  { %4299 = vmax.xlane.f32.xlu1 %v4298_v21  ;;  %v4293_v22 = vpop.f32.mrb[146].mxu1 }
0x2fc8   :  { %v5914_v23 = vpop.f32.mrb[147].mxu1  ;;  %v4301_v4 = vsel %vm122_vm2, %v4297_v42, -inf }
0x2fc9   :  { %4302 = vmax.xlane.f32.xlu0 %v4301_v4 }
0x2fd8   :  { %4370 = vrot.lane.b32.xlu1 %v7127_v46, %s6274_s27 }
0x2fdf   :  { %4322 = vrot.lane.b32.xlu0 %v7125_v48, %s6274_s27 }
0x3054   :  { %v4300_v26 = vpop.xlane.xlu1 %4299 }
0x3055   :  { %v4304_v29 = vsub.f32 %v4296_v16, %v4300_v26 }
0x3056   :  { %v4303_v30 = vpop.xlane.xlu0 %4302 }
0x3057   :  { %v4306_v62 = vmul.f32 1.442695, %v4304_v29  ;;  %v4305_v25 = vsub.f32 %v4297_v42, %v4303_v30 }
0x3058   :  { %v4371_v11 = vpop.permute.xlu1 %4370 }
0x3059   :  { %6238 = vpow2.f32 %v4306_v62  ;;  %v4308_v63 = vmul.f32 1.442695, %v4305_v25  ;;  %v4376_v31 = vsel %vm250_vm4, %v4371_v11, 0 }
0x305a   :  { %5922 = vmatpush3.bf16.msra.mxu1 %v4376_v31  ;;  %v4323_v32 = vpop.permute.xlu0 %4322 }
0x305b   :  { %6240 = vpow2.f32 %v4308_v63  ;;  %v4328_v34 = vsel %vm250_vm4, %v4323_v32, 0  ;;  %5933 = vmatprep.subr.bf16.mxu1 %v6266_v0 }
0x305c   :  { %5916 = vmatpush3.bf16.msra.mxu0 %v4328_v34 }
0x305d   :  { %5927 = vmatprep.subr.bf16.mxu0 %v6266_v0 }
0x3063   :  { %v6239_v35 = vpop.eup %6238 }
0x3064   :  { %v4310_v36 = vsel %vm122_vm2, %v6239_v35, 0.0 }
0x3065   :  { %v6241_v37 = vpop.eup %6240  ;;  %4311 = vadd.xlane.f32.xlu0 %v4310_v36 }
0x3066   :  { %v4313_v38 = vsel %vm122_vm2, %v6241_v37, 0.0 }
0x3067   :  { %4314 = vadd.xlane.f32.xlu1 %v4313_v38  ;;  %v6097_v38 = vld [vmem:[%s7404_s5 + $0x18] sm:$0xff]  }
0x3078   :  { %4420 = vrot.lane.b32.xlu1 %v7125_v48, %s6278_s11 }
0x307b   :  { %4470 = vrot.lane.b32.xlu0 %v7127_v46, %s6278_s11 }
0x307c   :  { %4418 = vrot.lane.b32.xlu1 %v7135_v60, %s6278_s11 }
0x307f   :  { %4468 = vrot.lane.b32.xlu0 %v7137_v58, %s6278_s11 }
0x30f2   :  { %v4312_v39 = vpop.xlane.xlu0 %4311 }
0x30f3   :  { %6242 = vrcp.f32 %v4312_v39 }
0x30f4   :  { %v4315_v40 = vpop.xlane.xlu1 %4314 }
0x30f5   :  { %6244 = vrcp.f32 %v4315_v40 }
0x30f6   :  { %v4471_v50 = vpop.permute.xlu0 %4470 }
0x30f7   :  { %v4476_v60 = vsel %vm122_vm2, %v4471_v50, 0 }
0x30f8   :  { %v4421_v43 = vpop.permute.xlu1 %4420 }
0x30f9   :  { %v4426_v52 = vsel %vm122_vm2, %v4421_v43, 0 }
0x30fa   :  { %v4469_v54 = vpop.permute.xlu0 %4468 }
0x30fc   :  { %v4419_v58 = vpop.permute.xlu1 %4418 }
0x30fd   :  { %v6243_v27 = vpop.eup %6242 }
0x30fe   :  { %v4318_v28 = vmul.f32 %v6243_v27, %v6239_v35 }
0x30ff   :  { %v6245_v41 = vpop.eup %6244 }
0x3100   :  { %v4319_v44 = vmul.f32 %v6245_v41, %v6241_v37  ;;  %v4320_v45 = vpack.c.bf16 %v4318_v28, %v4318_v28  ;;  %v6096_v37 = vld [vmem:[%s7404_s5 + $0x10] sm:$0xff]  }
0x3102   :  { %5918 = vmatmul.mubr.msk.bf16.vlgmr.msra.gmra.mrb[128].mxu0 %vm122_vm2, %v4320_v45  ;;  %v4321_v53 = vpack.c.bf16 %v4319_v44, %v4319_v44 }
0x3103   :  { %5928 = vmatpush3.bf16.xpose.msra.mxu0 %v4426_v52  ;;  %5929 = vmatprep.mubr.msk.bf16.mxu0 %vm6267_vm0, %v6266_v0 }
0x3104   :  { %5924 = vmatmul.mubr.msk.bf16.vlgmr.msra.gmra.mrb[148].mxu1 %vm122_vm2, %v4321_v53  ;;  %5939 = vmatprep.subr.bf16.mxu0 %v6266_v0 }
0x3105   :  { %5934 = vmatpush3.bf16.xpose.msra.mxu1 %v4476_v60  ;;  %5935 = vmatprep.mubr.msk.bf16.mxu1 %vm6267_vm0, %v6266_v0 }
0x3106   :  { %5945 = vmatprep.subr.bf16.mxu1 %v6266_v0 }
0x310a   :  { %5930 = vmatmul.mubr.msk.bf16.vlgmr.msra.gmra.mrb[132].mxu0 %vm122_vm2, %v4419_v58 }
0x310b   :  { %5941 = vmatprep.mubr.msk.bf16.mxu0 %vm6267_vm0, %v6266_v0 }
0x310c   :  { %5936 = vmatmul.mubr.msk.bf16.vlgmr.msra.gmra.mrb[152].mxu1 %vm122_vm2, %v4469_v54 }
0x310d   :  { %5947 = vmatprep.mubr.msk.bf16.mxu1 %vm6267_vm0, %v6266_v0 }
0x31d5   :  { %v4364_v51 = vpop.f32.mrb[128].mxu0 }
0x31d6   :  { %v5919_v24 = vpop.f32.mrb[129].mxu0 }
0x31d7   :  { %v4367_v55 = vpop.f32.mrb[130].mxu0  ;;  %v4412_v56 = vpop.f32.mrb[148].mxu1 }
0x31d8   :  { %v6062_v59 = vpack.i.bf16 %v4412_v56, %v4364_v51  ;;  %v5920_v10 = vpop.f32.mrb[131].mxu0  ;;  %v5925_v61 = vpop.f32.mrb[149].mxu1 }
0x31d9   :  { %v4415_v33 = vpop.f32.mrb[150].mxu1 }
0x31da   :  { %v5926_v2 = vpop.f32.mrb[151].mxu1 }
0x31dd   :  { %v4462_v20 = vpop.f32.mrb[132].mxu0 }
0x31de   :  { %v4518_v6 = vmul.f32 0.35355338, %v4462_v20  ;;  %v5931_v7 = vpop.f32.mrb[133].mxu0 }
0x31df   :  { %v4465_v8 = vpop.f32.mrb[134].mxu0  ;;  %v4512_v5 = vpop.f32.mrb[152].mxu1 }
0x31e0   :  { %v4519_v15 = vmul.f32 0.35355338, %v4512_v5  ;;  %v5932_v16 = vpop.f32.mrb[135].mxu0  ;;  %v5937_v18 = vpop.f32.mrb[153].mxu1  ;;  %v4520_v19 = vsel %vm122_vm2, %v4518_v6, -inf }
0x31e1   :  { %4521 = vmax.xlane.f32.xlu1 %v4520_v19  ;;  %v4515_v57 = vpop.f32.mrb[154].mxu1 }
0x31e2   :  { %v5938_v42 = vpop.f32.mrb[155].mxu1  ;;  %v4523_v49 = vsel %vm122_vm2, %v4519_v15, -inf }
0x31e3   :  { %4524 = vmax.xlane.f32.xlu0 %v4523_v49 }
0x326e   :  { %v4522_v47 = vpop.xlane.xlu1 %4521 }
0x326f   :  { %v4526_v21 = vsub.f32 %v4518_v6, %v4522_v47 }
0x3270   :  { %v4525_v22 = vpop.xlane.xlu0 %4524 }
0x3271   :  { %v4528_v23 = vmul.f32 1.442695, %v4526_v21  ;;  %v4527_v4 = vsub.f32 %v4519_v15, %v4525_v22 }
0x3273   :  { %6246 = vpow2.f32 %v4528_v23  ;;  %v4530_v26 = vmul.f32 1.442695, %v4527_v4 }
0x3275   :  { %6248 = vpow2.f32 %v4530_v26 }
0x327d   :  { %v6247_v29 = vpop.eup %6246 }
0x327e   :  { %v4532_v30 = vsel %vm122_vm2, %v6247_v29, 0.0 }
0x327f   :  { %v6249_v62 = vpop.eup %6248  ;;  %4533 = vadd.xlane.f32.xlu0 %v4532_v30 }
0x3280   :  { %v4535_v25 = vsel %vm122_vm2, %v6249_v62, 0.0 }
0x3281   :  { %4536 = vadd.xlane.f32.xlu1 %v4535_v25  ;;  %v6100_v25 = vld [vmem:[%s7406_s7 + $0x40] sm:$0xff]  }
0x3292   :  { %4592 = vrot.lane.b32.xlu1 %v7127_v46, %s6277_s30 }
0x3295   :  { %4544 = vrot.lane.b32.xlu0 %v7125_v48, %s6277_s30 }
0x3296   :  { %6058 = vrot.lane.b32.xlu1 %v6057_v12, %s6280_s13 }
0x3299   :  { %6063 = vrot.lane.b32.xlu0 %v6062_v59, %s6281_s14 }
0x330c   :  { %v4534_v11 = vpop.xlane.xlu0 %4533 }
0x330d   :  { %6250 = vrcp.f32 %v4534_v11  ;;  %v6101_v11 = vld [vmem:[%s7406_s7 + $0x48] sm:$0xff]  }
0x330e   :  { %v4537_v63 = vpop.xlane.xlu1 %4536 }
0x330f   :  { %6252 = vrcp.f32 %v4537_v63  ;;  %v6102_v63 = vld [vmem:[%s7406_s7 + $0x50] sm:$0xff]  }
0x3310   :  { %v4545_v31 = vpop.permute.xlu0 %4544 }
0x3311   :  { %v4550_v32 = vsel %vm250_vm4, %v4545_v31, 0  ;;  %v6103_v31 = vld [vmem:[%s7406_s7 + $0x58] sm:$0xff]  }
0x3312   :  { %v4593_v34 = vpop.permute.xlu1 %4592  ;;  %5940 = vmatpush3.bf16.msra.mxu0 %v4550_v32  ;;  %v6104_v32 = vld [vmem:[%s7406_s7 + $0x60] sm:$0xff]  }
0x3313   :  { %v4598_v46 = vsel %vm250_vm4, %v4593_v34, 0  ;;  %5951 = vmatprep.subr.bf16.mxu0 %v6266_v0  ;;  %v6105_v34 = vld [vmem:[%s7406_s7 + $0x68] sm:$0xff]  }
0x3314   :  { %5946 = vmatpush3.bf16.msra.mxu1 %v4598_v46  ;;  %v6064_v58 = vpop.permute.xlu0 %6063 }
0x3315   :  { %5959 = vmatprep.subr.bf16.mxu1 %v6266_v0  ;;  %v6066_v24 = vunpack.i.h.bf16 %v6064_v58  ;;  %v6065_v55 = vunpack.i.l.bf16 %v6064_v58 }
0x3316   :  { %v6059_v52 = vpop.permute.xlu1 %6058 }
0x3317   :  { %v6251_v48 = vpop.eup %6250  ;;  %v6061_v53 = vunpack.i.h.bf16 %v6059_v52  ;;  %v6060_v60 = vunpack.i.l.bf16 %v6059_v52  ;;  %v6107_v52 = vld [vmem:[%s7406_s7 + $0x78] sm:$0xff]  }
0x3318   :  { %v4540_v1 = vmul.f32 %v6251_v48, %v6247_v29 }
0x3319   :  { %v6253_v3 = vpop.eup %6252  ;;  %v4665_v54 = vsel %vm122_vm2, %v7185_v17, %v6061_v53  ;;  %v4664_v51 = vsel %vm122_vm2, %v7183_v9, %v6060_v60  ;;  %v5225_v9 = vld [vmem:[%s7400_s9 + $0xf] ss:$0 sm:$0xff]  ;;  %v5235_v53 = vld [vmem:[%s7400_s9 + $0x16] ss:$0 sm:$0xff] }
0x331a   :  { %v4541_v12 = vmul.f32 %v6253_v3, %v6249_v62  ;;  %v4542_v35 = vpack.c.bf16 %v4540_v1, %v4540_v1  ;;  %v4666_v61 = vsel %vm1040_vm5, %v4664_v51, %v6065_v55  ;;  %v4667_v33 = vsel %vm1040_vm5, %v4665_v54, %v6066_v24  ;;  %v6099_v62 = vld [vmem:[%s7405_s6 + $0x18] sm:$0xff]  }
0x331c   :  { %5942 = vmatmul.mubr.msk.bf16.vlgmr.msra.gmra.mrb[136].mxu0 %vm122_vm2, %v4542_v35  ;;  %v4543_v36 = vpack.c.bf16 %v4541_v12, %v4541_v12 }
0x331d   :  { %5955 = vmatprep.mubr.msk.bf16.mxu0 %vm6267_vm0, %v6266_v0  ;;  %5952 = vmatpush3.bf16.msra.mxu0 %v6096_v37 }
0x331e   :  { %5948 = vmatmul.mubr.msk.bf16.vlgmr.msra.gmra.mrb[156].mxu1 %vm122_vm2, %v4543_v36  ;;  %5953 = vmatprep.subr.bf16.mxu0 %v6266_v0 }
0x331f   :  { %5963 = vmatprep.mubr.msk.bf16.mxu1 %vm6267_vm0, %v6266_v0 }
0x3321   :  { %5954 = vmatpush3.bf16.msra.mxu0 %v6097_v38  ;;  %v5229_v38 = vld [vmem:[%s7400_s9 + $0x11] ss:$0 sm:$0xff] }
0x3322   :  { %5967 = vmatprep.subr.bf16.mxu0 %v6266_v0 }
0x33ef   :  { %v4586_v39 = vpop.f32.mrb[136].mxu0 }
0x33f0   :  { %v5943_v40 = vpop.f32.mrb[137].mxu0 }
0x33f1   :  { %v4589_v27 = vpop.f32.mrb[138].mxu0  ;;  %v4634_v28 = vpop.f32.mrb[156].mxu1 }
0x33f2   :  { %v6067_v41 = vpack.i.bf16 %v4634_v28, %v4586_v39  ;;  %v5944_v43 = vpop.f32.mrb[139].mxu0  ;;  %v5949_v44 = vpop.f32.mrb[157].mxu1  ;;  %v5230_v28 = vld [vmem:[%s7400_s9 + $0x14] ss:$0 sm:$0xff] }
0x33f3   :  { %v4637_v45 = vpop.f32.mrb[158].mxu1 }
0x33f4   :  { %6068 = vrot.lane.b32.xlu1 %v6067_v41, %s6282_s19  ;;  %v5950_v50 = vpop.f32.mrb[159].mxu1 }
0x33f5   :  { %v6106_v50 = vld [vmem:[%s7406_s7 + $0x70] sm:$0xff]  }
0x3466   :  { %v6069_v56 = vpop.permute.xlu1 %6068 }
0x3467   :  { %v6071_v59 = vunpack.i.h.bf16 %v6069_v56  ;;  %v6070_v10 = vunpack.i.l.bf16 %v6069_v56 }
0x3469   :  { %v4669_v2 = vsel %vm1043_vm6, %v4667_v33, %v6071_v59  ;;  %v4668_v20 = vsel %vm1043_vm6, %v4666_v61, %v6070_v10  ;;  %v5255_v61 = vld [vmem:[%s7400_s9 + $0x17] ss:$0 sm:$0xff] }
0x346a   :  { %v4670_v6 = vpack.c.bf16 %v4669_v2, %v4668_v20 }
0x346c   :  { %5956 = vmatmul.mubr.msk.bf16.vlgmr.msra.gmra.mrb[140].mxu0 %vm69_vm1, %v4670_v6 }
0x346d   :  { %5983 = vmatprep.mubr.msk.bf16.mxu0 %vm6267_vm0, %v6266_v0  ;;  %5968 = vmatpush3.bf16.msra.mxu0 %v6100_v25 }
0x346e   :  { %5969 = vmatprep.subr.bf16.mxu0 %v6266_v0 }
0x3471   :  { %5970 = vmatpush3.bf16.msra.mxu0 %v6101_v11 }
0x3472   :  { %5971 = vmatprep.subr.bf16.mxu0 %v6266_v0 }
0x3475   :  { %5972 = vmatpush3.bf16.msra.mxu0 %v6102_v63  ;;  %v5264_v63 = vld [vmem:[%s7400_s9 + $0x12] ss:$0 sm:$0xff] }
0x3476   :  { %5973 = vmatprep.subr.bf16.mxu0 %v6266_v0 }
0x3479   :  { %5974 = vmatpush3.bf16.msra.mxu0 %v6103_v31 }
0x347a   :  { %5975 = vmatprep.subr.bf16.mxu0 %v6266_v0 }
0x347d   :  { %5976 = vmatpush3.bf16.msra.mxu0 %v6104_v32 }
0x347e   :  { %5977 = vmatprep.subr.bf16.mxu0 %v6266_v0 }
0x3481   :  { %5978 = vmatpush3.bf16.msra.mxu0 %v6105_v34 }
0x3482   :  { %5979 = vmatprep.subr.bf16.mxu0 %v6266_v0 }
0x3485   :  { %5980 = vmatpush3.bf16.msra.mxu0 %v6106_v50 }
0x3486   :  { %5981 = vmatprep.subr.bf16.mxu0 %v6266_v0 }
0x3489   :  { %5982 = vmatpush3.bf16.msra.mxu0 %v6107_v52 }
0x353f   :  { %v4730_v17 = vpop.f32.mrb[140].mxu0 }
0x3540   :  { %v4731_v7 = vadd.f32 %v5225_v9, %v4730_v17  ;;  %v5957_v8 = vpop.f32.mrb[141].mxu0 }
0x3541   :  { %v4733_v5 = vpop.f32.mrb[142].mxu0 }
0x3542   :  { %v4737_v15 = vadd.f32 %v4731_v7, %v7116_v13  ;;  %v4734_v16 = vadd.f32 %v5225_v9, %v4733_v5  ;;  %v5958_v18 = vpop.f32.mrb[143].mxu0 }
0x3544   :  { %v4738_v19 = vadd.f32 %v4734_v16, %v7118_v14  ;;  %v4741_v57 = vsel %vm69_vm1, %v4737_v15, 0.0  ;;  %v6098_v14 = vld [vmem:[%s7405_s6 + $0x10] sm:$0xff]  }
0x3545   :  { %4742 = vadd.xlane.f32.xlu0 %v4741_v57  ;;  %5960 = vmatpush3.bf16.msra.mxu1 %v6098_v14 }
0x3546   :  { %v4744_v42 = vsel %vm69_vm1, %v4738_v19, 0.0  ;;  %5961 = vmatprep.subr.bf16.mxu1 %v6266_v0 }
0x3547   :  { %4745 = vadd.xlane.f32.xlu1 %v4744_v42 }
0x3549   :  { %5962 = vmatpush3.bf16.msra.mxu1 %v6099_v62 }
0x354a   :  { %5987 = vmatprep.subr.bf16.mxu1 %v6266_v0 }
0x35d2   :  { %v4743_v49 = vpop.xlane.xlu0 %4742 }
0x35d3   :  { %v4747_v47 = vmul.f32 0.03125, %v4743_v49 }
0x35d4   :  { %v4746_v21 = vpop.xlane.xlu1 %4745 }
0x35d5   :  { %v4749_v22 = vsub.f32 %v4737_v15, %v4747_v47  ;;  %v4748_v23 = vmul.f32 0.03125, %v4746_v21 }
0x35d7   :  { %v4750_v4 = vsub.f32 %v4738_v19, %v4748_v23  ;;  %v4751_v26 = vmul.f32 %v4749_v22, %v4749_v22 }
0x35d9   :  { %v4753_v29 = vsel %vm69_vm1, %v4751_v26, 0.0  ;;  %v4752_v13 = vmul.f32 %v4750_v4, %v4750_v4  ;;  %v6109_v26 = vld [vmem:[%s7407_s8 + $0x8] sm:$0xff]  }
0x35da   :  { %4754 = vadd.xlane.f32.xlu0 %v4753_v29 }
0x35db   :  { %v4756_v30 = vsel %vm69_vm1, %v4752_v13, 0.0 }
0x35de   :  { %4757 = vadd.xlane.f32.xlu0 %v4756_v30 }
0x3667   :  { %v4755_v46 = vpop.xlane.xlu0 %4754 }
0x3668   :  { %v4759_v48 = vmul.f32 0.03125, %v4755_v46 }
0x366a   :  { %v4761_v1 = vadd.f32 1e-05, %v4759_v48 }
0x366b   :  { %v4758_v3 = vpop.xlane.xlu0 %4757 }
0x366c   :  { %6254 = vrsqrt.f32 %v4761_v1  ;;  %v4760_v12 = vmul.f32 0.03125, %v4758_v3 }
0x366e   :  { %v4762_v35 = vadd.f32 1e-05, %v4760_v12 }
0x3670   :  { %6256 = vrsqrt.f32 %v4762_v35  ;;  %v5266_v35 = vld [vmem:[%s7400_s9 + $0x18] ss:$0 sm:$0xff] }
0x3676   :  { %v6255_v36 = vpop.eup %6254 }
0x3677   :  { %v4765_v37 = vmul.f32 %v6255_v36, %v4749_v22 }
0x3679   :  { %v4771_v40 = vmul.f32 %v5229_v38, %v4765_v37 }
0x367a   :  { %v6257_v39 = vpop.eup %6256 }
0x367b   :  { %v4766_v27 = vmul.f32 %v6257_v39, %v4750_v4  ;;  %v4777_v43 = vadd.f32 %v5230_v28, %v4771_v40  ;;  %v6108_v4 = vld [vmem:[%s7407_s8] sm:$0xff]  }
0x367d   :  { %v4772_v41 = vmul.f32 %v5229_v38, %v4766_v27 }
0x367f   :  { %v4778_v44 = vadd.f32 %v5230_v28, %v4772_v41 }
0x3681   :  { %v4779_v45 = vpack.c.bf16 %v4778_v44, %v4777_v43 }
0x3683   :  { %5964 = vmatmul.mubr.msk.bf16.vlgmr.msra.gmra.mrb[160].mxu1 %vm69_vm1, %v4779_v45 }
0x3684   :  { %5991 = vmatprep.mubr.msk.bf16.mxu1 %vm6267_vm0, %v6266_v0  ;;  %5988 = vmatpush3.bf16.msra.mxu1 %v6108_v4 }
0x3685   :  { %5989 = vmatprep.subr.bf16.mxu1 %v6266_v0  ;;  %v5265_v0 = vld [vmem:[%s7400_s9 + $0x15] ss:$0 sm:$0xff] }
0x3688   :  { %5990 = vmatpush3.bf16.msra.mxu1 %v6109_v26 }
0x3756   :  { %v4839_v60 = vpop.f32.mrb[160].mxu1 }
0x3757   :  { %v4840_v58 = vadd.f32 %v5235_v53, %v4839_v60  ;;  %v5965_v54 = vpop.f32.mrb[161].mxu1 }
0x3758   :  { %v4842_v51 = vpop.f32.mrb[162].mxu1 }
0x3759   :  { %v4843_v24 = vadd.f32 %v5235_v53, %v4842_v51  ;;  %v5966_v55 = vpop.f32.mrb[163].mxu1  ;;  %v4846_v56 = vmax.f32 %v4840_v58, 0.0 }
0x375b   :  { %v4847_v59 = vmax.f32 %v4843_v24, 0.0 }
0x375d   :  { %v4848_v10 = vpack.c.bf16 %v4847_v59, %v4846_v56 }
0x375f   :  { %5984 = vmatmul.mubr.bf16.vlgmr.msra.gmra.mrb[144].mxu0 %v4848_v10 }
0x3832   :  { %v4953_v33 = vpop.f32.mrb[144].mxu0 }
0x3833   :  { %v4954_v2 = vadd.f32 %v5255_v61, %v4953_v33  ;;  %v5985_v20 = vpop.f32.mrb[145].mxu0 }
0x3834   :  { %v4956_v6 = vpop.f32.mrb[146].mxu0 }
0x3835   :  { %v4960_v9 = vadd.f32 %v4954_v2, %v4777_v43  ;;  %v4957_v17 = vadd.f32 %v5255_v61, %v4956_v6  ;;  %v5986_v7 = vpop.f32.mrb[147].mxu0 }
0x3837   :  { %v4961_v8 = vadd.f32 %v4957_v17, %v4778_v44  ;;  %v4964_v5 = vsel %vm69_vm1, %v4960_v9, 0.0 }
0x3838   :  { %4965 = vadd.xlane.f32.xlu1 %v4964_v5 }
0x3839   :  { %v4967_v15 = vsel %vm69_vm1, %v4961_v8, 0.0 }
0x383a   :  { %4968 = vadd.xlane.f32.xlu0 %v4967_v15 }
0x38c5   :  { %v4966_v16 = vpop.xlane.xlu1 %4965 }
0x38c6   :  { %v4970_v18 = vmul.f32 0.03125, %v4966_v16 }
0x38c7   :  { %v4969_v19 = vpop.xlane.xlu0 %4968 }
0x38c8   :  { %v4972_v57 = vsub.f32 %v4960_v9, %v4970_v18  ;;  %v4971_v42 = vmul.f32 0.03125, %v4969_v19 }
0x38ca   :  { %v4973_v49 = vsub.f32 %v4961_v8, %v4971_v42  ;;  %v4974_v47 = vmul.f32 %v4972_v57, %v4972_v57 }
0x38cc   :  { %v4976_v21 = vsel %vm69_vm1, %v4974_v47, 0.0  ;;  %v4975_v22 = vmul.f32 %v4973_v49, %v4973_v49 }
0x38cd   :  { %4977 = vadd.xlane.f32.xlu1 %v4976_v21 }
0x38ce   :  { %v4979_v23 = vsel %vm69_vm1, %v4975_v22, 0.0 }
0x38cf   :  { %4980 = vadd.xlane.f32.xlu0 %v4979_v23 }
0x395a   :  { %v4978_v29 = vpop.xlane.xlu1 %4977 }
0x395b   :  { %v4982_v13 = vmul.f32 0.03125, %v4978_v29 }
0x395c   :  { %v4981_v30 = vpop.xlane.xlu0 %4980 }
0x395d   :  { %v4984_v14 = vadd.f32 1e-05, %v4982_v13  ;;  %v4983_v62 = vmul.f32 0.03125, %v4981_v30 }
0x395f   :  { %6258 = vrsqrt.f32 %v4984_v14  ;;  %v4985_v25 = vadd.f32 1e-05, %v4983_v62 }
0x3961   :  { %6260 = vrsqrt.f32 %v4985_v25 }
0x3969   :  { %v6259_v11 = vpop.eup %6258 }
0x396a   :  { %v4988_v31 = vmul.f32 %v6259_v11, %v4972_v57 }
0x396b   :  { %v6261_v32 = vpop.eup %6260 }
0x396c   :  { %v4994_v34 = vmul.f32 %v5264_v63, %v4988_v31  ;;  %v4989_v46 = vmul.f32 %v6261_v32, %v4973_v49 }
0x396e   :  { %v4995_v48 = vmul.f32 %v5264_v63, %v4989_v46  ;;  %v5000_v1 = vadd.f32 %v5265_v0, %v4994_v34 }
0x3970   :  { %v5001_v3 = vadd.f32 %v5265_v0, %v4995_v48 }
0x3972   :  { %v5002_v12 = vpack.c.bf16 %v5001_v3, %v5000_v1 }
0x3974   :  { %5992 = vmatmul.mubr.msk.bf16.vlgmr.msra.gmra.mrb[164].mxu1 %vm69_vm1, %v5002_v12 }
0x3a47   :  { %v5061_v36 = vpop.f32.mrb[164].mxu1 }
0x3a48   :  { %v5062_v37 = vadd.f32 %v5266_v35, %v5061_v36  ;;  %v5993_v38 = vpop.f32.mrb[165].mxu1 }
0x3a49   :  { %v5064_v39 = vpop.f32.mrb[166].mxu1 }
0x3a4a   :  { %v5068_v40 = vmul.f32 0.5, %v5062_v37  ;;  %v5065_v27 = vadd.f32 %v5266_v35, %v5064_v39  ;;  %v5994_v28 = vpop.f32.mrb[167].mxu1 }
0x3a4c   :  { %6262 = vtanh.f32 %v5068_v40  ;;  %v5069_v41 = vmul.f32 0.5, %v5065_v27 }
0x3a4e   :  { %6264 = vtanh.f32 %v5069_v41 }
0x3a56   :  { %v6263_v43 = vpop.eup %6262 }
0x3a57   :  { %v5072_v44 = vadd.f32 1.0, %v6263_v43 }
0x3a58   :  { %v6265_v45 = vpop.eup %6264 }
0x3a59   :  { %v5074_v50 = vmul.f32 0.5, %v5072_v44  ;;  %v5073_v52 = vadd.f32 1.0, %v6265_v45 }
0x3a5b   :  { %5076 = vst [vmem:[%s7408_s10] sm:$0xff] %v5074_v50  ;;  %v5075_v53 = vmul.f32 0.5, %v5073_v52 }
0x3a5d   :  { %5077 = vst [vmem:[%s7408_s10 + $0x8] sm:$0xff] %v5075_v53 }

</bundles_post_ra>
